<compile_context>
chip_gen: v7x
topology: tpu7x:2x2x1
jax: 0.10.0
libtpu: 0.0.40
codegen_flags: <defaults>
</compile_context>

<pallas_src>
import functools

import jax
import jax.numpy as jnp
from jax.experimental import pallas as pl
from jax.experimental.pallas import tpu as pltpu


# ------------------------------ fused kernel --------------------------------

def _fused_fcn_kernel(p1_ref, w1_ref, b1_ref, w2_ref, b2_ref, o_ref, *,
                      n, ho1, wo1, ho2, wo2, kh, kw, c1, c2):
    # ---- conv1 + ReLU: one 2-D MXU GEMM (M=288, K=25, N=20) ----------------
    y1 = jnp.dot(p1_ref[...], w1_ref[...],
                 preferred_element_type=jnp.float32)        # (288, c1)
    y1 = jnp.maximum(y1 + b1_ref[...], 0.0)                  # f32 epilogue
    # Split leading dims back to spatial view; lane (channel) axis preserved.
    y1 = y1.reshape(n, ho1, wo1, c1)                          # (2, 12, 12, 20)

    # ---- conv2 + ReLU: accumulate over the kh*kw taps -----------------------
    # Each tap: static slice of the VMEM-resident activation, leading-dim
    # merge to (M2, c1), then a 2-D MXU GEMM with that tap's (c1, c2) weight.
    # No 500-lane concat, no broadcast weights; intermediate never leaves VMEM.
    m2 = n * ho2 * wo2
    acc = jnp.zeros((m2, c2), jnp.float32)
    for i in range(kh):
        for j in range(kw):
            tap = y1[:, i:i + ho2, j:j + wo2, :].reshape(m2, c1)   # (128, 20)
            acc = acc + jnp.dot(tap, w2_ref[i * kw + j],
                                preferred_element_type=jnp.float32)
    y2 = jnp.maximum(acc + b2_ref[...], 0.0)                  # (128, c2)

    # Flat 2-D store; the (n, ho2, wo2, c2) split happens in the wrapper.
    o_ref[...] = y2.astype(o_ref.dtype)


# ------------------------------ host wrapper --------------------------------

@jax.jit
def fcn_forward(params, x_nchw):
    """Matches FCN_Model.forward: relu(conv2(relu(conv1(x)))); NCHW in/out."""
    w1, b1, w2, b2 = params["w1"], params["b1"], params["w2"], params["b2"]
    c1, c_in, kh, kw = w1.shape
    c2 = w2.shape[0]
    n, _, h, w = x_nchw.shape
    ho1, wo1 = h - kh + 1, w - kw + 1
    ho2, wo2 = ho1 - kh + 1, wo1 - kw + 1
    m1, m2 = n * ho1 * wo1, n * ho2 * wo2
    k1 = kh * kw * c_in

    # conv1 im2col on the XLA side (input has c_in=1 -> 1 of 128 lanes; the
    # in-kernel single-lane slices/concat were pure relayout work).
    # K ordering is (i, j, ci) — must match the weight reshape below.
    x_nhwc = jnp.transpose(x_nchw, (0, 2, 3, 1))              # (n, h, w, c_in)
    cols = [x_nhwc[:, i:i + ho1, j:j + wo1, :]
            for i in range(kh) for j in range(kw)]
    p1 = jnp.concatenate(cols, axis=-1).reshape(m1, k1)       # (288, 25)

    # Weights: (Cout,Cin,KH,KW) -> (KH,KW,Cin,Cout).
    #   conv1: flat (K1, c1) for the single GEMM.
    #   conv2: per-tap (kh*kw, c1, c2) so the kernel accumulates over taps.
    w1_mat = jnp.transpose(w1, (2, 3, 1, 0)).reshape(k1, c1)
    w2_taps = jnp.transpose(w2, (2, 3, 1, 0)).reshape(kh * kw, c1, c2)
    b1_row = b1.reshape(1, c1)
    b2_row = b2.reshape(1, c2)

    kernel = functools.partial(_fused_fcn_kernel, n=n, ho1=ho1, wo1=wo1,
                               ho2=ho2, wo2=wo2, kh=kh, kw=kw, c1=c1, c2=c2)

    flops = 2 * (m1 * k1 * c1 + m2 * kh * kw * c1 * c2)
    bytes_accessed = 4 * (p1.size + w1_mat.size + w2_taps.size
                          + c1 + c2 + m2 * c2)

    out = pl.pallas_call(
        kernel,
        out_shape=jax.ShapeDtypeStruct((m2, c2), x_nchw.dtype),
        grid=(1,),
        in_specs=[
            pl.BlockSpec((m1, k1), lambda i: (0, 0)),
            pl.BlockSpec((k1, c1), lambda i: (0, 0)),
            pl.BlockSpec((1, c1), lambda i: (0, 0)),
            pl.BlockSpec((kh * kw, c1, c2), lambda i: (0, 0, 0)),
            pl.BlockSpec((1, c2), lambda i: (0, 0)),
        ],
        out_specs=pl.BlockSpec((m2, c2), lambda i: (0, 0)),
        compiler_params=pltpu.CompilerParams(
            dimension_semantics=("arbitrary",)),
        cost_estimate=pl.CostEstimate(flops=flops, transcendentals=0,
                                      bytes_accessed=bytes_accessed),
    )(p1, w1_mat, b1_row, w2_taps, b2_row)

    # Row order in the kernel is (b, oh2, ow2) — split + NCHW transpose here.
    out = out.reshape(n, ho2, wo2, c2)
    return jnp.transpose(out, (0, 3, 1, 2))                   # NHWC -> NCHW


# ------------------------------ params / ref --------------------------------

def init_fcn_params(key, dtype=jnp.float32):
    """conv1: Conv2d(1, 20, 5); conv2: Conv2d(20, 20, 5)."""
    k1, k2, k3, k4 = jax.random.split(key, 4)

    def uinit(k, shape, fan_in):
        bound = 1.0 / jnp.sqrt(jnp.asarray(fan_in, dtype))
        return jax.random.uniform(k, shape, dtype, -bound, bound)

    return {"w1": uinit(k1, (20, 1, 5, 5), 1 * 5 * 5),
            "b1": uinit(k2, (20,), 1 * 5 * 5),
            "w2": uinit(k3, (20, 20, 5, 5), 20 * 5 * 5),
            "b2": uinit(k4, (20,), 20 * 5 * 5)}


def _conv_ref(x_nchw, w, b):
    out = jax.lax.conv_general_dilated(
        x_nchw, w, window_strides=(1, 1), padding="VALID",
        dimension_numbers=("NCHW", "OIHW", "NCHW"))
    return jax.nn.relu(out + b[None, :, None, None])


def fcn_forward_ref(params, x_nchw):
    x = _conv_ref(x_nchw, params["w1"], params["b1"])
    return _conv_ref(x, params["w2"], params["b2"])


# --------------------------------- main --------------------------------------

if __name__ == "__main__":
    key = jax.random.PRNGKey(0)
    k_param, k_x = jax.random.split(key)

    params = init_fcn_params(k_param)
    # Input consistent with Conv2d(1, ...): N=2, C=1, H=W=16.
    x = jax.random.normal(k_x, (2, 1, 16, 16), dtype=jnp.float32)

    out = jax.block_until_ready(fcn_forward(params, x))
    assert out.shape == (2, 20, 8, 8), out.shape

    ref = jax.block_until_ready(fcn_forward_ref(params, x))
    assert jnp.allclose(out, ref, atol=1e-3, rtol=1e-3), (
        float(jnp.max(jnp.abs(out - ref))))

    print("KERNEL_OK")
</pallas_src>

<mosaic_0001>
module attributes {stable_mosaic.version = 11 : i64} {
  func.func @_fused_fcn_kernel(%arg0: i32, %arg1: memref<288x25xf32, #tpu.memory_space<vmem>>, %arg2: memref<25x20xf32, #tpu.memory_space<vmem>>, %arg3: memref<1x20xf32, #tpu.memory_space<vmem>>, %arg4: memref<25x20x20xf32, #tpu.memory_space<vmem>>, %arg5: memref<1x20xf32, #tpu.memory_space<vmem>>, %arg6: memref<128x20xf32, #tpu.memory_space<vmem>>) attributes {dimension_semantics = [#tpu.dimension_semantics<arbitrary>], iteration_bounds = array<i64: 1>, scalar_prefetch = 0 : i64, scratch_operands = 0 : i64, tpu.core_type = #tpu.core_type<tc>, window_params = [{pipeline_mode = #tpu.pipeline_mode<synchronous>, transform_indices = @transform_0, window_bounds = array<i64: 288, 25>}, {pipeline_mode = #tpu.pipeline_mode<synchronous>, transform_indices = @transform_1, window_bounds = array<i64: 25, 20>}, {pipeline_mode = #tpu.pipeline_mode<synchronous>, transform_indices = @transform_2, window_bounds = array<i64: 1, 20>}, {pipeline_mode = #tpu.pipeline_mode<synchronous>, transform_indices = @transform_3, window_bounds = array<i64: 25, 20, 20>}, {pipeline_mode = #tpu.pipeline_mode<synchronous>, transform_indices = @transform_4, window_bounds = array<i64: 1, 20>}, {pipeline_mode = #tpu.pipeline_mode<synchronous>, transform_indices = @transform_5, window_bounds = array<i64: 128, 20>}]} {
    %c0 = arith.constant 0 : index
    %c0_0 = arith.constant 0 : index
    %0 = vector.load %arg1[%c0, %c0_0] : memref<288x25xf32, #tpu.memory_space<vmem>>, vector<288x25xf32>
    %c0_1 = arith.constant 0 : index
    %c0_2 = arith.constant 0 : index
    %1 = vector.load %arg2[%c0_1, %c0_2] : memref<25x20xf32, #tpu.memory_space<vmem>>, vector<25x20xf32>
    %cst = arith.constant dense<0.000000e+00> : vector<288x20xf32>
    %2 = tpu.matmul %0, %1, %cst {dimension_numbers = #tpu.dot_dimension_numbers<[1], [0], [0], [1], [0, 0, 1, 1], [], []>} : vector<288x25xf32>, vector<25x20xf32>, vector<288x20xf32> -> vector<288x20xf32>
    %c0_3 = arith.constant 0 : index
    %c0_4 = arith.constant 0 : index
    %3 = vector.load %arg3[%c0_3, %c0_4] : memref<1x20xf32, #tpu.memory_space<vmem>>, vector<1x20xf32>
    %4 = vector.broadcast %3 : vector<1x20xf32> to vector<288x20xf32>
    %5 = arith.addf %2, %4 : vector<288x20xf32>
    %cst_5 = arith.constant 0.000000e+00 : f32
    %6 = vector.broadcast %cst_5 : f32 to vector<288x20xf32>
    %7 = arith.maximumf %5, %6 : vector<288x20xf32>
    %8 = vector.shape_cast %7 : vector<288x20xf32> to vector<2x12x12x20xf32>
    %cst_6 = arith.constant 0.000000e+00 : f32
    %9 = vector.broadcast %cst_6 : f32 to vector<128x20xf32>
    %10 = vector.extract_strided_slice %8 {offsets = [0, 0, 0, 0], sizes = [2, 8, 8, 20], strides = [1, 1, 1, 1]} : vector<2x12x12x20xf32> to vector<2x8x8x20xf32>
    %11 = vector.shape_cast %10 : vector<2x8x8x20xf32> to vector<128x20xf32>
    %c0_7 = arith.constant 0 : index
    %c0_8 = arith.constant 0 : index
    %c0_9 = arith.constant 0 : index
    %12 = vector.load %arg4[%c0_7, %c0_8, %c0_9] : memref<25x20x20xf32, #tpu.memory_space<vmem>>, vector<1x20x20xf32>
    %13 = vector.shape_cast %12 : vector<1x20x20xf32> to vector<20x20xf32>
    %cst_10 = arith.constant dense<0.000000e+00> : vector<128x20xf32>
    %14 = tpu.matmul %11, %13, %cst_10 {dimension_numbers = #tpu.dot_dimension_numbers<[1], [0], [0], [1], [0, 0, 1, 1], [], []>} : vector<128x20xf32>, vector<20x20xf32>, vector<128x20xf32> -> vector<128x20xf32>
    %15 = arith.addf %9, %14 : vector<128x20xf32>
    %16 = vector.extract_strided_slice %8 {offsets = [0, 0, 1, 0], sizes = [2, 8, 8, 20], strides = [1, 1, 1, 1]} : vector<2x12x12x20xf32> to vector<2x8x8x20xf32>
    %17 = vector.shape_cast %16 : vector<2x8x8x20xf32> to vector<128x20xf32>
    %c1 = arith.constant 1 : index
    %c0_11 = arith.constant 0 : index
    %c0_12 = arith.constant 0 : index
    %18 = vector.load %arg4[%c1, %c0_11, %c0_12] : memref<25x20x20xf32, #tpu.memory_space<vmem>>, vector<1x20x20xf32>
    %19 = vector.shape_cast %18 : vector<1x20x20xf32> to vector<20x20xf32>
    %cst_13 = arith.constant dense<0.000000e+00> : vector<128x20xf32>
    %20 = tpu.matmul %17, %19, %cst_13 {dimension_numbers = #tpu.dot_dimension_numbers<[1], [0], [0], [1], [0, 0, 1, 1], [], []>} : vector<128x20xf32>, vector<20x20xf32>, vector<128x20xf32> -> vector<128x20xf32>
    %21 = arith.addf %15, %20 : vector<128x20xf32>
    %22 = vector.extract_strided_slice %8 {offsets = [0, 0, 2, 0], sizes = [2, 8, 8, 20], strides = [1, 1, 1, 1]} : vector<2x12x12x20xf32> to vector<2x8x8x20xf32>
    %23 = vector.shape_cast %22 : vector<2x8x8x20xf32> to vector<128x20xf32>
    %c2 = arith.constant 2 : index
    %c0_14 = arith.constant 0 : index
    %c0_15 = arith.constant 0 : index
    %24 = vector.load %arg4[%c2, %c0_14, %c0_15] : memref<25x20x20xf32, #tpu.memory_space<vmem>>, vector<1x20x20xf32>
    %25 = vector.shape_cast %24 : vector<1x20x20xf32> to vector<20x20xf32>
    %cst_16 = arith.constant dense<0.000000e+00> : vector<128x20xf32>
    %26 = tpu.matmul %23, %25, %cst_16 {dimension_numbers = #tpu.dot_dimension_numbers<[1], [0], [0], [1], [0, 0, 1, 1], [], []>} : vector<128x20xf32>, vector<20x20xf32>, vector<128x20xf32> -> vector<128x20xf32>
    %27 = arith.addf %21, %26 : vector<128x20xf32>
    %28 = vector.extract_strided_slice %8 {offsets = [0, 0, 3, 0], sizes = [2, 8, 8, 20], strides = [1, 1, 1, 1]} : vector<2x12x12x20xf32> to vector<2x8x8x20xf32>
    %29 = vector.shape_cast %28 : vector<2x8x8x20xf32> to vector<128x20xf32>
    %c3 = arith.constant 3 : index
    %c0_17 = arith.constant 0 : index
    %c0_18 = arith.constant 0 : index
    %30 = vector.load %arg4[%c3, %c0_17, %c0_18] : memref<25x20x20xf32, #tpu.memory_space<vmem>>, vector<1x20x20xf32>
    %31 = vector.shape_cast %30 : vector<1x20x20xf32> to vector<20x20xf32>
    %cst_19 = arith.constant dense<0.000000e+00> : vector<128x20xf32>
    %32 = tpu.matmul %29, %31, %cst_19 {dimension_numbers = #tpu.dot_dimension_numbers<[1], [0], [0], [1], [0, 0, 1, 1], [], []>} : vector<128x20xf32>, vector<20x20xf32>, vector<128x20xf32> -> vector<128x20xf32>
    %33 = arith.addf %27, %32 : vector<128x20xf32>
    %34 = vector.extract_strided_slice %8 {offsets = [0, 0, 4, 0], sizes = [2, 8, 8, 20], strides = [1, 1, 1, 1]} : vector<2x12x12x20xf32> to vector<2x8x8x20xf32>
    %35 = vector.shape_cast %34 : vector<2x8x8x20xf32> to vector<128x20xf32>
    %c4 = arith.constant 4 : index
    %c0_20 = arith.constant 0 : index
    %c0_21 = arith.constant 0 : index
    %36 = vector.load %arg4[%c4, %c0_20, %c0_21] : memref<25x20x20xf32, #tpu.memory_space<vmem>>, vector<1x20x20xf32>
    %37 = vector.shape_cast %36 : vector<1x20x20xf32> to vector<20x20xf32>
    %cst_22 = arith.constant dense<0.000000e+00> : vector<128x20xf32>
    %38 = tpu.matmul %35, %37, %cst_22 {dimension_numbers = #tpu.dot_dimension_numbers<[1], [0], [0], [1], [0, 0, 1, 1], [], []>} : vector<128x20xf32>, vector<20x20xf32>, vector<128x20xf32> -> vector<128x20xf32>
    %39 = arith.addf %33, %38 : vector<128x20xf32>
    %40 = vector.extract_strided_slice %8 {offsets = [0, 1, 0, 0], sizes = [2, 8, 8, 20], strides = [1, 1, 1, 1]} : vector<2x12x12x20xf32> to vector<2x8x8x20xf32>
    %41 = vector.shape_cast %40 : vector<2x8x8x20xf32> to vector<128x20xf32>
    %c5 = arith.constant 5 : index
    %c0_23 = arith.constant 0 : index
    %c0_24 = arith.constant 0 : index
    %42 = vector.load %arg4[%c5, %c0_23, %c0_24] : memref<25x20x20xf32, #tpu.memory_space<vmem>>, vector<1x20x20xf32>
    %43 = vector.shape_cast %42 : vector<1x20x20xf32> to vector<20x20xf32>
    %cst_25 = arith.constant dense<0.000000e+00> : vector<128x20xf32>
    %44 = tpu.matmul %41, %43, %cst_25 {dimension_numbers = #tpu.dot_dimension_numbers<[1], [0], [0], [1], [0, 0, 1, 1], [], []>} : vector<128x20xf32>, vector<20x20xf32>, vector<128x20xf32> -> vector<128x20xf32>
    %45 = arith.addf %39, %44 : vector<128x20xf32>
    %46 = vector.extract_strided_slice %8 {offsets = [0, 1, 1, 0], sizes = [2, 8, 8, 20], strides = [1, 1, 1, 1]} : vector<2x12x12x20xf32> to vector<2x8x8x20xf32>
    %47 = vector.shape_cast %46 : vector<2x8x8x20xf32> to vector<128x20xf32>
    %c6 = arith.constant 6 : index
    %c0_26 = arith.constant 0 : index
    %c0_27 = arith.constant 0 : index
    %48 = vector.load %arg4[%c6, %c0_26, %c0_27] : memref<25x20x20xf32, #tpu.memory_space<vmem>>, vector<1x20x20xf32>
    %49 = vector.shape_cast %48 : vector<1x20x20xf32> to vector<20x20xf32>
    %cst_28 = arith.constant dense<0.000000e+00> : vector<128x20xf32>
    %50 = tpu.matmul %47, %49, %cst_28 {dimension_numbers = #tpu.dot_dimension_numbers<[1], [0], [0], [1], [0, 0, 1, 1], [], []>} : vector<128x20xf32>, vector<20x20xf32>, vector<128x20xf32> -> vector<128x20xf32>
    %51 = arith.addf %45, %50 : vector<128x20xf32>
    %52 = vector.extract_strided_slice %8 {offsets = [0, 1, 2, 0], sizes = [2, 8, 8, 20], strides = [1, 1, 1, 1]} : vector<2x12x12x20xf32> to vector<2x8x8x20xf32>
    %53 = vector.shape_cast %52 : vector<2x8x8x20xf32> to vector<128x20xf32>
    %c7 = arith.constant 7 : index
    %c0_29 = arith.constant 0 : index
    %c0_30 = arith.constant 0 : index
    %54 = vector.load %arg4[%c7, %c0_29, %c0_30] : memref<25x20x20xf32, #tpu.memory_space<vmem>>, vector<1x20x20xf32>
    %55 = vector.shape_cast %54 : vector<1x20x20xf32> to vector<20x20xf32>
    %cst_31 = arith.constant dense<0.000000e+00> : vector<128x20xf32>
    %56 = tpu.matmul %53, %55, %cst_31 {dimension_numbers = #tpu.dot_dimension_numbers<[1], [0], [0], [1], [0, 0, 1, 1], [], []>} : vector<128x20xf32>, vector<20x20xf32>, vector<128x20xf32> -> vector<128x20xf32>
    %57 = arith.addf %51, %56 : vector<128x20xf32>
    %58 = vector.extract_strided_slice %8 {offsets = [0, 1, 3, 0], sizes = [2, 8, 8, 20], strides = [1, 1, 1, 1]} : vector<2x12x12x20xf32> to vector<2x8x8x20xf32>
    %59 = vector.shape_cast %58 : vector<2x8x8x20xf32> to vector<128x20xf32>
    %c8 = arith.constant 8 : index
    %c0_32 = arith.constant 0 : index
    %c0_33 = arith.constant 0 : index
    %60 = vector.load %arg4[%c8, %c0_32, %c0_33] : memref<25x20x20xf32, #tpu.memory_space<vmem>>, vector<1x20x20xf32>
    %61 = vector.shape_cast %60 : vector<1x20x20xf32> to vector<20x20xf32>
    %cst_34 = arith.constant dense<0.000000e+00> : vector<128x20xf32>
    %62 = tpu.matmul %59, %61, %cst_34 {dimension_numbers = #tpu.dot_dimension_numbers<[1], [0], [0], [1], [0, 0, 1, 1], [], []>} : vector<128x20xf32>, vector<20x20xf32>, vector<128x20xf32> -> vector<128x20xf32>
    %63 = arith.addf %57, %62 : vector<128x20xf32>
    %64 = vector.extract_strided_slice %8 {offsets = [0, 1, 4, 0], sizes = [2, 8, 8, 20], strides = [1, 1, 1, 1]} : vector<2x12x12x20xf32> to vector<2x8x8x20xf32>
    %65 = vector.shape_cast %64 : vector<2x8x8x20xf32> to vector<128x20xf32>
    %c9 = arith.constant 9 : index
    %c0_35 = arith.constant 0 : index
    %c0_36 = arith.constant 0 : index
    %66 = vector.load %arg4[%c9, %c0_35, %c0_36] : memref<25x20x20xf32, #tpu.memory_space<vmem>>, vector<1x20x20xf32>
    %67 = vector.shape_cast %66 : vector<1x20x20xf32> to vector<20x20xf32>
    %cst_37 = arith.constant dense<0.000000e+00> : vector<128x20xf32>
    %68 = tpu.matmul %65, %67, %cst_37 {dimension_numbers = #tpu.dot_dimension_numbers<[1], [0], [0], [1], [0, 0, 1, 1], [], []>} : vector<128x20xf32>, vector<20x20xf32>, vector<128x20xf32> -> vector<128x20xf32>
    %69 = arith.addf %63, %68 : vector<128x20xf32>
    %70 = vector.extract_strided_slice %8 {offsets = [0, 2, 0, 0], sizes = [2, 8, 8, 20], strides = [1, 1, 1, 1]} : vector<2x12x12x20xf32> to vector<2x8x8x20xf32>
    %71 = vector.shape_cast %70 : vector<2x8x8x20xf32> to vector<128x20xf32>
    %c10 = arith.constant 10 : index
    %c0_38 = arith.constant 0 : index
    %c0_39 = arith.constant 0 : index
    %72 = vector.load %arg4[%c10, %c0_38, %c0_39] : memref<25x20x20xf32, #tpu.memory_space<vmem>>, vector<1x20x20xf32>
    %73 = vector.shape_cast %72 : vector<1x20x20xf32> to vector<20x20xf32>
    %cst_40 = arith.constant dense<0.000000e+00> : vector<128x20xf32>
    %74 = tpu.matmul %71, %73, %cst_40 {dimension_numbers = #tpu.dot_dimension_numbers<[1], [0], [0], [1], [0, 0, 1, 1], [], []>} : vector<128x20xf32>, vector<20x20xf32>, vector<128x20xf32> -> vector<128x20xf32>
    %75 = arith.addf %69, %74 : vector<128x20xf32>
    %76 = vector.extract_strided_slice %8 {offsets = [0, 2, 1, 0], sizes = [2, 8, 8, 20], strides = [1, 1, 1, 1]} : vector<2x12x12x20xf32> to vector<2x8x8x20xf32>
    %77 = vector.shape_cast %76 : vector<2x8x8x20xf32> to vector<128x20xf32>
    %c11 = arith.constant 11 : index
    %c0_41 = arith.constant 0 : index
    %c0_42 = arith.constant 0 : index
    %78 = vector.load %arg4[%c11, %c0_41, %c0_42] : memref<25x20x20xf32, #tpu.memory_space<vmem>>, vector<1x20x20xf32>
    %79 = vector.shape_cast %78 : vector<1x20x20xf32> to vector<20x20xf32>
    %cst_43 = arith.constant dense<0.000000e+00> : vector<128x20xf32>
    %80 = tpu.matmul %77, %79, %cst_43 {dimension_numbers = #tpu.dot_dimension_numbers<[1], [0], [0], [1], [0, 0, 1, 1], [], []>} : vector<128x20xf32>, vector<20x20xf32>, vector<128x20xf32> -> vector<128x20xf32>
    %81 = arith.addf %75, %80 : vector<128x20xf32>
    %82 = vector.extract_strided_slice %8 {offsets = [0, 2, 2, 0], sizes = [2, 8, 8, 20], strides = [1, 1, 1, 1]} : vector<2x12x12x20xf32> to vector<2x8x8x20xf32>
    %83 = vector.shape_cast %82 : vector<2x8x8x20xf32> to vector<128x20xf32>
    %c12 = arith.constant 12 : index
    %c0_44 = arith.constant 0 : index
    %c0_45 = arith.constant 0 : index
    %84 = vector.load %arg4[%c12, %c0_44, %c0_45] : memref<25x20x20xf32, #tpu.memory_space<vmem>>, vector<1x20x20xf32>
    %85 = vector.shape_cast %84 : vector<1x20x20xf32> to vector<20x20xf32>
    %cst_46 = arith.constant dense<0.000000e+00> : vector<128x20xf32>
    %86 = tpu.matmul %83, %85, %cst_46 {dimension_numbers = #tpu.dot_dimension_numbers<[1], [0], [0], [1], [0, 0, 1, 1], [], []>} : vector<128x20xf32>, vector<20x20xf32>, vector<128x20xf32> -> vector<128x20xf32>
    %87 = arith.addf %81, %86 : vector<128x20xf32>
    %88 = vector.extract_strided_slice %8 {offsets = [0, 2, 3, 0], sizes = [2, 8, 8, 20], strides = [1, 1, 1, 1]} : vector<2x12x12x20xf32> to vector<2x8x8x20xf32>
    %89 = vector.shape_cast %88 : vector<2x8x8x20xf32> to vector<128x20xf32>
    %c13 = arith.constant 13 : index
    %c0_47 = arith.constant 0 : index
    %c0_48 = arith.constant 0 : index
    %90 = vector.load %arg4[%c13, %c0_47, %c0_48] : memref<25x20x20xf32, #tpu.memory_space<vmem>>, vector<1x20x20xf32>
    %91 = vector.shape_cast %90 : vector<1x20x20xf32> to vector<20x20xf32>
    %cst_49 = arith.constant dense<0.000000e+00> : vector<128x20xf32>
    %92 = tpu.matmul %89, %91, %cst_49 {dimension_numbers = #tpu.dot_dimension_numbers<[1], [0], [0], [1], [0, 0, 1, 1], [], []>} : vector<128x20xf32>, vector<20x20xf32>, vector<128x20xf32> -> vector<128x20xf32>
    %93 = arith.addf %87, %92 : vector<128x20xf32>
    %94 = vector.extract_strided_slice %8 {offsets = [0, 2, 4, 0], sizes = [2, 8, 8, 20], strides = [1, 1, 1, 1]} : vector<2x12x12x20xf32> to vector<2x8x8x20xf32>
    %95 = vector.shape_cast %94 : vector<2x8x8x20xf32> to vector<128x20xf32>
    %c14 = arith.constant 14 : index
    %c0_50 = arith.constant 0 : index
    %c0_51 = arith.constant 0 : index
    %96 = vector.load %arg4[%c14, %c0_50, %c0_51] : memref<25x20x20xf32, #tpu.memory_space<vmem>>, vector<1x20x20xf32>
    %97 = vector.shape_cast %96 : vector<1x20x20xf32> to vector<20x20xf32>
    %cst_52 = arith.constant dense<0.000000e+00> : vector<128x20xf32>
    %98 = tpu.matmul %95, %97, %cst_52 {dimension_numbers = #tpu.dot_dimension_numbers<[1], [0], [0], [1], [0, 0, 1, 1], [], []>} : vector<128x20xf32>, vector<20x20xf32>, vector<128x20xf32> -> vector<128x20xf32>
    %99 = arith.addf %93, %98 : vector<128x20xf32>
    %100 = vector.extract_strided_slice %8 {offsets = [0, 3, 0, 0], sizes = [2, 8, 8, 20], strides = [1, 1, 1, 1]} : vector<2x12x12x20xf32> to vector<2x8x8x20xf32>
    %101 = vector.shape_cast %100 : vector<2x8x8x20xf32> to vector<128x20xf32>
    %c15 = arith.constant 15 : index
    %c0_53 = arith.constant 0 : index
    %c0_54 = arith.constant 0 : index
    %102 = vector.load %arg4[%c15, %c0_53, %c0_54] : memref<25x20x20xf32, #tpu.memory_space<vmem>>, vector<1x20x20xf32>
    %103 = vector.shape_cast %102 : vector<1x20x20xf32> to vector<20x20xf32>
    %cst_55 = arith.constant dense<0.000000e+00> : vector<128x20xf32>
    %104 = tpu.matmul %101, %103, %cst_55 {dimension_numbers = #tpu.dot_dimension_numbers<[1], [0], [0], [1], [0, 0, 1, 1], [], []>} : vector<128x20xf32>, vector<20x20xf32>, vector<128x20xf32> -> vector<128x20xf32>
    %105 = arith.addf %99, %104 : vector<128x20xf32>
    %106 = vector.extract_strided_slice %8 {offsets = [0, 3, 1, 0], sizes = [2, 8, 8, 20], strides = [1, 1, 1, 1]} : vector<2x12x12x20xf32> to vector<2x8x8x20xf32>
    %107 = vector.shape_cast %106 : vector<2x8x8x20xf32> to vector<128x20xf32>
    %c16 = arith.constant 16 : index
    %c0_56 = arith.constant 0 : index
    %c0_57 = arith.constant 0 : index
    %108 = vector.load %arg4[%c16, %c0_56, %c0_57] : memref<25x20x20xf32, #tpu.memory_space<vmem>>, vector<1x20x20xf32>
    %109 = vector.shape_cast %108 : vector<1x20x20xf32> to vector<20x20xf32>
    %cst_58 = arith.constant dense<0.000000e+00> : vector<128x20xf32>
    %110 = tpu.matmul %107, %109, %cst_58 {dimension_numbers = #tpu.dot_dimension_numbers<[1], [0], [0], [1], [0, 0, 1, 1], [], []>} : vector<128x20xf32>, vector<20x20xf32>, vector<128x20xf32> -> vector<128x20xf32>
    %111 = arith.addf %105, %110 : vector<128x20xf32>
    %112 = vector.extract_strided_slice %8 {offsets = [0, 3, 2, 0], sizes = [2, 8, 8, 20], strides = [1, 1, 1, 1]} : vector<2x12x12x20xf32> to vector<2x8x8x20xf32>
    %113 = vector.shape_cast %112 : vector<2x8x8x20xf32> to vector<128x20xf32>
    %c17 = arith.constant 17 : index
    %c0_59 = arith.constant 0 : index
    %c0_60 = arith.constant 0 : index
    %114 = vector.load %arg4[%c17, %c0_59, %c0_60] : memref<25x20x20xf32, #tpu.memory_space<vmem>>, vector<1x20x20xf32>
    %115 = vector.shape_cast %114 : vector<1x20x20xf32> to vector<20x20xf32>
    %cst_61 = arith.constant dense<0.000000e+00> : vector<128x20xf32>
    %116 = tpu.matmul %113, %115, %cst_61 {dimension_numbers = #tpu.dot_dimension_numbers<[1], [0], [0], [1], [0, 0, 1, 1], [], []>} : vector<128x20xf32>, vector<20x20xf32>, vector<128x20xf32> -> vector<128x20xf32>
    %117 = arith.addf %111, %116 : vector<128x20xf32>
    %118 = vector.extract_strided_slice %8 {offsets = [0, 3, 3, 0], sizes = [2, 8, 8, 20], strides = [1, 1, 1, 1]} : vector<2x12x12x20xf32> to vector<2x8x8x20xf32>
    %119 = vector.shape_cast %118 : vector<2x8x8x20xf32> to vector<128x20xf32>
    %c18 = arith.constant 18 : index
    %c0_62 = arith.constant 0 : index
    %c0_63 = arith.constant 0 : index
    %120 = vector.load %arg4[%c18, %c0_62, %c0_63] : memref<25x20x20xf32, #tpu.memory_space<vmem>>, vector<1x20x20xf32>
    %121 = vector.shape_cast %120 : vector<1x20x20xf32> to vector<20x20xf32>
    %cst_64 = arith.constant dense<0.000000e+00> : vector<128x20xf32>
    %122 = tpu.matmul %119, %121, %cst_64 {dimension_numbers = #tpu.dot_dimension_numbers<[1], [0], [0], [1], [0, 0, 1, 1], [], []>} : vector<128x20xf32>, vector<20x20xf32>, vector<128x20xf32> -> vector<128x20xf32>
    %123 = arith.addf %117, %122 : vector<128x20xf32>
    %124 = vector.extract_strided_slice %8 {offsets = [0, 3, 4, 0], sizes = [2, 8, 8, 20], strides = [1, 1, 1, 1]} : vector<2x12x12x20xf32> to vector<2x8x8x20xf32>
    %125 = vector.shape_cast %124 : vector<2x8x8x20xf32> to vector<128x20xf32>
    %c19 = arith.constant 19 : index
    %c0_65 = arith.constant 0 : index
    %c0_66 = arith.constant 0 : index
    %126 = vector.load %arg4[%c19, %c0_65, %c0_66] : memref<25x20x20xf32, #tpu.memory_space<vmem>>, vector<1x20x20xf32>
    %127 = vector.shape_cast %126 : vector<1x20x20xf32> to vector<20x20xf32>
    %cst_67 = arith.constant dense<0.000000e+00> : vector<128x20xf32>
    %128 = tpu.matmul %125, %127, %cst_67 {dimension_numbers = #tpu.dot_dimension_numbers<[1], [0], [0], [1], [0, 0, 1, 1], [], []>} : vector<128x20xf32>, vector<20x20xf32>, vector<128x20xf32> -> vector<128x20xf32>
    %129 = arith.addf %123, %128 : vector<128x20xf32>
    %130 = vector.extract_strided_slice %8 {offsets = [0, 4, 0, 0], sizes = [2, 8, 8, 20], strides = [1, 1, 1, 1]} : vector<2x12x12x20xf32> to vector<2x8x8x20xf32>
    %131 = vector.shape_cast %130 : vector<2x8x8x20xf32> to vector<128x20xf32>
    %c20 = arith.constant 20 : index
    %c0_68 = arith.constant 0 : index
    %c0_69 = arith.constant 0 : index
    %132 = vector.load %arg4[%c20, %c0_68, %c0_69] : memref<25x20x20xf32, #tpu.memory_space<vmem>>, vector<1x20x20xf32>
    %133 = vector.shape_cast %132 : vector<1x20x20xf32> to vector<20x20xf32>
    %cst_70 = arith.constant dense<0.000000e+00> : vector<128x20xf32>
    %134 = tpu.matmul %131, %133, %cst_70 {dimension_numbers = #tpu.dot_dimension_numbers<[1], [0], [0], [1], [0, 0, 1, 1], [], []>} : vector<128x20xf32>, vector<20x20xf32>, vector<128x20xf32> -> vector<128x20xf32>
    %135 = arith.addf %129, %134 : vector<128x20xf32>
    %136 = vector.extract_strided_slice %8 {offsets = [0, 4, 1, 0], sizes = [2, 8, 8, 20], strides = [1, 1, 1, 1]} : vector<2x12x12x20xf32> to vector<2x8x8x20xf32>
    %137 = vector.shape_cast %136 : vector<2x8x8x20xf32> to vector<128x20xf32>
    %c21 = arith.constant 21 : index
    %c0_71 = arith.constant 0 : index
    %c0_72 = arith.constant 0 : index
    %138 = vector.load %arg4[%c21, %c0_71, %c0_72] : memref<25x20x20xf32, #tpu.memory_space<vmem>>, vector<1x20x20xf32>
    %139 = vector.shape_cast %138 : vector<1x20x20xf32> to vector<20x20xf32>
    %cst_73 = arith.constant dense<0.000000e+00> : vector<128x20xf32>
    %140 = tpu.matmul %137, %139, %cst_73 {dimension_numbers = #tpu.dot_dimension_numbers<[1], [0], [0], [1], [0, 0, 1, 1], [], []>} : vector<128x20xf32>, vector<20x20xf32>, vector<128x20xf32> -> vector<128x20xf32>
    %141 = arith.addf %135, %140 : vector<128x20xf32>
    %142 = vector.extract_strided_slice %8 {offsets = [0, 4, 2, 0], sizes = [2, 8, 8, 20], strides = [1, 1, 1, 1]} : vector<2x12x12x20xf32> to vector<2x8x8x20xf32>
    %143 = vector.shape_cast %142 : vector<2x8x8x20xf32> to vector<128x20xf32>
    %c22 = arith.constant 22 : index
    %c0_74 = arith.constant 0 : index
    %c0_75 = arith.constant 0 : index
    %144 = vector.load %arg4[%c22, %c0_74, %c0_75] : memref<25x20x20xf32, #tpu.memory_space<vmem>>, vector<1x20x20xf32>
    %145 = vector.shape_cast %144 : vector<1x20x20xf32> to vector<20x20xf32>
    %cst_76 = arith.constant dense<0.000000e+00> : vector<128x20xf32>
    %146 = tpu.matmul %143, %145, %cst_76 {dimension_numbers = #tpu.dot_dimension_numbers<[1], [0], [0], [1], [0, 0, 1, 1], [], []>} : vector<128x20xf32>, vector<20x20xf32>, vector<128x20xf32> -> vector<128x20xf32>
    %147 = arith.addf %141, %146 : vector<128x20xf32>
    %148 = vector.extract_strided_slice %8 {offsets = [0, 4, 3, 0], sizes = [2, 8, 8, 20], strides = [1, 1, 1, 1]} : vector<2x12x12x20xf32> to vector<2x8x8x20xf32>
    %149 = vector.shape_cast %148 : vector<2x8x8x20xf32> to vector<128x20xf32>
    %c23 = arith.constant 23 : index
    %c0_77 = arith.constant 0 : index
    %c0_78 = arith.constant 0 : index
    %150 = vector.load %arg4[%c23, %c0_77, %c0_78] : memref<25x20x20xf32, #tpu.memory_space<vmem>>, vector<1x20x20xf32>
    %151 = vector.shape_cast %150 : vector<1x20x20xf32> to vector<20x20xf32>
    %cst_79 = arith.constant dense<0.000000e+00> : vector<128x20xf32>
    %152 = tpu.matmul %149, %151, %cst_79 {dimension_numbers = #tpu.dot_dimension_numbers<[1], [0], [0], [1], [0, 0, 1, 1], [], []>} : vector<128x20xf32>, vector<20x20xf32>, vector<128x20xf32> -> vector<128x20xf32>
    %153 = arith.addf %147, %152 : vector<128x20xf32>
    %154 = vector.extract_strided_slice %8 {offsets = [0, 4, 4, 0], sizes = [2, 8, 8, 20], strides = [1, 1, 1, 1]} : vector<2x12x12x20xf32> to vector<2x8x8x20xf32>
    %155 = vector.shape_cast %154 : vector<2x8x8x20xf32> to vector<128x20xf32>
    %c24 = arith.constant 24 : index
    %c0_80 = arith.constant 0 : index
    %c0_81 = arith.constant 0 : index
    %156 = vector.load %arg4[%c24, %c0_80, %c0_81] : memref<25x20x20xf32, #tpu.memory_space<vmem>>, vector<1x20x20xf32>
    %157 = vector.shape_cast %156 : vector<1x20x20xf32> to vector<20x20xf32>
    %cst_82 = arith.constant dense<0.000000e+00> : vector<128x20xf32>
    %158 = tpu.matmul %155, %157, %cst_82 {dimension_numbers = #tpu.dot_dimension_numbers<[1], [0], [0], [1], [0, 0, 1, 1], [], []>} : vector<128x20xf32>, vector<20x20xf32>, vector<128x20xf32> -> vector<128x20xf32>
    %159 = arith.addf %153, %158 : vector<128x20xf32>
    %c0_83 = arith.constant 0 : index
    %c0_84 = arith.constant 0 : index
    %160 = vector.load %arg5[%c0_83, %c0_84] : memref<1x20xf32, #tpu.memory_space<vmem>>, vector<1x20xf32>
    %161 = vector.broadcast %160 : vector<1x20xf32> to vector<128x20xf32>
    %162 = arith.addf %159, %161 : vector<128x20xf32>
    %cst_85 = arith.constant 0.000000e+00 : f32
    %163 = vector.broadcast %cst_85 : f32 to vector<128x20xf32>
    %164 = arith.maximumf %162, %163 : vector<128x20xf32>
    %c0_86 = arith.constant 0 : index
    %c0_87 = arith.constant 0 : index
    %165 = vector.load %arg6[%c0_86, %c0_87] : memref<128x20xf32, #tpu.memory_space<vmem>>, vector<128x20xf32>
    tpu.vector_store %arg6[%c0_86, %c0_87], %164 {strides = array<i32>} : memref<128x20xf32, #tpu.memory_space<vmem>>, vector<128x20xf32>,
    return
  }
  func.func @transform_0(%arg0: i32) -> (i32, i32) {
    %c0_i32 = arith.constant 0 : i32
    %c0_i32_0 = arith.constant 0 : i32
    %c0_i32_1 = arith.constant 0 : i32
    return %c0_i32, %c0_i32_0 : i32, i32
  }
  func.func @transform_1(%arg0: i32) -> (i32, i32) {
    %c0_i32 = arith.constant 0 : i32
    %c0_i32_0 = arith.constant 0 : i32
    %c0_i32_1 = arith.constant 0 : i32
    return %c0_i32, %c0_i32_0 : i32, i32
  }
  func.func @transform_2(%arg0: i32) -> (i32, i32) {
    %c0_i32 = arith.constant 0 : i32
    %c0_i32_0 = arith.constant 0 : i32
    %c0_i32_1 = arith.constant 0 : i32
    return %c0_i32, %c0_i32_0 : i32, i32
  }
  func.func @transform_3(%arg0: i32) -> (i32, i32, i32) {
    %c0_i32 = arith.constant 0 : i32
    %c0_i32_0 = arith.constant 0 : i32
    %c0_i32_1 = arith.constant 0 : i32
    %c0_i32_2 = arith.constant 0 : i32
    return %c0_i32, %c0_i32_0, %c0_i32_1 : i32, i32, i32
  }
  func.func @transform_4(%arg0: i32) -> (i32, i32) {
    %c0_i32 = arith.constant 0 : i32
    %c0_i32_0 = arith.constant 0 : i32
    %c0_i32_1 = arith.constant 0 : i32
    return %c0_i32, %c0_i32_0 : i32, i32
  }
  func.func @transform_5(%arg0: i32) -> (i32, i32) {
    %c0_i32 = arith.constant 0 : i32
    %c0_i32_0 = arith.constant 0 : i32
    %c0_i32_1 = arith.constant 0 : i32
    return %c0_i32, %c0_i32_0 : i32, i32
  }
}

</mosaic_0001>

<bundles_post_ra>
// kernel: fcn_forward.1
= control target key start
LH: loop header
LB: loop body
LE: loop exit
PB: predicated region body
PF: predicated region fallthrough
CT: control target
= control target key end

     0   :  { %vm177_vm0 = vcmask 1040384   ;;  %vm68_vm1 = vcmask 203776   ;;  %vm8109_vm2 = vmmov 1   ;;  %s10639_s0 = inlined_call_operand.vmem [shape: f32[288,25], index: 0, kind: input, shape index: {}]   ;;  %s10640_s1 = inlined_call_operand.vmem [shape: f32[25,20], index: 1, kind: input, shape index: {}]   ;;  %s10641_s2 = inlined_call_operand.vmem [shape: f32[1,20], index: 2, kind: input, shape index: {}]   ;;  %s10642_s3 = inlined_call_operand.vmem [shape: f32[25,20,20], index: 3, kind: input, shape index: {}]   ;;  %s10643_s4 = inlined_call_operand.vmem [shape: f32[1,20], index: 4, kind: input, shape index: {}]   ;;  %s10644_s5 = inlined_call_operand.hbm [shape: f32[128,20], index: 5, kind: output, shape index: {}]  }
   0x1   :  { %v57_v0 = vld [vmem:[%s10640_s1] sm:$0xff]  ;;  %v58_v1 = vld [vmem:[%s10640_s1 + $0x8] sm:$0xff]  ;;  %v59_v2 = vld [vmem:[%s10640_s1 + $0x10] sm:$0xff] }
   0x2   :  { %v7581_v3 = vpack.c.bf16 %v58_v1, %v57_v0  ;;  %v60_v4 = vld [vmem:[%s10640_s1 + $0x18] sm:$0x1]  ;;  %v21_v5 = vld [vmem:[%s10639_s0] sm:$0xff]  ;;  %vm7586_vm3 = vmpackc.low %vm177_vm0, %vm8109_vm2 }
   0x3   :  { %v7585_v6 = vpack.c.bf16 %v60_v4, %v59_v2  ;;  %6777 = vmatprep.mubr.msk.f32.mxu0 %vm68_vm1, %v21_v5  ;;  %v22_v7 = vld [vmem:[%s10639_s0 + $0x8] sm:$0xff]  ;;  %v23_v8 = vld [vmem:[%s10639_s0 + $0x10] sm:$0xff]  ;;  %v24_v9 = vld [vmem:[%s10639_s0 + $0x18] sm:$0xff] }
   0x4   :  { %7582 = vmatprep.subr.bf16.mxu0 %v7581_v3  ;;  %v25_v10 = vld [vmem:[%s10639_s0 + $0x20] sm:$0xff] }
   0x5   :  { %7584 = vmatpush3.bf16.msra.mxu0 %v7581_v3 }
   0x6   :  { %7587 = vmatprep.subr.msk.bf16.mxu0 %vm7586_vm3, %v7585_v6 }
   0x9   :  { %7590 = vmatpush3.bf16.msk.msra.mxu0 %vm7586_vm3, %v7585_v6 }
   0xc   :  { %6778 = vmatmul.mubr.msk.f32.vlgmr.msra.gmra.mrb[0].mxu0 %vm68_vm1, %v22_v7 }
   0xd   :  { %6780 = vmatprep.mubr.msk.f32.mxu0 %vm68_vm1, %v23_v8 }
   0xe   :  { %10 = vsyncpa [#allocation3], 0  ;;  %v26_v11 = vld [vmem:[%s10639_s0 + $0x28] sm:$0xff]  ;;  %v27_v12 = vld [vmem:[%s10639_s0 + $0x30] sm:$0xff]  ;;  %vm705_vm4 = vcmask 1043456   ;;  %vm537_vm5 = vcmask 1042432  }
   0xf   :  { %v28_v13 = vld [vmem:[%s10639_s0 + $0x38] sm:$0xff]  ;;  %v29_v14 = vld [vmem:[%s10639_s0 + $0x40] sm:$0xff]  ;;  %v30_v15 = vld [vmem:[%s10639_s0 + $0x48] sm:$0xff]  ;;  %vm538_vm6 = vcmask 1046532   ;;  %vm672_vm8 = vcmask 162816   ;;  %vm1050_vm9 = vcmask 1041408  }
  0x10   :  { %6781 = vmatmul.mubr.msk.f32.gmra.mrb[2].mxu0 %vm68_vm1, %v24_v9  ;;  %v31_v16 = vld [vmem:[%s10639_s0 + $0x50] sm:$0xff]  ;;  %v32_v17 = vld [vmem:[%s10639_s0 + $0x58] sm:$0xff]  ;;  %v33_v18 = vld [vmem:[%s10639_s0 + $0x60] sm:$0xff]  ;;  %vm1051_vm10 = vcmask 1045508   ;;  %vm1381_vm12 = vcmask 1044484  }
  0x11   :  { %6783 = vmatprep.mubr.msk.f32.mxu0 %vm68_vm1, %v25_v10  ;;  %v34_v19 = vld [vmem:[%s10639_s0 + $0x68] sm:$0xff]  ;;  %v35_v20 = vld [vmem:[%s10639_s0 + $0x70] sm:$0xff]  ;;  %v36_v21 = vld [vmem:[%s10639_s0 + $0x78] sm:$0xff] }
  0x12   :  { %v37_v22 = vld [vmem:[%s10639_s0 + $0x80] sm:$0xff]  ;;  %v38_v23 = vld [vmem:[%s10639_s0 + $0x88] sm:$0xff]  ;;  %v39_v24 = vld [vmem:[%s10639_s0 + $0x90] sm:$0xff] }
  0x13   :  { %v40_v25 = vld [vmem:[%s10639_s0 + $0x98] sm:$0xff]  ;;  %v41_v26 = vld [vmem:[%s10639_s0 + $0xa0] sm:$0xff]  ;;  %v42_v27 = vld [vmem:[%s10639_s0 + $0xa8] sm:$0xff] }
  0x14   :  { %6784 = vmatmul.mubr.msk.f32.gmra.mrb[4].mxu0 %vm68_vm1, %v26_v11  ;;  %v43_v28 = vld [vmem:[%s10639_s0 + $0xb0] sm:$0xff]  ;;  %v44_v29 = vld [vmem:[%s10639_s0 + $0xb8] sm:$0xff]  ;;  %v45_v30 = vld [vmem:[%s10639_s0 + $0xc0] sm:$0xff] }
  0x15   :  { %6786 = vmatprep.mubr.msk.f32.mxu0 %vm68_vm1, %v27_v12  ;;  %v46_v31 = vld [vmem:[%s10639_s0 + $0xc8] sm:$0xff]  ;;  %v47_v32 = vld [vmem:[%s10639_s0 + $0xd0] sm:$0xff]  ;;  %v48_v33 = vld [vmem:[%s10639_s0 + $0xd8] sm:$0xff] }
  0x16   :  { %v49_v34 = vld [vmem:[%s10639_s0 + $0xe0] sm:$0xff]  ;;  %v50_v35 = vld [vmem:[%s10639_s0 + $0xe8] sm:$0xff]  ;;  %v51_v36 = vld [vmem:[%s10639_s0 + $0xf0] sm:$0xff] }
  0x17   :  { %v52_v37 = vld [vmem:[%s10639_s0 + $0xf8] sm:$0xff]  ;;  %v53_v38 = vld [vmem:[%s10639_s0 + $0x100] sm:$0xff]  ;;  %v54_v39 = vld [vmem:[%s10639_s0 + $0x108] sm:$0xff] }
  0x18   :  { %6787 = vmatmul.mubr.msk.f32.gmra.mrb[6].mxu0 %vm68_vm1, %v28_v13  ;;  %v55_v40 = vld [vmem:[%s10639_s0 + $0x110] sm:$0xff]  ;;  %v56_v41 = vld [vmem:[%s10639_s0 + $0x118] sm:$0xff]  ;;  %v5701_v43 = vld [vmem:[%s10642_s3 + $0x20] sm:$0xff]  ;;  %v10888_v13 = vmov 0 }
  0x19   :  { %6789 = vmatprep.mubr.msk.f32.mxu0 %vm68_vm1, %v29_v14  ;;  %v5700_v42 = vld [vmem:[%s10642_s3 + $0x18] sm:$0xff]  ;;  %v5702_v45 = vld [vmem:[%s10642_s3 + $0x28] sm:$0xf]  ;;  %v5958_v47 = vld [vmem:[%s10642_s3 + $0x110] sm:$0xff] }
  0x1a   :  { %v7591_v44 = vpack.c.bf16 %v5701_v43, %v5700_v42  ;;  %v5957_v46 = vld [vmem:[%s10642_s3 + $0x108] sm:$0xff]  ;;  %v5959_v49 = vld [vmem:[%s10642_s3 + $0x118] sm:$0xf]  ;;  %v5979_v50 = vld [vmem:[%s10642_s3 + $0x120] sm:$0xff] }
  0x1b   :  { %v8317_v48 = vpack.c.bf16 %v5958_v47, %v5957_v46  ;;  %v5980_v51 = vld [vmem:[%s10642_s3 + $0x128] sm:$0xff]  ;;  %v534_v53 = vld [vmem:[%s10642_s3] sm:$0xff]  ;;  %vm8376_vm7 = vmor %vm537_vm5, %vm538_vm6 }
  0x1c   :  { %6790 = vmatmul.mubr.msk.f32.gmra.mrb[8].mxu0 %vm68_vm1, %v30_v15  ;;  %7592 = vmatprep.subr.bf16.mxu0 %v7591_v44  ;;  %v8332_v52 = vpack.c.bf16 %v5980_v51, %v5979_v50  ;;  %v535_v54 = vld [vmem:[%s10642_s3 + $0x8] sm:$0xff]  ;;  %v8347_v56 = vld [vmem:[%s10641_s2] ss:$0 sm:$0xff]  ;;  %v10889_v13 = vsel %vm8376_vm7, 4294967295, %v10888_v13  ;;  %v536_v46 = vld [vmem:[%s10642_s3 + $0x10] sm:$0xf] }
  0x1d   :  { %6792 = vmatprep.mubr.msk.f32.mxu0 %vm68_vm1, %v31_v16  ;;  %7594 = vmatpush3.bf16.msra.mxu0 %v7591_v44  ;;  %10881 = vst [vmem:[#allocation5_spill] sm:$0xff] %v8317_v48  ;;  %v8341_v55 = vpack.c.bf16 %v535_v54, %v534_v53  ;;  %10890 = vst [vmem:[#allocation12_spill] sm:$0xff] %v10889_v13 }
  0x1e   :  { %6835 = vmatprep.subr.msk.mxu0 %vm705_vm4, %v5702_v45  ;;  %7691 = vmatprep.subr.bf16.mxu1 %v8317_v48  ;;  %vm8900_vm11 = vmor %vm1050_vm9, %vm1051_vm10 }
  0x1f   :  { %7693 = vmatpush3.bf16.msra.mxu1 %v8317_v48  ;;  %vm9189_vm13 = vmor %vm177_vm0, %vm1381_vm12 }
  0x20   :  { %6793 = vmatmul.mubr.msk.f32.gmra.mrb[10].mxu0 %vm68_vm1, %v32_v17  ;;  %7692 = vmatprep.subr.msk.mxu1 %vm705_vm4, %v5959_v49 }
  0x21   :  { %6795 = vmatprep.mubr.msk.f32.mxu0 %vm68_vm1, %v33_v18  ;;  %6836 = vmatpush3.msk.msra.mxu0 %vm705_vm4, %v5702_v45 }
  0x22   :  { %7596 = vmatprep.subr.bf16.mxu0 %v8341_v55 }
  0x23   :  { %7694 = vmatpush3.msk.msra.mxu1 %vm705_vm4, %v5959_v49 }
  0x24   :  { %6796 = vmatmul.mubr.msk.f32.gmra.mrb[12].mxu0 %vm68_vm1, %v34_v19  ;;  %7640 = vmatprep.subr.bf16.mxu1 %v8332_v52 }
  0x25   :  { %6798 = vmatprep.mubr.msk.f32.mxu0 %vm68_vm1, %v35_v20 }
  0x28   :  { %6799 = vmatmul.mubr.msk.f32.gmra.mrb[14].mxu0 %vm68_vm1, %v36_v21 }
  0x29   :  { %6801 = vmatprep.mubr.msk.f32.mxu0 %vm68_vm1, %v37_v22 }
  0x2c   :  { %6802 = vmatmul.mubr.msk.f32.gmra.mrb[16].mxu0 %vm68_vm1, %v38_v23 }
  0x2d   :  { %6804 = vmatprep.mubr.msk.f32.mxu0 %vm68_vm1, %v39_v24 }
  0x30   :  { %6805 = vmatmul.mubr.msk.f32.gmra.mrb[18].mxu0 %vm68_vm1, %v40_v25 }
  0x31   :  { %6807 = vmatprep.mubr.msk.f32.mxu0 %vm68_vm1, %v41_v26 }
  0x34   :  { %6808 = vmatmul.mubr.msk.f32.gmra.mrb[20].mxu0 %vm68_vm1, %v42_v27 }
  0x35   :  { %6810 = vmatprep.mubr.msk.f32.mxu0 %vm68_vm1, %v43_v28 }
  0x38   :  { %6811 = vmatmul.mubr.msk.f32.gmra.mrb[22].mxu0 %vm68_vm1, %v44_v29  ;;  %v6001_v29 = vld [vmem:[%s10642_s3 + $0x138] sm:$0xff] }
  0x39   :  { %6813 = vmatprep.mubr.msk.f32.mxu0 %vm68_vm1, %v45_v30  ;;  %v6002_v30 = vld [vmem:[%s10642_s3 + $0x140] sm:$0xff] }
  0x3a   :  { %v8435_v47 = vpack.c.bf16 %v6002_v30, %v6001_v29 }
  0x3c   :  { %6814 = vmatmul.mubr.msk.f32.gmra.mrb[24].mxu0 %vm68_vm1, %v46_v31  ;;  %v5753_v31 = vld [vmem:[%s10642_s3 + $0x30] sm:$0xff] }
  0x3d   :  { %6816 = vmatprep.mubr.msk.f32.mxu0 %vm68_vm1, %v47_v32 }
  0x40   :  { %6817 = vmatmul.mubr.msk.f32.gmra.mrb[26].mxu0 %vm68_vm1, %v48_v33 }
  0x41   :  { %6819 = vmatprep.mubr.msk.f32.mxu0 %vm68_vm1, %v49_v34 }
  0x44   :  { %6820 = vmatmul.mubr.msk.f32.gmra.mrb[28].mxu0 %vm68_vm1, %v50_v35 }
  0x45   :  { %6822 = vmatprep.mubr.msk.f32.mxu0 %vm68_vm1, %v51_v36 }
  0x48   :  { %6823 = vmatmul.mubr.msk.f32.gmra.mrb[30].mxu0 %vm68_vm1, %v52_v37  ;;  %v5754_v37 = vld [vmem:[%s10642_s3 + $0x38] sm:$0xff] }
  0x49   :  { %6825 = vmatprep.mubr.msk.f32.mxu0 %vm68_vm1, %v53_v38  ;;  %v6021_v38 = vld [vmem:[%s10642_s3 + $0x150] sm:$0xff]  ;;  %v8439_v49 = vpack.c.bf16 %v5754_v37, %v5753_v31 }
  0x4c   :  { %6826 = vmatmul.mubr.msk.f32.gmra.mrb[32].mxu0 %vm68_vm1, %v54_v39  ;;  %v6022_v39 = vld [vmem:[%s10642_s3 + $0x158] sm:$0xff] }
  0x4d   :  { %6828 = vmatprep.mubr.msk.f32.mxu0 %vm68_vm1, %v55_v40  ;;  %v8443_v53 = vpack.c.bf16 %v6022_v39, %v6021_v38 }
  0x4f   :  { %10892 = vst [vmem:[#allocation14_spill] sm:$0xff] %v8443_v53 }
  0x50   :  { %6829 = vmatmul.mubr.msk.f32.gmra.mrb[34].mxu0 %vm68_vm1, %v56_v41 }
  0xdf   :  { %v6779_v57 = vpop.f32.mrb[0].mxu0 }
  0xe0   :  { %v253_v58 = vadd.f32 %v6779_v57, %v8347_v56  ;;  %v247_v59 = vpop.f32.mrb[1].mxu0 }
  0xe1   :  { %v248_v60 = vadd.f32 %v8347_v56, %v247_v59 }
  0xe2   :  { %v8353_v63 = vmax.f32 %v253_v58, 0.0 }
  0xe3   :  { %v8351_v61 = vmax.f32 %v248_v60, 0.0  ;;  %v6782_v62 = vpop.f32.mrb[2].mxu0 }
  0xe4   :  { %10883 = vst [vmem:[#allocation7_spill] sm:$0xff] %v8353_v63  ;;  %v263_v0 = vadd.f32 %v6782_v62, %v8347_v56  ;;  %v257_v1 = vpop.f32.mrb[3].mxu0  ;;  %v8368_v8 = vcombine.high %v8353_v63, %v8353_v63  ;;  %v545_v15 = vrot.slane %v8353_v63, 5 }
  0xe5   :  { %10882 = vst [vmem:[#allocation6_spill] sm:$0xff] %v8351_v61  ;;  %v8358_v2 = vcombine.high %v8351_v61, %v8351_v61  ;;  %v258_v3 = vadd.f32 %v8347_v56, %v257_v1  ;;  %v5684_v20 = vrot.slane %v8351_v61, 9 }
  0xe6   :  { %v8361_v4 = vmax.f32 %v263_v0, 0.0  ;;  %10886 = vst [vmem:[#allocation10_spill] sm:$0xff] %v8368_v8  ;;  %v5685_v21 = vrot.slane %v8368_v8, 9 }
  0xe7   :  { %10884 = vst [vmem:[#allocation8_spill] sm:$0xff] %v8358_v2  ;;  %v8363_v5 = vmax.f32 %v258_v3, 0.0  ;;  %v6785_v6 = vpop.f32.mrb[4].mxu0  ;;  %v542_v7 = vrot.slane %v8358_v2, 5 }
  0xe8   :  { %v267_v9 = vpop.f32.mrb[5].mxu0  ;;  %v8383_v16 = vcombine.high %v8361_v4, %v8361_v4  ;;  %v273_v18 = vadd.f32 %v6785_v6, %v8347_v56  ;;  %v5686_v58 = vrot.slane %v8361_v4, 9 }
  0xe9   :  { %10885 = vst [vmem:[#allocation9_spill] sm:$0xff] %v8363_v5  ;;  %v8372_v10 = vcombine.high %v8363_v5, %v8363_v5  ;;  %v549_v11 = vrot.slane %v8363_v5, 5  ;;  %v268_v12 = vadd.f32 %v8347_v56, %v267_v9  ;;  %v544_v14 = vrot.slane %v542_v7, 4 }
  0xea   :  { %v543_v25 = vsel %vm8376_vm7, %v5684_v20, %v542_v7  ;;  %v8405_v32 = vmax.f32 %v273_v18, 0.0  ;;  %v556_v36 = vrot.slane %v8383_v16, 5  ;;  %v10912_v37 = vrot.slane %v8363_v5, 6 }
  0xeb   :  { %10887 = vst [vmem:[#allocation11_spill] sm:$0xff] %v8372_v10  ;;  %v551_v17 = vrot.slane %v549_v11, 4  ;;  %v6788_v19 = vpop.f32.mrb[6].mxu0  ;;  %v8388_v22 = vmax.f32 %v268_v12, 0.0  ;;  %v546_v26 = vsel %vm8376_vm7, %v544_v14, %v545_v15  ;;  %v552_v27 = vrot.slane %v8372_v10, 5 }
  0xec   :  { %v277_v23 = vpop.f32.mrb[7].mxu0  ;;  %v656_v28 = vcombine.low %v543_v25, %v546_v26  ;;  %v550_v34 = vsel %vm8376_vm7, %v5685_v21, %v549_v11  ;;  %v283_v43 = vadd.f32 %v6788_v19, %v8347_v56  ;;  %v8447_v54 = vcombine.high %v8405_v32, %v8405_v32 }
  0xed   :  { %v278_v24 = vadd.f32 %v8347_v56, %v277_v23  ;;  %v553_v35 = vsel %vm8376_vm7, %v551_v17, %v552_v27  ;;  %v8423_v40 = vcombine.high %v8388_v22, %v8388_v22  ;;  %v558_v59 = vrot.slane %v556_v36, 4 }
  0xee   :  { %6837 = vmatprep.mubr.msk.f32.mxu0 %vm672_vm8, %v656_v28  ;;  %v8426_v42 = vcombine.low %v550_v34, %v553_v35  ;;  %v559_v62 = vrot.slane %v8388_v22, 5  ;;  %v563_v6 = vrot.slane %v8405_v32, 5  ;;  %v8458_v9 = vmax.f32 %v283_v43, 0.0 }
  0xef   :  { %v6791_v33 = vpop.f32.mrb[8].mxu0  ;;  %v8429_v44 = vmax.f32 %v278_v24, 0.0  ;;  %v5687_v3 = vrot.slane %v8423_v40, 9  ;;  %v557_v14 = vsel %vm8376_vm7, %v5686_v58, %v556_v36  ;;  %v566_v21 = vrot.slane %v8447_v54, 5 }
  0xf0   :  { %v287_v41 = vpop.f32.mrb[9].mxu0  ;;  %10891 = vst [vmem:[#allocation13_spill] sm:$0xff] %v8426_v42  ;;  %v293_v45 = vadd.f32 %v6791_v33, %v8347_v56  ;;  %6838 = vmatmul.mubr.msk.f32.vlgmr.msra.gmra.mrb[36].mxu0 %vm672_vm8, %v8426_v42  ;;  %v560_v15 = vsel %vm8376_vm7, %v558_v59, %v559_v62  ;;  %v565_v20 = vrot.slane %v563_v6, 4  ;;  %v8502_v34 = vcombine.high %v8458_v9, %v8458_v9 }
  0xf1   :  { %v288_v57 = vadd.f32 %v8347_v56, %v287_v41  ;;  %7598 = vmatpush3.bf16.msra.mxu0 %v8341_v55  ;;  %v8462_v11 = vcombine.high %v8429_v44, %v8429_v44  ;;  %v8473_v18 = vcombine.low %v557_v14, %v560_v15  ;;  %v564_v26 = vsel %vm8376_vm7, %v5687_v3, %v563_v6 }
  0xf2   :  { %6865 = vmatprep.subr.msk.mxu0 %vm705_vm4, %v536_v46  ;;  %v8464_v55 = vmax.f32 %v293_v45, 0.0  ;;  %v567_v30 = vsel %vm8376_vm7, %v565_v20, %v566_v21  ;;  %v573_v35 = vrot.slane %v8458_v9, 5  ;;  %v5688_v36 = vrot.slane %v8429_v44, 9 }
  0xf3   :  { %v6794_v60 = vpop.f32.mrb[10].mxu0  ;;  %v8466_v12 = vmax.f32 %v288_v57, 0.0  ;;  %10893 = vst [vmem:[#allocation15_spill] sm:$0xff] %v8473_v18  ;;  %6840 = vmatprep.mubr.msk.f32.mxu0 %vm672_vm8, %v8473_v18  ;;  %v570_v33 = vrot.slane %v8462_v11, 5  ;;  %v8512_v41 = vcombine.low %v564_v26, %v567_v30  ;;  %v5689_v15 = vrot.slane %v8502_v34, 9 }
  0xf4   :  { %v303_v0 = vadd.f32 %v6794_v60, %v8347_v56  ;;  %v297_v1 = vpop.f32.mrb[11].mxu0  ;;  %v8492_v29 = vcombine.high %v8464_v55, %v8464_v55  ;;  %v5690_v38 = vrot.slane %v8464_v55, 9  ;;  %v8606_v48 = vrot.slane %v10912_v37, 4 }
  0xf5   :  { %v298_v17 = vadd.f32 %v8347_v56, %v297_v1  ;;  %6866 = vmatpush3.msk.msra.mxu0 %vm705_vm4, %v536_v46  ;;  %v8481_v24 = vcombine.high %v8466_v12, %v8466_v12  ;;  %10897 = vst [vmem:[#allocation19_spill] sm:$0xff] %v8512_v41  ;;  %v572_v57 = vrot.slane %v570_v33, 4  ;;  %v577_v59 = vrot.slane %v8466_v12, 5 }
  0xf6   :  { %v8475_v19 = vmax.f32 %v303_v0, 0.0  ;;  %7600 = vmatprep.subr.bf16.mxu0 %v8439_v49  ;;  %6841 = vmatmul.mubr.msk.f32.gmra.mrb[38].mxu0 %vm672_vm8, %v8512_v41  ;;  %v584_v3 = vrot.slane %v8492_v29, 5  ;;  %v571_v6 = vsel %vm8376_vm7, %v5688_v36, %v570_v33  ;;  %10913 = vst [vmem:[#allocation34_spill] sm:$0xff] %v8606_v48 }
  0xf7   :  { %v6797_v23 = vpop.f32.mrb[12].mxu0  ;;  %v8483_v25 = vmax.f32 %v298_v17, 0.0  ;;  %v580_v60 = vrot.slane %v8481_v24, 5  ;;  %v574_v14 = vsel %vm8376_vm7, %v572_v57, %v573_v35  ;;  %v579_v17 = vrot.slane %v577_v59, 4 }
  0xf8   :  { %10894 = vst [vmem:[#allocation16_spill] sm:$0xff] %v8475_v19  ;;  %v307_v27 = vpop.f32.mrb[13].mxu0  ;;  %v8510_v39 = vcombine.high %v8475_v19, %v8475_v19  ;;  %v313_v0 = vadd.f32 %v6797_v23, %v8347_v56  ;;  %v8539_v21 = vcombine.low %v571_v6, %v574_v14  ;;  %v586_v26 = vrot.slane %v584_v3, 4 }
  0xf9   :  { %10895 = vst [vmem:[#allocation17_spill] sm:$0xff] %v8483_v25  ;;  %v308_v31 = vadd.f32 %v8347_v56, %v307_v27  ;;  %v8520_v46 = vcombine.high %v8483_v25, %v8483_v25  ;;  %v587_v62 = vrot.slane %v8483_v25, 5  ;;  %v578_v30 = vsel %vm8376_vm7, %v5689_v15, %v577_v59 }
  0xfa   :  { %10896 = vst [vmem:[#allocation18_spill] sm:$0xff] %v8510_v39  ;;  %10901 = vst [vmem:[#allocation23_spill] sm:$0xff] %v8539_v21  ;;  %v8553_v57 = vmax.f32 %v313_v0, 0.0  ;;  %6843 = vmatprep.mubr.msk.f32.mxu0 %vm672_vm8, %v8539_v21  ;;  %v591_v14 = vrot.slane %v8475_v19, 5  ;;  %v594_v0 = vrot.slane %v8510_v39, 5 }
  0xfb   :  { %v8514_v43 = vmax.f32 %v308_v31, 0.0  ;;  %v8516_v45 = vpop.f32.mrb[14].mxu0  ;;  %v581_v31 = vsel %vm8376_vm7, %v579_v17, %v580_v60  ;;  %v5691_v35 = vrot.slane %v8520_v46, 9  ;;  %v588_v59 = vsel %vm8376_vm7, %v586_v26, %v587_v62 }
  0xfc   :  { %10899 = vst [vmem:[#allocation21_spill] sm:$0xff] %v8516_v45  ;;  %v317_v58 = vpop.f32.mrb[15].mxu0  ;;  %10905 = vst [vmem:[#allocation27_spill] sm:$0xff] %v8553_v57  ;;  %v593_v26 = vrot.slane %v591_v14, 4  ;;  %v8587_v15 = vcombine.high %v8553_v57, %v8553_v57  ;;  %v2106_v50 = vrot.slane %v8553_v57, 5 }
  0xfd   :  { %10898 = vst [vmem:[#allocation20_spill] sm:$0xff] %v8514_v43  ;;  %v318_v1 = vadd.f32 %v8347_v56, %v317_v58  ;;  %v8537_v20 = vcombine.high %v8514_v43, %v8514_v43  ;;  %v8557_v58 = vcombine.low %v578_v30, %v581_v31 }
  0xfe   :  { %10909 = vst [vmem:[#allocation31_spill] sm:$0xff] %v8587_v15  ;;  %v5955_v37 = vrot.slane %v8587_v15, 9 }
  0xff   :  { %10900 = vst [vmem:[#allocation22_spill] sm:$0xff] %v8537_v20  ;;  %v8541_v23 = vmax.f32 %v318_v1, 0.0  ;;  %v8543_v27 = vpop.f32.mrb[16].mxu0  ;;  %10906 = vst [vmem:[#allocation28_spill] sm:$0xff] %v8557_v58  ;;  %v585_v1 = vsel %vm8376_vm7, %v5690_v38, %v584_v3  ;;  %6844 = vmatmul.mubr.msk.f32.gmra.mrb[40].mxu0 %vm672_vm8, %v8557_v58  ;;  %v2103_v62 = vrot.slane %v8537_v20, 5  ;;  %v592_v3 = vsel %vm8376_vm7, %v5691_v35, %v591_v14 }
 0x100   :  { %10903 = vst [vmem:[#allocation25_spill] sm:$0xff] %v8543_v27  ;;  %v8549_v33 = vpop.f32.mrb[17].mxu0  ;;  %v8564_v6 = vcombine.low %v585_v1, %v588_v59  ;;  %v5849_v59 = vrot.slane %v8514_v43, 9  ;;  %v595_v35 = vsel %vm8376_vm7, %v593_v26, %v594_v0 }
 0x101   :  { %10902 = vst [vmem:[#allocation24_spill] sm:$0xff] %v8541_v23  ;;  %10904 = vst [vmem:[#allocation26_spill] sm:$0xff] %v8549_v33  ;;  %v8572_v30 = vcombine.high %v8541_v23, %v8541_v23  ;;  %v2105_v51 = vrot.slane %v2103_v62, 4  ;;  %v8597_v36 = vcombine.low %v592_v3, %v595_v35  ;;  %v10917_v35 = vrot.slane %v8405_v32, 7 }
 0x102   :  { %10907 = vst [vmem:[#allocation29_spill] sm:$0xff] %v8564_v6  ;;  %6846 = vmatprep.mubr.msk.f32.mxu0 %vm672_vm8, %v8564_v6  ;;  %7173 = vmatprep.mubr.msk.f32.mxu1 %vm672_vm8, %v8564_v6  ;;  %v2104_v14 = vsel %vm8376_vm7, %v5849_v59, %v2103_v62 }
 0x103   :  { %10908 = vst [vmem:[#allocation30_spill] sm:$0xff] %v8572_v30  ;;  %v6806_v38 = vpop.f32.mrb[18].mxu0  ;;  %10910 = vst [vmem:[#allocation32_spill] sm:$0xff] %v8597_v36  ;;  %v3018_v60 = vrot.slane %v8572_v30, 5  ;;  %6847 = vmatmul.mubr.msk.f32.gmra.mrb[42].mxu0 %vm672_vm8, %v8597_v36  ;;  %7174 = vmatmul.mubr.msk.f32.vlgmr.msra.gmra.mrb[0].mxu1 %vm672_vm8, %v8597_v36 }
 0x104   :  { %v343_v31 = vadd.f32 %v6806_v38, %v8347_v56  ;;  %v337_v1 = vpop.f32.mrb[19].mxu0  ;;  %v3015_v38 = vrot.slane %v8541_v23, 5  ;;  %7642 = vmatpush3.bf16.msra.mxu1 %v8332_v52 }
 0x105   :  { %v338_v7 = vadd.f32 %v8347_v56, %v337_v1  ;;  %v2107_v1 = vsel %vm8376_vm7, %v2105_v51, %v2106_v50 }
 0x106   :  { %v8608_v0 = vmax.f32 %v343_v31, 0.0  ;;  %v8610_v26 = vcombine.low %v2104_v14, %v2107_v1  ;;  %v10916_v31 = vrot.slane %v8405_v32, 6  ;;  %v8632_v14 = vrot.slane %v10917_v35, 4 }
 0x107   :  { %v8599_v28 = vmax.f32 %v338_v7, 0.0  ;;  %v6809_v17 = vpop.f32.mrb[20].mxu0  ;;  %v5981_v7 = vld [vmem:[%s10642_s3 + $0x130] sm:$0xf]  ;;  %v3016_v42 = vsel %vm8376_vm7, %v5955_v37, %v3015_v38 }
 0x108   :  { %10914 = vst [vmem:[#allocation35_spill] sm:$0xff] %v8608_v0  ;;  %10915 = vst [vmem:[#allocation36_spill] sm:$0xff] %v8610_v26  ;;  %v353_v62 = vadd.f32 %v6809_v17, %v8347_v56  ;;  %v347_v3 = vpop.f32.mrb[21].mxu0  ;;  %v3017_v17 = vrot.slane %v3015_v38, 4  ;;  %v8628_v59 = vrot.slane %v10916_v31, 4  ;;  %7176 = vmatprep.mubr.msk.f32.mxu1 %vm672_vm8, %v8610_v26  ;;  %7195 = vmatprep.subr.msk.mxu1 %vm705_vm4, %v5981_v7 }
 0x109   :  { %10911 = vst [vmem:[#allocation33_spill] sm:$0xff] %v8599_v28  ;;  %v8622_v50 = vcombine.high %v8599_v28, %v8599_v28  ;;  %v348_v51 = vadd.f32 %v8347_v56, %v347_v3  ;;  %10918 = vst [vmem:[#allocation37_spill] sm:$0xff] %v8632_v14  ;;  %v5692_v26 = vrot.slane %v8599_v28, 9  ;;  %v8664_v6 = vcombine.high %v8608_v0, %v8608_v0 }
 0x10a   :  { %v8637_v18 = vmax.f32 %v353_v62, 0.0  ;;  %v3019_v31 = vsel %vm8376_vm7, %v3017_v17, %v3018_v60  ;;  %v601_v17 = vrot.slane %v8608_v0, 5  ;;  %7196 = vmatpush3.msk.msra.mxu1 %vm705_vm4, %v5981_v7 }
 0x10b   :  { %v8640_v3 = vmax.f32 %v348_v51, 0.0  ;;  %v6812_v36 = vpop.f32.mrb[22].mxu0  ;;  %v598_v35 = vrot.slane %v8622_v50, 5  ;;  %v8652_v62 = vcombine.low %v3016_v42, %v3019_v31  ;;  %10923 = vst [vmem:[#allocation42_spill] sm:$0xff] %v8664_v6  ;;  %7644 = vmatprep.subr.bf16.mxu1 %v8435_v47 }
 0x10c   :  { %10919 = vst [vmem:[#allocation38_spill] sm:$0xff] %v8637_v18  ;;  %v8650_v1 = vcombine.high %v8637_v18, %v8637_v18  ;;  %v363_v52 = vadd.f32 %v6812_v36, %v8347_v56  ;;  %v357_v51 = vpop.f32.mrb[23].mxu0 }
 0x10d   :  { %10921 = vst [vmem:[#allocation40_spill] sm:$0xff] %v8652_v62  ;;  %v8658_v38 = vcombine.high %v8640_v3, %v8640_v3  ;;  %v358_v60 = vadd.f32 %v8347_v56, %v357_v51  ;;  %v600_v37 = vrot.slane %v598_v35, 4  ;;  %7177 = vmatmul.mubr.msk.f32.gmra.mrb[2].mxu1 %vm672_vm8, %v8652_v62  ;;  %v605_v36 = vrot.slane %v8640_v3, 5 }
 0x10e   :  { %10920 = vst [vmem:[#allocation39_spill] sm:$0xff] %v8650_v1  ;;  %v8668_v42 = vmax.f32 %v363_v52, 0.0  ;;  %v612_v31 = vrot.slane %v8650_v1, 5  ;;  %v599_v51 = vsel %vm8376_vm7, %v5692_v26, %v598_v35  ;;  %v5693_v52 = vrot.slane %v8664_v6, 9 }
 0x10f   :  { %10922 = vst [vmem:[#allocation41_spill] sm:$0xff] %v8658_v38  ;;  %v8672_v58 = vmax.f32 %v358_v60, 0.0  ;;  %v6815_v21 = vpop.f32.mrb[24].mxu0  ;;  %v602_v41 = vsel %vm8376_vm7, %v600_v37, %v601_v17  ;;  %v608_v45 = vrot.slane %v8658_v38, 5  ;;  %v607_v37 = vrot.slane %v605_v36, 4 }
 0x110   :  { %10924 = vst [vmem:[#allocation43_spill] sm:$0xff] %v8668_v42  ;;  %v8684_v33 = vcombine.high %v8668_v42, %v8668_v42  ;;  %v367_v60 = vpop.f32.mrb[25].mxu0  ;;  %v664_v27 = vcombine.low %v599_v51, %v602_v41  ;;  %v373_v35 = vadd.f32 %v6815_v21, %v8347_v56  ;;  %v614_v62 = vrot.slane %v612_v31, 4 }
 0x111   :  { %10925 = vst [vmem:[#allocation44_spill] sm:$0xff] %v8672_v58  ;;  %v8689_v26 = vcombine.high %v8672_v58, %v8672_v58  ;;  %v368_v7 = vadd.f32 %v8347_v56, %v367_v60  ;;  %v615_v41 = vrot.slane %v8672_v58, 5  ;;  %v609_v0 = vsel %vm8376_vm7, %v607_v37, %v608_v45 }
 0x112   :  { %10926 = vst [vmem:[#allocation45_spill] sm:$0xff] %v8684_v33  ;;  %6849 = vmatprep.mubr.msk.f32.mxu0 %vm672_vm8, %v664_v27  ;;  %v5694_v21 = vrot.slane %v8637_v18, 9  ;;  %v619_v60 = vrot.slane %v8668_v42, 5  ;;  %v606_v48 = vsel %vm8376_vm7, %v5693_v52, %v605_v36  ;;  %v622_v37 = vrot.slane %v8684_v33, 5 }
 0x113   :  { %10927 = vst [vmem:[#allocation46_spill] sm:$0xff] %v8689_v26  ;;  %v8697_v51 = vmax.f32 %v368_v7, 0.0  ;;  %v6818_v38 = vpop.f32.mrb[26].mxu0  ;;  %v5695_v10 = vrot.slane %v8689_v26, 9  ;;  %v8708_v7 = vmax.f32 %v373_v35, 0.0  ;;  %v8719_v53 = vcombine.low %v606_v48, %v609_v0 }
 0x114   :  { %v377_v27 = vpop.f32.mrb[27].mxu0  ;;  %v613_v45 = vsel %vm8376_vm7, %v5694_v21, %v612_v31  ;;  %v383_v14 = vadd.f32 %v6818_v38, %v8347_v56  ;;  %v616_v36 = vsel %vm8376_vm7, %v614_v62, %v615_v41  ;;  %v621_v30 = vrot.slane %v619_v60, 4 }
 0x115   :  { %10928 = vst [vmem:[#allocation47_spill] sm:$0xff] %v8697_v51  ;;  %v8712_v63 = vcombine.high %v8697_v51, %v8697_v51  ;;  %v378_v17 = vadd.f32 %v8347_v56, %v377_v27  ;;  %10930 = vst [vmem:[#allocation49_spill] sm:$0xff] %v8719_v53  ;;  %v8724_v35 = vcombine.low %v613_v45, %v616_v36  ;;  %6850 = vmatmul.mubr.msk.f32.gmra.mrb[44].mxu0 %vm672_vm8, %v8719_v53 }
 0x116   :  { %v8727_v31 = vmax.f32 %v383_v14, 0.0  ;;  %v620_v62 = vsel %vm8376_vm7, %v5695_v10, %v619_v60  ;;  %v629_v10 = vrot.slane %v8708_v7, 5  ;;  %v5696_v60 = vrot.slane %v8697_v51, 9 }
 0x117   :  { %10929 = vst [vmem:[#allocation48_spill] sm:$0xff] %v8712_v63  ;;  %10931 = vst [vmem:[#allocation50_spill] sm:$0xff] %v8724_v35  ;;  %v6821_v58 = vpop.f32.mrb[28].mxu0  ;;  %v626_v23 = vrot.slane %v8712_v63, 5  ;;  %v8729_v21 = vmax.f32 %v378_v17, 0.0  ;;  %6852 = vmatprep.mubr.msk.f32.mxu0 %vm672_vm8, %v8724_v35  ;;  %7179 = vmatprep.mubr.msk.f32.mxu1 %vm672_vm8, %v8724_v35  ;;  %v623_v17 = vsel %vm8376_vm7, %v621_v30, %v622_v37 }
 0x118   :  { %10932 = vst [vmem:[#allocation51_spill] sm:$0xff] %v8727_v31  ;;  %v393_v48 = vadd.f32 %v6821_v58, %v8347_v56  ;;  %v387_v0 = vpop.f32.mrb[29].mxu0  ;;  %v8746_v58 = vcombine.high %v8708_v7, %v8708_v7  ;;  %v8752_v27 = vcombine.high %v8727_v31, %v8727_v31  ;;  %v8762_v37 = vcombine.low %v620_v62, %v623_v17 }
 0x119   :  { %10933 = vst [vmem:[#allocation52_spill] sm:$0xff] %v8729_v21  ;;  %v388_v14 = vadd.f32 %v8347_v56, %v387_v0  ;;  %v628_v41 = vrot.slane %v626_v23, 4  ;;  %v8756_v45 = vcombine.high %v8729_v21, %v8729_v21  ;;  %v633_v53 = vrot.slane %v8729_v21, 5 }
 0x11a   :  { %10934 = vst [vmem:[#allocation53_spill] sm:$0xff] %v8746_v58  ;;  %10935 = vst [vmem:[#allocation54_spill] sm:$0xff] %v8752_v27  ;;  %v8758_v36 = vmax.f32 %v393_v48, 0.0  ;;  %v640_v33 = vrot.slane %v8752_v27, 5  ;;  %6853 = vmatmul.mubr.msk.f32.gmra.mrb[46].mxu0 %vm672_vm8, %v8762_v37  ;;  %7180 = vmatmul.mubr.msk.f32.gmra.mrb[4].mxu1 %vm672_vm8, %v8762_v37  ;;  %v627_v62 = vsel %vm8376_vm7, %v5696_v60, %v626_v23  ;;  %v5698_v48 = vrot.slane %v8727_v31, 9 }
 0x11b   :  { %10936 = vst [vmem:[#allocation55_spill] sm:$0xff] %v8756_v45  ;;  %v8760_v30 = vmax.f32 %v388_v14, 0.0  ;;  %10938 = vst [vmem:[#allocation57_spill] sm:$0xff] %v8762_v37  ;;  %v6824_v0 = vpop.f32.mrb[30].mxu0  ;;  %v630_v35 = vsel %vm8376_vm7, %v628_v41, %v629_v10  ;;  %v635_v37 = vrot.slane %v633_v53, 4  ;;  %v636_v21 = vrot.slane %v8756_v45, 5 }
 0x11c   :  { %10937 = vst [vmem:[#allocation56_spill] sm:$0xff] %v8758_v36  ;;  %v403_v38 = vadd.f32 %v6824_v0, %v8347_v56  ;;  %v397_v52 = vpop.f32.mrb[31].mxu0  ;;  %v8783_v10 = vcombine.low %v627_v62, %v630_v35  ;;  %v5697_v0 = vrot.slane %v8746_v58, 9  ;;  %v8789_v63 = vcombine.high %v8758_v36, %v8758_v36 }
 0x11d   :  { %v8773_v14 = vcombine.high %v8760_v30, %v8760_v30  ;;  %v643_v17 = vrot.slane %v8760_v30, 5  ;;  %v398_v41 = vadd.f32 %v8347_v56, %v397_v52  ;;  %v642_v62 = vrot.slane %v640_v33, 4 }
 0x11e   :  { %10940 = vst [vmem:[#allocation59_spill] sm:$0xff] %v8783_v10  ;;  %10941 = vst [vmem:[#allocation60_spill] sm:$0xff] %v8789_v63  ;;  %v8794_v23 = vmax.f32 %v403_v38, 0.0  ;;  %6855 = vmatprep.mubr.msk.f32.mxu0 %vm672_vm8, %v8783_v10  ;;  %7182 = vmatprep.mubr.msk.f32.mxu1 %vm672_vm8, %v8783_v10  ;;  %v634_v35 = vsel %vm8376_vm7, %v5697_v0, %v633_v53  ;;  %v637_v38 = vsel %vm8376_vm7, %v635_v37, %v636_v21 }
 0x11f   :  { %10939 = vst [vmem:[#allocation58_spill] sm:$0xff] %v8773_v14  ;;  %v8791_v27 = vpop.f32.mrb[32].mxu0  ;;  %v8796_v60 = vmax.f32 %v398_v41, 0.0  ;;  %v5699_v41 = vrot.slane %v8773_v14, 9  ;;  %v647_v45 = vrot.slane %v8758_v36, 5  ;;  %v8813_v10 = vcombine.low %v634_v35, %v637_v38 }
 0x120   :  { %10942 = vst [vmem:[#allocation61_spill] sm:$0xff] %v8791_v27  ;;  %v407_v52 = vpop.f32.mrb[33].mxu0  ;;  %v641_v53 = vsel %vm8376_vm7, %v5698_v48, %v640_v33  ;;  %v644_v0 = vsel %vm8376_vm7, %v642_v62, %v643_v17  ;;  %v8827_v14 = vcombine.low %v8368_v8, %v8363_v5  ;;  %v8831_v35 = vcombine.high %v8794_v23, %v8794_v23  ;;  %v5755_v8 = vld [vmem:[%s10642_s3 + $0x40] sm:$0xf] }
 0x121   :  { %v408_v27 = vadd.f32 %v8347_v56, %v407_v52  ;;  %v8811_v58 = vcombine.high %v8796_v60, %v8796_v60  ;;  %10944 = vst [vmem:[#allocation63_spill] sm:$0xff] %v8813_v10  ;;  %v8821_v52 = vcombine.low %v641_v53, %v644_v0  ;;  %v649_v37 = vrot.slane %v647_v45, 4  ;;  %6856 = vmatmul.mubr.msk.f32.gmra.mrb[48].mxu0 %vm672_vm8, %v8813_v10 }
 0x122   :  { %10947 = vst [vmem:[#allocation66_spill] sm:$0xff] %v8827_v14  ;;  %10948 = vst [vmem:[#allocation67_spill] sm:$0xff] %v8831_v35  ;;  %7183 = vmatmul.mubr.msk.f32.gmra.mrb[6].mxu1 %vm672_vm8, %v8813_v10  ;;  %v650_v48 = vrot.slane %v8789_v63, 5  ;;  %v8844_v17 = vcombine.low %v8361_v4, %v8383_v16  ;;  %v2113_v63 = vrot.slane %v8794_v23, 5  ;;  %v5956_v5 = vrot.slane %v8831_v35, 9 }
 0x123   :  { %10943 = vst [vmem:[#allocation62_spill] sm:$0xff] %v8811_v58  ;;  %v8819_v56 = vmax.f32 %v408_v27, 0.0  ;;  %10945 = vst [vmem:[#allocation64_spill] sm:$0xff] %v8821_v52  ;;  %v8823_v21 = vpop.f32.mrb[34].mxu0  ;;  %v648_v27 = vsel %vm8376_vm7, %v5699_v41, %v647_v45  ;;  %6858 = vmatprep.mubr.msk.f32.mxu0 %vm672_vm8, %v8821_v52  ;;  %7185 = vmatprep.mubr.msk.f32.mxu1 %vm672_vm8, %v8821_v52  ;;  %v2110_v38 = vrot.slane %v8811_v58, 5 }
 0x124   :  { %10946 = vst [vmem:[#allocation65_spill] sm:$0xff] %v8823_v21  ;;  %v8837_v33 = vpop.f32.mrb[35].mxu0  ;;  %10950 = vst [vmem:[#allocation69_spill] sm:$0xff] %v8844_v17  ;;  %v8857_v45 = vcombine.low %v8423_v40, %v8405_v32  ;;  %v8861_v41 = vcombine.low %v8429_v44, %v8462_v11  ;;  %v651_v21 = vsel %vm8376_vm7, %v649_v37, %v650_v48  ;;  %v1072_v48 = vrot.slane %v8388_v22, 6 }
 0x125   :  { %10949 = vst [vmem:[#allocation68_spill] sm:$0xff] %v8837_v33  ;;  %v8848_v62 = vcombine.high %v8819_v56, %v8819_v56  ;;  %v3022_v10 = vrot.slane %v8819_v56, 5  ;;  %v8868_v52 = vcombine.low %v648_v27, %v651_v21  ;;  %v5850_v33 = vrot.slane %v8796_v60, 9 }
 0x126   :  { %10951 = vst [vmem:[#allocation70_spill] sm:$0xff] %v8857_v45  ;;  %10952 = vst [vmem:[#allocation71_spill] sm:$0xff] %v8861_v41  ;;  %v2112_v58 = vrot.slane %v2110_v38, 4  ;;  %v1069_v27 = vrot.slane %v8383_v16, 6  ;;  %v10954_v0 = vcombine.low %v8351_v61, %v8358_v2 }
 0x127   :  { %10953 = vst [vmem:[#allocation72_spill] sm:$0xff] %v8868_v52  ;;  %v3024_v36 = vrot.slane %v3022_v10, 4  ;;  %v3025_v53 = vrot.slane %v8848_v62, 5  ;;  %6859 = vmatmul.mubr.msk.f32.gmra.mrb[50].mxu0 %vm672_vm8, %v8868_v52  ;;  %7186 = vmatmul.mubr.msk.f32.gmra.mrb[8].mxu1 %vm672_vm8, %v8868_v52  ;;  %v2111_v21 = vsel %vm8376_vm7, %v5850_v33, %v2110_v38  ;;  %v3023_v52 = vsel %vm8376_vm7, %v5956_v5, %v3022_v10 }
 0x128   :  { %v2114_v37 = vsel %vm8376_vm7, %v2112_v58, %v2113_v63  ;;  %6867 = vmatprep.mubr.msk.f32.mxu0 %vm672_vm8, %v10954_v0  ;;  %v10957_v58 = vmov 0  ;;  %v1071_v38 = vrot.slane %v1069_v27, 4  ;;  %v8906_v0 = vcombine.low %v8502_v34, %v8466_v12 }
 0x129   :  { %v8890_v35 = vcombine.low %v2111_v21, %v2114_v37  ;;  %v3026_v33 = vsel %vm8376_vm7, %v3024_v36, %v3025_v53  ;;  %v10958_v58 = vsel %vm8900_vm11, 4294967295, %v10957_v58  ;;  %v1079_v21 = vrot.slane %v8447_v54, 6 }
 0x12a   :  { %v8896_v63 = vcombine.low %v3023_v52, %v3026_v33  ;;  %10959 = vst [vmem:[#allocation75_spill] sm:$0xff] %v10958_v58  ;;  %10960 = vst [vmem:[#allocation76_spill] sm:$0xff] %v8906_v0  ;;  %v10961_v5 = vrot.slane %v8361_v4, 10  ;;  %v10962_v10 = vrot.slane %v8405_v32, 6  ;;  %v10963_v52 = vrot.slane %v8423_v40, 10 }
 0x12b   :  { %10955 = vst [vmem:[#allocation73_spill] sm:$0xff] %v8890_v35  ;;  %7188 = vmatprep.mubr.msk.f32.mxu1 %vm672_vm8, %v8890_v35  ;;  %v8923_v37 = vcombine.low %v8464_v55, %v8492_v29  ;;  %v1083_v33 = vrot.slane %v8462_v11, 6  ;;  %6868 = vmatmul.mubr.msk.f32.vlgmr.msra.gmra.mrb[36].mxu0 %vm672_vm8, %v8827_v14 }
 0x12c   :  { %10956 = vst [vmem:[#allocation74_spill] sm:$0xff] %v8896_v63  ;;  %v1070_v36 = vsel %vm8900_vm11, %v10961_v5, %v1069_v27  ;;  %v1077_v53 = vsel %vm8900_vm11, %v10963_v52, %v10962_v10  ;;  %7189 = vmatmul.mubr.msk.f32.gmra.mrb[10].mxu1 %vm672_vm8, %v8896_v63  ;;  %v1073_v27 = vsel %vm8900_vm11, %v1071_v38, %v1072_v48  ;;  %v1090_v10 = vrot.slane %v8466_v12, 6 }
 0x12d   :  { %10964 = vst [vmem:[#allocation77_spill] sm:$0xff] %v8923_v37  ;;  %v1080_v5 = vsel %vm8900_vm11, %v8628_v59, %v1079_v21  ;;  %v1093_v52 = vrot.slane %v8481_v24, 6  ;;  %6870 = vmatprep.mubr.msk.f32.mxu0 %vm672_vm8, %v8844_v17  ;;  %v8942_v35 = vcombine.low %v1070_v36, %v1073_v27  ;;  %v1085_v13 = vrot.slane %v1083_v33, 4  ;;  %7602 = vmatpush3.bf16.msra.mxu0 %v8439_v49 }
 0x12e   :  { %v8946_v63 = vcombine.low %v8520_v46, %v8475_v19  ;;  %v5742_v48 = vrot.slane %v8502_v34, 10  ;;  %v8950_v38 = vcombine.low %v1077_v53, %v1080_v5  ;;  %v10968_v59 = vrot.slane %v8429_v44, 10  ;;  %6895 = vmatprep.subr.msk.mxu0 %vm705_vm4, %v5755_v8 }
 0x12f   :  { %10965 = vst [vmem:[#allocation78_spill] sm:$0xff] %v8942_v35  ;;  %v1092_v14 = vrot.slane %v1090_v10, 4  ;;  %v1097_v36 = vrot.slane %v8492_v29, 6  ;;  %7197 = vmatprep.mubr.msk.f32.mxu1 %vm672_vm8, %v8942_v35  ;;  %v10969_v27 = vrot.slane %v8458_v9, 6  ;;  %v5744_v5 = vrot.slane %v8520_v46, 10  ;;  %6871 = vmatmul.mubr.msk.f32.gmra.mrb[38].mxu0 %vm672_vm8, %v8857_v45 }
 0x130   :  { %10966 = vst [vmem:[#allocation79_spill] sm:$0xff] %v8946_v63  ;;  %10967 = vst [vmem:[#allocation80_spill] sm:$0xff] %v8950_v38  ;;  %v1084_v21 = vsel %vm8900_vm11, %v10968_v59, %v1083_v33  ;;  %v1091_v53 = vsel %vm8900_vm11, %v5742_v48, %v1090_v10  ;;  %v1104_v33 = vrot.slane %v8475_v19, 6  ;;  %v6003_v59 = vld [vmem:[%s10642_s3 + $0x148] sm:$0xf]  ;;  %7198 = vmatmul.mubr.msk.f32.vlgmr.msra.gmra.mrb[12].mxu1 %vm672_vm8, %v8950_v38  ;;  %6873 = vmatprep.mubr.msk.f32.mxu0 %vm672_vm8, %v8861_v41 }
 0x131   :  { %v1087_v49 = vsel %vm8900_vm11, %v1085_v13, %v10969_v27  ;;  %v1094_v13 = vsel %vm8900_vm11, %v1092_v14, %v1093_v52  ;;  %v862_v10 = vcombine.low %v8599_v28, %v8622_v50  ;;  %v1099_v48 = vrot.slane %v1097_v36, 4  ;;  %7646 = vmatpush3.bf16.msra.mxu1 %v8435_v47  ;;  %6896 = vmatpush3.msk.msra.mxu0 %vm705_vm4, %v5755_v8 }
 0x132   :  { %v8975_v17 = vcombine.low %v1084_v21, %v1087_v49  ;;  %v8986_v27 = vcombine.low %v8664_v6, %v8640_v3  ;;  %v1105_v21 = vsel %vm8900_vm11, %v5744_v5, %v1104_v33  ;;  %v1106_v49 = vrot.slane %v1104_v33, 4  ;;  %7225 = vmatprep.subr.msk.mxu1 %vm705_vm4, %v6003_v59 }
 0x133   :  { %v1107_v45 = vrot.slane %v8510_v39, 6  ;;  %v8993_v14 = vcombine.low %v1091_v53, %v1094_v13  ;;  %v10973_v52 = vrot.slane %v8464_v55, 10  ;;  %v10974_v41 = vrot.slane %v8483_v25, 6  ;;  %6874 = vmatmul.mubr.msk.f32.gmra.mrb[40].mxu0 %vm672_vm8, %v8906_v0 }
 0x134   :  { %10970 = vst [vmem:[#allocation81_spill] sm:$0xff] %v8975_v17  ;;  %10971 = vst [vmem:[#allocation82_spill] sm:$0xff] %v8986_v27  ;;  %7200 = vmatprep.mubr.msk.f32.mxu1 %vm672_vm8, %v8975_v17  ;;  %v2291_v5 = vrot.slane %v8537_v20, 6  ;;  %v9011_v13 = vcombine.low %v8637_v18, %v8650_v1  ;;  %6876 = vmatprep.mubr.msk.f32.mxu0 %vm672_vm8, %v8923_v37  ;;  %v1125_v37 = vrot.slane %v8650_v1, 6  ;;  %v10983_v20 = vld [vmem:[#allocation44_spill] sm:$0xff] }
 0x135   :  { %10972 = vst [vmem:[#allocation83_spill] sm:$0xff] %v8993_v14  ;;  %v1098_v47 = vsel %vm8900_vm11, %v10973_v52, %v1097_v36  ;;  %v1101_v19 = vsel %vm8900_vm11, %v1099_v48, %v10974_v41  ;;  %v1108_v53 = vsel %vm8900_vm11, %v1106_v49, %v1107_v45  ;;  %v5871_v36 = vrot.slane %v8514_v43, 10  ;;  %7201 = vmatmul.mubr.msk.f32.gmra.mrb[14].mxu1 %vm672_vm8, %v8993_v14 }
 0x136   :  { %v9005_v33 = vcombine.low %v1098_v47, %v1101_v19  ;;  %10976 = vst [vmem:[#allocation85_spill] sm:$0xff] %v9011_v13  ;;  %v9019_v41 = vcombine.low %v1105_v21, %v1108_v53  ;;  %v2293_v19 = vrot.slane %v2291_v5, 4  ;;  %v2294_v48 = vrot.slane %v8553_v57, 6  ;;  %v10979_v21 = vld [vmem:[#allocation24_spill] sm:$0xff]  ;;  %v10980_v47 = vld [vmem:[#allocation30_spill] sm:$0xff]  ;;  %7226 = vmatpush3.msk.msra.mxu1 %vm705_vm4, %v6003_v59  ;;  %v10989_v59 = vld [vmem:[#allocation45_spill] sm:$0xff] }
 0x137   :  { %v9024_v45 = vcombine.low %v8689_v26, %v8668_v42  ;;  %v2292_v8 = vsel %vm8900_vm11, %v5871_v36, %v2291_v5  ;;  %v5977_v49 = vrot.slane %v8587_v15, 10  ;;  %v3203_v52 = vrot.slane %v10979_v21, 6  ;;  %v10981_v57 = vld [vmem:[#allocation48_spill] sm:$0xff]  ;;  %v10985_v21 = vld [vmem:[#allocation14_spill] sm:$0xff]  ;;  %6877 = vmatmul.mubr.msk.f32.gmra.mrb[42].mxu0 %vm672_vm8, %v8946_v63 }
 0x138   :  { %10975 = vst [vmem:[#allocation84_spill] sm:$0xff] %v9005_v33  ;;  %10977 = vst [vmem:[#allocation86_spill] sm:$0xff] %v9019_v41  ;;  %7203 = vmatprep.mubr.msk.f32.mxu1 %vm672_vm8, %v9005_v33  ;;  %v3206_v53 = vrot.slane %v10980_v47, 6  ;;  %v2295_v0 = vsel %vm8900_vm11, %v2293_v19, %v2294_v48  ;;  %v9039_v14 = vcombine.low %v8697_v51, %v10981_v57  ;;  %v1128_v33 = vrot.slane %v10983_v20, 6  ;;  %v10986_v48 = vld [vmem:[#allocation52_spill] sm:$0xff]  ;;  %v10987_v20 = vld [vmem:[#allocation53_spill] sm:$0xff] }
 0x139   :  { %10978 = vst [vmem:[#allocation87_spill] sm:$0xff] %v9024_v45  ;;  %v9044_v5 = vcombine.low %v2292_v8, %v2295_v0  ;;  %v3205_v36 = vrot.slane %v3203_v52, 4  ;;  %v5747_v15 = vrot.slane %v8637_v18, 10  ;;  %v5748_v47 = vrot.slane %v8689_v26, 10  ;;  %7648 = vmatprep.subr.bf16.mxu1 %v10985_v21  ;;  %7204 = vmatmul.mubr.msk.f32.gmra.mrb[0].mxu1 %vm672_vm8, %v9019_v41 }
 0x13a   :  { %10982 = vst [vmem:[#allocation48_spill] sm:$0xff] %v9039_v14  ;;  %v1127_v19 = vrot.slane %v1125_v37, 4  ;;  %v9055_v1 = vcombine.low %v10987_v20, %v10986_v48  ;;  %v1132_v0 = vrot.slane %v8668_v42, 6  ;;  %v1135_v8 = vrot.slane %v10989_v59, 6  ;;  %6879 = vmatprep.mubr.msk.f32.mxu0 %vm672_vm8, %v862_v10  ;;  %v10991_v42 = vld [vmem:[#allocation54_spill] sm:$0xff] }
 0x13b   :  { %10984 = vst [vmem:[#allocation88_spill] sm:$0xff] %v9044_v5  ;;  %7206 = vmatprep.mubr.msk.f32.mxu1 %vm672_vm8, %v9044_v5  ;;  %v3204_v63 = vsel %vm8900_vm11, %v5977_v49, %v3203_v52  ;;  %v3207_v41 = vsel %vm8900_vm11, %v3205_v36, %v3206_v53  ;;  %v1126_v26 = vsel %vm8900_vm11, %v5747_v15, %v1125_v37  ;;  %v1139_v18 = vrot.slane %v10981_v57, 6  ;;  %v10994_v53 = vld [vmem:[#allocation56_spill] sm:$0xff]  ;;  %v10995_v15 = vld [vmem:[#allocation58_spill] sm:$0xff] }
 0x13c   :  { %10988 = vst [vmem:[#allocation14_spill] sm:$0xff] %v9055_v1  ;;  %v9069_v43 = vcombine.low %v3204_v63, %v3207_v41  ;;  %v1129_v59 = vsel %vm8900_vm11, %v1127_v19, %v1128_v33  ;;  %v1134_v10 = vrot.slane %v1132_v0, 4  ;;  %v9075_v5 = vcombine.low %v8727_v31, %v10991_v42  ;;  %6880 = vmatmul.mubr.msk.f32.gmra.mrb[44].mxu0 %vm672_vm8, %v8986_v27 }
 0x13d   :  { %v9077_v25 = vcombine.low %v1126_v26, %v1129_v59  ;;  %v1133_v49 = vsel %vm8900_vm11, %v5748_v47, %v1132_v0  ;;  %v1141_v52 = vrot.slane %v1139_v18, 4  ;;  %v9083_v37 = vcombine.low %v10995_v15, %v10994_v53  ;;  %v10998_v47 = vld [vmem:[#allocation55_spill] sm:$0xff]  ;;  %6882 = vmatprep.mubr.msk.f32.mxu0 %vm672_vm8, %v9011_v13 }
 0x13e   :  { %10990 = vst [vmem:[#allocation52_spill] sm:$0xff] %v9069_v43  ;;  %10992 = vst [vmem:[#allocation54_spill] sm:$0xff] %v9075_v5  ;;  %7207 = vmatmul.mubr.msk.f32.gmra.mrb[2].mxu1 %vm672_vm8, %v9069_v43  ;;  %v1136_v63 = vsel %vm8900_vm11, %v1134_v10, %v1135_v8  ;;  %v10997_v26 = vrot.slane %v8697_v51, 10  ;;  %v1146_v41 = vrot.slane %v10986_v48, 6  ;;  %v1149_v36 = vrot.slane %v10998_v47, 6 }
 0x13f   :  { %10993 = vst [vmem:[#allocation89_spill] sm:$0xff] %v9077_v25  ;;  %10996 = vst [vmem:[#allocation58_spill] sm:$0xff] %v9083_v37  ;;  %7209 = vmatprep.mubr.msk.f32.mxu1 %vm672_vm8, %v9077_v25  ;;  %v10999_v19 = vrot.slane %v8708_v7, 6  ;;  %v5750_v59 = vrot.slane %v10987_v20, 10  ;;  %v11000_v8 = vrot.slane %v8358_v2, 6  ;;  %v1153_v10 = vrot.slane %v10991_v42, 6 }
 0x140   :  { %v1140_v33 = vsel %vm8900_vm11, %v10997_v26, %v1139_v18  ;;  %v9109_v26 = vcombine.low %v1133_v49, %v1136_v63  ;;  %v1148_v13 = vrot.slane %v1146_v41, 4  ;;  %v11004_v25 = vrot.slane %v8351_v61, 10  ;;  %v11007_v63 = vld [vmem:[#allocation11_spill] sm:$0xff]  ;;  %6883 = vmatmul.mubr.msk.f32.gmra.mrb[46].mxu0 %vm672_vm8, %v9024_v45 }
 0x141   :  { %v1143_v0 = vsel %vm8900_vm11, %v1141_v52, %v10999_v19  ;;  %v1057_v18 = vrot.slane %v11000_v8, 4  ;;  %v11003_v27 = vmov %v11000_v8  ;;  %v1147_v52 = vsel %vm8900_vm11, %v5750_v59, %v1146_v41  ;;  %v11005_v19 = vld [vmem:[#allocation7_spill] sm:$0xff]  ;;  %v11010_v41 = vld [vmem:[#allocation10_spill] sm:$0xff]  ;;  %6885 = vmatprep.mubr.msk.f32.mxu0 %vm672_vm8, %v9039_v14 }
 0x142   :  { %11001 = vst [vmem:[#allocation55_spill] sm:$0xff] %v9109_v26  ;;  %v9111_v43 = vcombine.low %v1140_v33, %v1143_v0  ;;  %v1056_v51 = vsel %vm8900_vm11, %v11004_v25, %v11003_v27  ;;  %v11006_v20 = vrot.slane %v11005_v19, 6  ;;  %v1155_v49 = vrot.slane %v1153_v10, 4  ;;  %7210 = vmatmul.mubr.msk.f32.gmra.mrb[4].mxu1 %vm672_vm8, %v9109_v26  ;;  %v11008_v27 = vld [vmem:[#allocation9_spill] sm:$0xff] }
 0x143   :  { %v1065_v33 = vrot.slane %v11007_v63, 6  ;;  %v1150_v25 = vsel %vm8900_vm11, %v1148_v13, %v1149_v36  ;;  %v11009_v0 = vrot.slane %v11008_v27, 6  ;;  %v11011_v59 = vrot.slane %v11010_v41, 10  ;;  %v11015_v63 = vld [vmem:[#allocation60_spill] sm:$0xff] }
 0x144   :  { %11002 = vst [vmem:[#allocation90_spill] sm:$0xff] %v9111_v43  ;;  %v1059_v8 = vsel %vm8900_vm11, %v1057_v18, %v11006_v20  ;;  %v5752_v20 = vrot.slane %v10995_v15, 10  ;;  %v1160_v18 = vrot.slane %v10994_v53, 6  ;;  %7212 = vmatprep.mubr.msk.f32.mxu1 %vm672_vm8, %v9111_v43  ;;  %v11012_v45 = vrot.slane %v8727_v31, 10  ;;  %6886 = vmatmul.mubr.msk.f32.gmra.mrb[48].mxu0 %vm672_vm8, %v9055_v1 }
 0x145   :  { %v1063_v19 = vsel %vm8900_vm11, %v11011_v59, %v11009_v0  ;;  %v11013_v36 = vrot.slane %v8760_v30, 6  ;;  %v11014_v59 = vld [vmem:[#allocation34_spill] sm:$0xff]  ;;  %v1163_v53 = vrot.slane %v11015_v63, 6  ;;  %v9156_v14 = vcombine.low %v1147_v52, %v1150_v25  ;;  %6888 = vmatprep.mubr.msk.f32.mxu0 %vm672_vm8, %v9075_v5  ;;  %v11020_v25 = vld [vmem:[#allocation67_spill] sm:$0xff] }
 0x146   :  { %v1154_v13 = vsel %vm8900_vm11, %v11012_v45, %v1153_v10  ;;  %v1066_v41 = vsel %vm8900_vm11, %v11014_v59, %v1065_v33  ;;  %v1169_v61 = vcombine.low %v1056_v51, %v1059_v8  ;;  %v1162_v26 = vrot.slane %v1160_v18, 4  ;;  %v6149_v59 = vld [vmem:[%s10642_s3 + $0x1f0] sm:$0xf] }
 0x147   :  { %v1157_v0 = vsel %vm8900_vm11, %v1155_v49, %v11013_v36  ;;  %11016 = vst [vmem:[#allocation9_spill] sm:$0xff] %v9156_v14  ;;  %v9160_v31 = vcombine.low %v1063_v19, %v1066_v41  ;;  %v1161_v45 = vsel %vm8900_vm11, %v5752_v20, %v1160_v18  ;;  %v5872_v10 = vrot.slane %v8796_v60, 10  ;;  %v11019_v49 = vld [vmem:[#allocation62_spill] sm:$0xff]  ;;  %7213 = vmatmul.mubr.msk.f32.gmra.mrb[6].mxu1 %vm672_vm8, %v9156_v14 }
 0x148   :  { %v9158_v43 = vcombine.low %v1154_v13, %v1157_v0  ;;  %v2298_v36 = vrot.slane %v11019_v49, 6  ;;  %v1164_v51 = vsel %vm8900_vm11, %v1162_v26, %v1163_v53  ;;  %v2301_v52 = vrot.slane %v8794_v23, 6  ;;  %6889 = vmatmul.mubr.msk.f32.gmra.mrb[50].mxu0 %vm672_vm8, %v9083_v37  ;;  %v11036_v37 = vld [vmem:[#allocation17_spill] sm:$0xff] }
 0x149   :  { %11018 = vst [vmem:[#allocation60_spill] sm:$0xff] %v9160_v31  ;;  %v3210_v19 = vrot.slane %v8819_v56, 6  ;;  %v3213_v8 = vrot.slane %v8848_v62, 6  ;;  %v5978_v41 = vrot.slane %v11020_v25, 10  ;;  %v5775_v20 = vrot.slane %v8361_v4, 11  ;;  %6897 = vmatprep.mubr.msk.f32.mxu0 %vm672_vm8, %v1169_v61 }
 0x14a   :  { %11017 = vst [vmem:[#allocation34_spill] sm:$0xff] %v9158_v43  ;;  %7215 = vmatprep.mubr.msk.f32.mxu1 %vm672_vm8, %v9158_v43  ;;  %v2300_v33 = vrot.slane %v2298_v36, 4  ;;  %v1399_v18 = vrot.slane %v8383_v16, 7  ;;  %v9182_v53 = vcombine.low %v1161_v45, %v1164_v51  ;;  %v2299_v26 = vsel %vm8900_vm11, %v5872_v10, %v2298_v36 }
 0x14b   :  { %v3212_v13 = vrot.slane %v3210_v19, 4  ;;  %v1402_v0 = vrot.slane %v8388_v22, 7  ;;  %v3211_v4 = vsel %vm8900_vm11, %v5978_v41, %v3210_v19  ;;  %v1409_v51 = vrot.slane %v8447_v54, 7 }
 0x14c   :  { %v2302_v5 = vsel %vm8900_vm11, %v2300_v33, %v2301_v52  ;;  %v1401_v45 = vrot.slane %v1399_v18, 4  ;;  %7216 = vmatmul.mubr.msk.f32.gmra.mrb[8].mxu1 %vm672_vm8, %v9182_v53  ;;  %v11024_v1 = vrot.slane %v8405_v32, 7  ;;  %v11025_v52 = vrot.slane %v8423_v40, 11  ;;  %6898 = vmatmul.mubr.msk.f32.vlgmr.msra.gmra.mrb[36].mxu0 %vm672_vm8, %v9160_v31  ;;  %v11033_v31 = vld [vmem:[#allocation41_spill] sm:$0xff] }
 0x14d   :  { %v9202_v10 = vcombine.low %v2299_v26, %v2302_v5  ;;  %v3214_v36 = vsel %vm8900_vm11, %v3212_v13, %v3213_v8  ;;  %v1413_v33 = vrot.slane %v8462_v11, 7  ;;  %v1400_v41 = vsel %vm9189_vm13, %v5775_v20, %v1399_v18  ;;  %v11026_v26 = vld [vmem:[#allocation37_spill] sm:$0xff]  ;;  %6900 = vmatprep.mubr.msk.f32.mxu0 %vm672_vm8, %v8942_v35 }
 0x14e   :  { %v1407_v19 = vsel %vm9189_vm13, %v11025_v52, %v11024_v1  ;;  %v1403_v5 = vsel %vm9189_vm13, %v1401_v45, %v1402_v0  ;;  %v1410_v8 = vsel %vm9189_vm13, %v11026_v26, %v1409_v51  ;;  %v1420_v13 = vrot.slane %v8466_v12, 7 }
 0x14f   :  { %11023 = vst [vmem:[#allocation62_spill] sm:$0xff] %v9202_v10  ;;  %7218 = vmatprep.mubr.msk.f32.mxu1 %vm672_vm8, %v9202_v10  ;;  %v9224_v40 = vcombine.low %v3211_v4, %v3214_v36  ;;  %v9226_v1 = vcombine.low %v1400_v41, %v1403_v5  ;;  %v1415_v61 = vrot.slane %v1413_v33, 4  ;;  %v5778_v52 = vrot.slane %v8502_v34, 11  ;;  %v11031_v5 = vld [vmem:[#allocation35_spill] sm:$0xff] }
 0x150   :  { %v9229_v20 = vcombine.low %v1407_v19, %v1410_v8  ;;  %v11029_v18 = vrot.slane %v8429_v44, 11  ;;  %v1422_v45 = vrot.slane %v1420_v13, 4  ;;  %v1423_v51 = vrot.slane %v8481_v24, 7  ;;  %6901 = vmatmul.mubr.msk.f32.gmra.mrb[38].mxu0 %vm672_vm8, %v8950_v38 }
 0x151   :  { %11027 = vst [vmem:[#allocation67_spill] sm:$0xff] %v9224_v40  ;;  %11028 = vst [vmem:[#allocation37_spill] sm:$0xff] %v9226_v1  ;;  %7219 = vmatmul.mubr.msk.f32.gmra.mrb[10].mxu1 %vm672_vm8, %v9224_v40  ;;  %v11030_v4 = vrot.slane %v8458_v9, 7  ;;  %v1421_v44 = vsel %vm9189_vm13, %v5778_v52, %v1420_v13  ;;  %v1111_v36 = vrot.slane %v8622_v50, 6  ;;  %v1427_v19 = vrot.slane %v8492_v29, 7  ;;  %6903 = vmatprep.mubr.msk.f32.mxu0 %vm672_vm8, %v8975_v17 }
 0x152   :  { %v1414_v0 = vsel %vm9189_vm13, %v11029_v18, %v1413_v33  ;;  %7227 = vmatprep.mubr.msk.f32.mxu1 %vm672_vm8, %v9226_v1  ;;  %v1424_v33 = vsel %vm9189_vm13, %v1422_v45, %v1423_v51  ;;  %v5745_v41 = vrot.slane %v8599_v28, 10  ;;  %v1114_v26 = vrot.slane %v11031_v5, 6  ;;  %v6023_v51 = vld [vmem:[%s10642_s3 + $0x160] sm:$0xf] }
 0x153   :  { %v1417_v34 = vsel %vm9189_vm13, %v1415_v61, %v11030_v4  ;;  %v1118_v8 = vrot.slane %v8640_v3, 6  ;;  %v9259_v61 = vcombine.low %v1421_v44, %v1424_v33  ;;  %v1113_v52 = vrot.slane %v1111_v36, 4  ;;  %v11034_v44 = vld [vmem:[#allocation16_spill] sm:$0xff] }
 0x154   :  { %v9257_v13 = vcombine.low %v1414_v0, %v1417_v34  ;;  %v5746_v18 = vrot.slane %v8664_v6, 10  ;;  %v1112_v4 = vsel %vm8900_vm11, %v5745_v41, %v1111_v36  ;;  %v1429_v35 = vrot.slane %v1427_v19, 4 }
 0x155   :  { %11032 = vst [vmem:[#allocation35_spill] sm:$0xff] %v9259_v61  ;;  %v1120_v40 = vrot.slane %v1118_v8, 4  ;;  %v1121_v45 = vrot.slane %v11033_v31, 6  ;;  %7228 = vmatmul.mubr.msk.f32.vlgmr.msra.gmra.mrb[12].mxu1 %vm672_vm8, %v9229_v20  ;;  %v1115_v0 = vsel %vm8900_vm11, %v1113_v52, %v1114_v26  ;;  %v5780_v34 = vrot.slane %v8520_v46, 11 }
 0x156   :  { %v1434_v36 = vrot.slane %v11034_v44, 7  ;;  %v1437_v33 = vrot.slane %v8510_v39, 7  ;;  %7650 = vmatpush3.bf16.msra.mxu1 %v10985_v21  ;;  %v11035_v10 = vrot.slane %v8464_v55, 11  ;;  %v11037_v26 = vrot.slane %v11036_v37, 7  ;;  %7230 = vmatprep.mubr.msk.f32.mxu1 %vm672_vm8, %v9257_v13  ;;  %v11042_v44 = vld [vmem:[#allocation83_spill] sm:$0xff] }
 0x157   :  { %v1119_v52 = vsel %vm8900_vm11, %v5746_v18, %v1118_v8  ;;  %v1177_v41 = vcombine.low %v1112_v4, %v1115_v0  ;;  %v1122_v21 = vsel %vm8900_vm11, %v1120_v40, %v1121_v45  ;;  %7255 = vmatprep.subr.msk.mxu1 %vm705_vm4, %v6023_v51  ;;  %v11041_v8 = vld [vmem:[#allocation24_spill] sm:$0xff]  ;;  %6904 = vmatmul.mubr.msk.f32.gmra.mrb[40].mxu0 %vm672_vm8, %v11042_v44  ;;  %v11043_v4 = vld [vmem:[#allocation27_spill] sm:$0xff]  ;;  %v11044_v0 = vld [vmem:[#allocation30_spill] sm:$0xff] }
 0x158   :  { %v1428_v38 = vsel %vm9189_vm13, %v11035_v10, %v1427_v19  ;;  %v1431_v46 = vsel %vm9189_vm13, %v1429_v35, %v11037_v26  ;;  %v1435_v55 = vsel %vm9189_vm13, %v5780_v34, %v1434_v36  ;;  %v1436_v17 = vrot.slane %v1434_v36, 4  ;;  %v11039_v19 = vld [vmem:[#allocation20_spill] sm:$0xff]  ;;  %v11040_v26 = vld [vmem:[#allocation22_spill] sm:$0xff]  ;;  %v11045_v34 = vld [vmem:[#allocation39_spill] sm:$0xff] }
 0x159   :  { %v9298_v10 = vcombine.low %v1428_v38, %v1431_v46  ;;  %v5893_v35 = vrot.slane %v11039_v19, 11  ;;  %v2479_v6 = vrot.slane %v11040_v26, 7  ;;  %v3391_v18 = vrot.slane %v11041_v8, 7  ;;  %7231 = vmatmul.mubr.msk.f32.gmra.mrb[14].mxu1 %vm672_vm8, %v9259_v61  ;;  %v11046_v46 = vld [vmem:[#allocation84_spill] sm:$0xff]  ;;  %v11047_v19 = vld [vmem:[#allocation31_spill] sm:$0xff]  ;;  %v11048_v26 = vld [vmem:[#allocation38_spill] sm:$0xff] }
 0x15a   :  { %v1438_v40 = vsel %vm9189_vm13, %v1436_v17, %v1437_v33  ;;  %v2482_v45 = vrot.slane %v11043_v4, 7  ;;  %v3394_v38 = vrot.slane %v11044_v0, 7  ;;  %v1455_v36 = vrot.slane %v11045_v34, 7  ;;  %6906 = vmatprep.mubr.msk.f32.mxu0 %vm672_vm8, %v11046_v46  ;;  %v11049_v4 = vld [vmem:[#allocation44_spill] sm:$0xff]  ;;  %7256 = vmatpush3.msk.msra.mxu1 %vm705_vm4, %v6023_v51  ;;  %v11052_v61 = vld [vmem:[#allocation45_spill] sm:$0xff] }
 0x15b   :  { %11038 = vst [vmem:[#allocation41_spill] sm:$0xff] %v9298_v10  ;;  %7233 = vmatprep.mubr.msk.f32.mxu1 %vm672_vm8, %v9298_v10  ;;  %v9316_v58 = vcombine.low %v1435_v55, %v1438_v40  ;;  %v2481_v44 = vrot.slane %v2479_v6, 4  ;;  %v5999_v8 = vrot.slane %v11047_v19, 11  ;;  %v5783_v39 = vrot.slane %v11048_v26, 11  ;;  %v11050_v10 = vld [vmem:[#allocation46_spill] sm:$0xff]  ;;  %v11051_v40 = vld [vmem:[#allocation43_spill] sm:$0xff] }
 0x15c   :  { %v2480_v17 = vsel %vm9189_vm13, %v5893_v35, %v2479_v6  ;;  %v3393_v33 = vrot.slane %v3391_v18, 4  ;;  %v1457_v0 = vrot.slane %v1455_v36, 4  ;;  %v1458_v34 = vrot.slane %v11049_v4, 7  ;;  %v5789_v26 = vld [vmem:[%s10642_s3 + $0x48] sm:$0xff]  ;;  %v5790_v6 = vld [vmem:[%s10642_s3 + $0x50] sm:$0xff] }
 0x15d   :  { %v2483_v46 = vsel %vm9189_vm13, %v2481_v44, %v2482_v45  ;;  %v5784_v55 = vrot.slane %v11050_v10, 11  ;;  %v1462_v28 = vrot.slane %v11051_v40, 7  ;;  %v1465_v19 = vrot.slane %v11052_v61, 7  ;;  %v11053_v35 = vld [vmem:[#allocation86_spill] sm:$0xff]  ;;  %7234 = vmatmul.mubr.msk.f32.gmra.mrb[0].mxu1 %vm672_vm8, %v9316_v58 }
 0x15e   :  { %6907 = vmatmul.mubr.msk.f32.gmra.mrb[42].mxu0 %vm672_vm8, %v11053_v35  ;;  %v9339_v51 = vcombine.low %v2480_v17, %v2483_v46  ;;  %v3395_v44 = vsel %vm9189_vm13, %v3393_v33, %v3394_v38  ;;  %v1459_v10 = vsel %vm9189_vm13, %v1457_v0, %v1458_v34  ;;  %v1469_v45 = vrot.slane %v10981_v57, 7  ;;  %v11059_v33 = vld [vmem:[#allocation89_spill] sm:$0xff] }
 0x15f   :  { %6909 = vmatprep.mubr.msk.f32.mxu0 %vm672_vm8, %v1177_v41  ;;  %v9347_v40 = vcombine.low %v1119_v52, %v1122_v21  ;;  %v3392_v35 = vsel %vm9189_vm13, %v5999_v8, %v3391_v18  ;;  %v1456_v61 = vsel %vm9189_vm13, %v5783_v39, %v1455_v36  ;;  %v1464_v46 = vrot.slane %v1462_v28, 4  ;;  %v11057_v8 = vld [vmem:[#allocation47_spill] sm:$0xff] }
 0x160   :  { %11054 = vst [vmem:[#allocation17_spill] sm:$0xff] %v9339_v51  ;;  %7236 = vmatprep.mubr.msk.f32.mxu1 %vm672_vm8, %v9339_v51  ;;  %v9355_v38 = vcombine.low %v3392_v35, %v3395_v44  ;;  %v9357_v17 = vcombine.low %v1456_v61, %v1459_v10  ;;  %v1471_v0 = vrot.slane %v1469_v45, 4  ;;  %v7603_v34 = vpack.c.bf16 %v5790_v6, %v5789_v26 }
 0x161   :  { %11055 = vst [vmem:[#allocation38_spill] sm:$0xff] %v9347_v40  ;;  %v1463_v41 = vsel %vm9189_vm13, %v5784_v55, %v1462_v28  ;;  %v1466_v52 = vsel %vm9189_vm13, %v1464_v46, %v1465_v19  ;;  %v1476_v21 = vrot.slane %v10986_v48, 7  ;;  %v1479_v39 = vrot.slane %v10998_v47, 7  ;;  %v11061_v46 = vld [vmem:[#allocation53_spill] sm:$0xff] }
 0x162   :  { %11056 = vst [vmem:[#allocation44_spill] sm:$0xff] %v9355_v38  ;;  %v5785_v18 = vrot.slane %v11057_v8, 11  ;;  %6910 = vmatmul.mubr.msk.f32.gmra.mrb[44].mxu0 %vm672_vm8, %v9347_v40  ;;  %7237 = vmatmul.mubr.msk.f32.gmra.mrb[2].mxu1 %vm672_vm8, %v9355_v38  ;;  %v11058_v61 = vrot.slane %v8708_v7, 7  ;;  %v1385_v36 = vrot.slane %v8358_v2, 7  ;;  %v1486_v19 = vrot.slane %v8760_v30, 7  ;;  %v11063_v40 = vld [vmem:[#allocation55_spill] sm:$0xff] }
 0x163   :  { %6912 = vmatprep.mubr.msk.f32.mxu0 %vm672_vm8, %v11059_v33  ;;  %7239 = vmatprep.mubr.msk.f32.mxu1 %vm672_vm8, %v9357_v17  ;;  %v1478_v55 = vrot.slane %v1476_v21, 4  ;;  %v1483_v26 = vrot.slane %v10991_v42, 7  ;;  %v11060_v6 = vrot.slane %v11008_v27, 7  ;;  %v9383_v44 = vcombine.low %v1463_v41, %v1466_v52  ;;  %v5791_v38 = vld [vmem:[%s10642_s3 + $0x58] sm:$0xf]  ;;  %v11062_v52 = vld [vmem:[#allocation51_spill] sm:$0xff] }
 0x164   :  { %v1473_v28 = vsel %vm9189_vm13, %v1471_v0, %v11058_v61  ;;  %v1470_v10 = vsel %vm9189_vm13, %v5785_v18, %v1469_v45  ;;  %7604 = vmatprep.subr.bf16.mxu0 %v7603_v34  ;;  %v5786_v0 = vrot.slane %v11061_v46, 11  ;;  %v5788_v41 = vrot.slane %v10995_v15, 11  ;;  %v11064_v45 = vld [vmem:[#allocation6_spill] sm:$0xff] }
 0x165   :  { %v1394_v35 = vrot.slane %v11060_v6, 4  ;;  %v9388_v8 = vcombine.low %v1470_v10, %v1473_v28  ;;  %7606 = vmatpush3.bf16.msra.mxu0 %v7603_v34  ;;  %v1480_v61 = vsel %vm9189_vm13, %v1478_v55, %v1479_v39  ;;  %v1485_v33 = vrot.slane %v1483_v26, 4  ;;  %v11065_v28 = vld [vmem:[#allocation56_spill] sm:$0xff]  ;;  %v11066_v55 = vld [vmem:[#allocation90_spill] sm:$0xff]  ;;  %v11067_v10 = vld [vmem:[#allocation7_spill] sm:$0xff] }
 0x166   :  { %v5787_v6 = vrot.slane %v11062_v52, 11  ;;  %6913 = vmatmul.mubr.msk.f32.gmra.mrb[46].mxu0 %vm672_vm8, %v11063_v40  ;;  %7240 = vmatmul.mubr.msk.f32.gmra.mrb[4].mxu1 %vm672_vm8, %v9383_v44  ;;  %v5773_v34 = vrot.slane %v11064_v45, 11  ;;  %v1387_v18 = vrot.slane %v1385_v36, 4  ;;  %v1490_v39 = vrot.slane %v11065_v28, 7  ;;  %v6041_v45 = vld [vmem:[%s10642_s3 + $0x168] sm:$0xff] }
 0x167   :  { %6915 = vmatprep.mubr.msk.f32.mxu0 %vm672_vm8, %v11066_v55  ;;  %7242 = vmatprep.mubr.msk.f32.mxu1 %vm672_vm8, %v9388_v8  ;;  %v1477_v15 = vsel %vm9189_vm13, %v5786_v0, %v1476_v21  ;;  %v1388_v46 = vrot.slane %v11067_v10, 7  ;;  %v1487_v52 = vsel %vm9189_vm13, %v1485_v33, %v1486_v19  ;;  %v1493_v51 = vrot.slane %v11015_v63, 7  ;;  %v6042_v55 = vld [vmem:[%s10642_s3 + $0x170] sm:$0xff] }
 0x168   :  { %v9419_v40 = vcombine.low %v1477_v15, %v1480_v61  ;;  %v1484_v21 = vsel %vm9189_vm13, %v5787_v6, %v1483_v26  ;;  %6925 = vmatprep.subr.msk.mxu0 %vm705_vm4, %v5791_v38  ;;  %v11068_v0 = vld [vmem:[#allocation11_spill] sm:$0xff]  ;;  %v1492_v19 = vrot.slane %v1490_v39, 4  ;;  %v1491_v10 = vsel %vm9189_vm13, %v5788_v41, %v1490_v39  ;;  %v11069_v41 = vld [vmem:[#allocation10_spill] sm:$0xff] }
 0x169   :  { %v1395_v2 = vrot.slane %v11068_v0, 7  ;;  %v9425_v33 = vcombine.low %v1484_v21, %v1487_v52  ;;  %6926 = vmatpush3.msk.msra.mxu0 %vm705_vm4, %v5791_v38  ;;  %v2486_v28 = vrot.slane %v11019_v49, 7  ;;  %v3398_v61 = vrot.slane %v8819_v56, 7 }
 0x16a   :  { %6916 = vmatmul.mubr.msk.f32.gmra.mrb[48].mxu0 %vm672_vm8, %v9156_v14  ;;  %7243 = vmatmul.mubr.msk.f32.gmra.mrb[6].mxu1 %vm672_vm8, %v9419_v40  ;;  %v1389_v26 = vsel %vm9189_vm13, %v1387_v18, %v1388_v46  ;;  %v1494_v6 = vsel %vm9189_vm13, %v1492_v19, %v1493_v51  ;;  %v3401_v38 = vrot.slane %v8848_v62, 7  ;;  %v7651_v15 = vpack.c.bf16 %v6042_v55, %v6041_v45 }
 0x16b   :  { %v5774_v39 = vrot.slane %v11069_v41, 11  ;;  %6918 = vmatprep.mubr.msk.f32.mxu0 %vm672_vm8, %v9158_v43  ;;  %7245 = vmatprep.mubr.msk.f32.mxu1 %vm672_vm8, %v9425_v33  ;;  %v5894_v52 = vrot.slane %v8796_v60, 11  ;;  %v2488_v21 = vrot.slane %v2486_v28, 4  ;;  %v2489_v14 = vrot.slane %v8794_v23, 7 }
 0x16c   :  { %v1386_v18 = vsel %vm9189_vm13, %v5773_v34, %v1385_v36  ;;  %v1396_v51 = vsel %vm9189_vm13, %v1394_v35, %v1395_v2  ;;  %v9452_v55 = vcombine.low %v1491_v10, %v1494_v6  ;;  %v3400_v46 = vrot.slane %v3398_v61, 4  ;;  %7652 = vmatprep.subr.bf16.mxu1 %v7651_v15  ;;  %v5810_v6 = vld [vmem:[%s10642_s3 + $0x68] sm:$0xff] }
 0x16d   :  { %v1499_v45 = vcombine.low %v1386_v18, %v1389_v26  ;;  %v2487_v19 = vsel %vm9189_vm13, %v5894_v52, %v2486_v28  ;;  %v2490_v41 = vsel %vm9189_vm13, %v2488_v21, %v2489_v14  ;;  %v6000_v43 = vrot.slane %v11020_v25, 11  ;;  %v5809_v26 = vld [vmem:[%s10642_s3 + $0x60] sm:$0xff] }
 0x16e   :  { %6919 = vmatmul.mubr.msk.f32.gmra.mrb[50].mxu0 %vm672_vm8, %v9182_v53  ;;  %7246 = vmatmul.mubr.msk.f32.gmra.mrb[8].mxu1 %vm672_vm8, %v9452_v55  ;;  %v9463_v2 = vcombine.low %v2487_v19, %v2490_v41  ;;  %v3402_v36 = vsel %vm9189_vm13, %v3400_v46, %v3401_v38  ;;  %v11071_v35 = vrot.slane %v11008_v27, 7  ;;  %v9488_v38 = vcombine.low %v8383_v16, %v8388_v22  ;;  %v6043_v22 = vld [vmem:[%s10642_s3 + $0x178] sm:$0xf]  ;;  %v11076_v41 = vld [vmem:[#allocation26_spill] sm:$0xff] }
 0x16f   :  { %6927 = vmatprep.mubr.msk.f32.mxu0 %vm672_vm8, %v1499_v45  ;;  %v3399_v34 = vsel %vm9189_vm13, %v6000_v43, %v3398_v61  ;;  %v1441_v43 = vrot.slane %v8622_v50, 7  ;;  %v7607_v61 = vpack.c.bf16 %v5810_v6, %v5809_v26  ;;  %v1448_v16 = vrot.slane %v8640_v3, 7  ;;  %v11079_v6 = vld [vmem:[#allocation41_spill] sm:$0xff] }
 0x170   :  { %11070 = vst [vmem:[#allocation46_spill] sm:$0xff] %v9463_v2  ;;  %v1393_v14 = vsel %vm9189_vm13, %v5774_v39, %v11071_v35  ;;  %7248 = vmatprep.mubr.msk.f32.mxu1 %vm672_vm8, %v9463_v2  ;;  %v9478_v10 = vcombine.low %v3399_v34, %v3402_v36  ;;  %11074 = vst [vmem:[#allocation51_spill] sm:$0xff] %v9488_v38  ;;  %v9501_v39 = vcombine.low %v8405_v32, %v8447_v54  ;;  %v6063_v32 = vld [vmem:[%s10642_s3 + $0x180] sm:$0xff]  ;;  %v6064_v54 = vld [vmem:[%s10642_s3 + $0x188] sm:$0xff] }
 0x171   :  { %v9474_v28 = vcombine.low %v1393_v14, %v1396_v51  ;;  %7608 = vmatprep.subr.bf16.mxu0 %v7607_v61  ;;  %v9513_v52 = vcombine.low %v8462_v11, %v8458_v9  ;;  %v1443_v21 = vrot.slane %v1441_v43, 4  ;;  %v9527_v9 = vcombine.low %v8466_v12, %v8481_v24  ;;  %v5829_v12 = vld [vmem:[%s10642_s3 + $0x78] sm:$0xff]  ;;  %v5830_v24 = vld [vmem:[%s10642_s3 + $0x80] sm:$0xff]  ;;  %v11077_v35 = vld [vmem:[#allocation35_spill] sm:$0xff] }
 0x172   :  { %11073 = vst [vmem:[#allocation53_spill] sm:$0xff] %v9478_v10  ;;  %7249 = vmatmul.mubr.msk.f32.gmra.mrb[10].mxu1 %vm672_vm8, %v9478_v10  ;;  %v1444_v11 = vrot.slane %v11031_v5, 7  ;;  %v9533_v18 = vcombine.low %v8492_v29, %v11036_v37  ;;  %v1450_v51 = vrot.slane %v1448_v16, 4  ;;  %v1451_v46 = vrot.slane %v11033_v31, 7  ;;  %v9550_v29 = vld [vmem:[%s10641_s2] ss:$0 sm:$0xff] }
 0x173   :  { %11072 = vst [vmem:[#allocation47_spill] sm:$0xff] %v9474_v28  ;;  %6928 = vmatmul.mubr.msk.f32.vlgmr.msra.gmra.mrb[36].mxu0 %vm672_vm8, %v9474_v28  ;;  %7257 = vmatprep.mubr.msk.f32.mxu1 %vm672_vm8, %v9488_v38  ;;  %v9539_v45 = vpack.c.bf16 %v6064_v54, %v6063_v32  ;;  %v11075_v37 = vld [vmem:[#allocation25_spill] sm:$0xff]  ;;  %v328_v36 = vadd.f32 %v9550_v29, %v11076_v41  ;;  %v11080_v32 = vld [vmem:[#allocation18_spill] sm:$0xff]  ;;  %v11081_v54 = vld [vmem:[#allocation16_spill] sm:$0xff] }
 0x174   :  { %6930 = vmatprep.mubr.msk.f32.mxu0 %vm672_vm8, %v9226_v1  ;;  %7610 = vmatpush3.bf16.msra.mxu0 %v7607_v61  ;;  %v333_v19 = vadd.f32 %v9550_v29, %v11075_v37  ;;  %v11078_v14 = vld [vmem:[#allocation33_spill] sm:$0xff]  ;;  %v1445_v26 = vsel %vm9189_vm13, %v1443_v21, %v1444_v11  ;;  %v9571_v37 = vcombine.low %v11081_v54, %v11080_v32  ;;  %v11082_v21 = vld [vmem:[#allocation42_spill] sm:$0xff]  ;;  %v11083_v10 = vld [vmem:[#allocation27_spill] sm:$0xff] }
 0x175   :  { %v5781_v34 = vrot.slane %v11078_v14, 11  ;;  %v7611_v41 = vpack.c.bf16 %v5830_v24, %v5829_v12  ;;  %v5782_v11 = vrot.slane %v11082_v21, 11  ;;  %v1452_v1 = vsel %vm9189_vm13, %v1450_v51, %v1451_v46  ;;  %v11084_v28 = vld [vmem:[#allocation22_spill] sm:$0xff]  ;;  %v11088_v24 = vld [vmem:[#allocation39_spill] sm:$0xff] }
 0x176   :  { %7258 = vmatmul.mubr.msk.f32.vlgmr.msra.gmra.mrb[12].mxu1 %vm672_vm8, %v9501_v39  ;;  %v9580_v2 = vcombine.low %v11084_v28, %v11083_v10  ;;  %v11086_v46 = vld [vmem:[#allocation30_spill] sm:$0xff]  ;;  %v9652_v21 = vcombine.low %v10991_v42, %v8760_v30  ;;  %v11099_v30 = vld [vmem:[#allocation56_spill] sm:$0xff]  ;;  %v9811_v42 = vcombine.low %v11020_v25, %v8819_v56  ;;  %v11128_v25 = vld [vmem:[#allocation19_spill] sm:$0xff] }
 0x177   :  { %6931 = vmatmul.mubr.msk.f32.gmra.mrb[38].mxu0 %vm672_vm8, %v9229_v20  ;;  %7654 = vmatpush3.bf16.msra.mxu1 %v7651_v15  ;;  %v5811_v15 = vld [vmem:[%s10642_s3 + $0x70] sm:$0xf]  ;;  %v1442_v61 = vsel %vm9189_vm13, %v5781_v34, %v1441_v43  ;;  %v9584_v43 = vmax.f32 %v333_v19, 0.0  ;;  %v1449_v10 = vsel %vm9189_vm13, %v5782_v11, %v1448_v16  ;;  %v9605_v19 = vcombine.low %v11088_v24, %v11049_v4 }
 0x178   :  { %6933 = vmatprep.mubr.msk.f32.mxu0 %vm672_vm8, %v9257_v13  ;;  %7260 = vmatprep.mubr.msk.f32.mxu1 %vm672_vm8, %v9513_v52  ;;  %v1507_v14 = vcombine.low %v1442_v61, %v1445_v26  ;;  %v9597_v51 = vcombine.low %v1449_v10, %v1452_v1  ;;  %v11092_v1 = vld [vmem:[#allocation45_spill] sm:$0xff]  ;;  %v11093_v4 = vld [vmem:[#allocation43_spill] sm:$0xff]  ;;  %v9629_v26 = vcombine.low %v10981_v57, %v8708_v7  ;;  %v11102_v10 = vld [vmem:[#allocation8_spill] sm:$0xff] }
 0x179   :  { %7285 = vmatprep.subr.msk.mxu1 %vm705_vm4, %v6043_v22  ;;  %6955 = vmatprep.subr.msk.mxu0 %vm705_vm4, %v5811_v15  ;;  %11085 = vst [vmem:[#allocation6_spill] sm:$0xff] %v9584_v43  ;;  %11089 = vst [vmem:[#allocation11_spill] sm:$0xff] %v9605_v19  ;;  %v9625_v34 = vcombine.low %v11093_v4, %v11092_v1  ;;  %v5215_v32 = vrot.slane %v9584_v43, 7  ;;  %v9644_v57 = vcombine.low %v10986_v48, %v10998_v47  ;;  %v11101_v47 = vld [vmem:[#allocation7_spill] sm:$0xff]  ;;  %v11105_v4 = vld [vmem:[#allocation70_spill] sm:$0xff] }
 0x17a   :  { %7261 = vmatmul.mubr.msk.f32.gmra.mrb[14].mxu1 %vm672_vm8, %v9527_v9  ;;  %6956 = vmatpush3.msk.msra.mxu0 %vm705_vm4, %v5811_v15  ;;  %v11087_v15 = vld [vmem:[#allocation24_spill] sm:$0xff]  ;;  %11094 = vst [vmem:[#allocation26_spill] sm:$0xff] %v9629_v26  ;;  %11097 = vst [vmem:[#allocation41_spill] sm:$0xff] %v9652_v21  ;;  %v9670_v48 = vcombine.low %v11099_v30, %v11015_v63  ;;  %v9676_v24 = vcombine.low %v11019_v49, %v8794_v23  ;;  %v5831_v23 = vld [vmem:[%s10642_s3 + $0x88] sm:$0xf] }
 0x17b   :  { %6934 = vmatmul.mubr.msk.f32.gmra.mrb[40].mxu0 %vm672_vm8, %v11077_v35  ;;  %7263 = vmatprep.mubr.msk.f32.mxu1 %vm672_vm8, %v9533_v18  ;;  %v9601_v12 = vcombine.low %v11087_v15, %v11086_v46  ;;  %11095 = vst [vmem:[#allocation35_spill] sm:$0xff] %v9644_v57  ;;  %v1715_v46 = vcombine.low %v11102_v10, %v11101_v47  ;;  %v11108_v47 = vld [vmem:[#allocation76_spill] sm:$0xff]  ;;  %11124 = vst [vmem:[#allocation43_spill] sm:$0xff] %v9811_v42 }
 0x17c   :  { %6936 = vmatprep.mubr.msk.f32.mxu0 %vm672_vm8, %v11079_v6  ;;  %7286 = vmatpush3.msk.msra.mxu1 %vm705_vm4, %v6043_v22  ;;  %v9586_v22 = vmax.f32 %v328_v36, 0.0  ;;  %v9609_v36 = vcombine.high %v9584_v43, %v9584_v43  ;;  %11100 = vst [vmem:[#allocation16_spill] sm:$0xff] %v9670_v48  ;;  %11103 = vst [vmem:[#allocation42_spill] sm:$0xff] %v9676_v24  ;;  %v9687_v63 = vcombine.low %v11008_v27, %v11068_v0  ;;  %v11106_v27 = vld [vmem:[#allocation21_spill] sm:$0xff]  ;;  %v6065_v0 = vld [vmem:[%s10642_s3 + $0x190] sm:$0xf] }
 0x17d   :  { %7656 = vmatprep.subr.bf16.mxu1 %v9539_v45  ;;  %7612 = vmatprep.subr.bf16.mxu0 %v7611_v41  ;;  %v9691_v1 = vcombine.low %v8819_v56, %v8848_v62  ;;  %v323_v62 = vadd.f32 %v9550_v29, %v11106_v27  ;;  %v11109_v27 = vld [vmem:[#allocation77_spill] sm:$0xff] }
 0x17e   :  { %7264 = vmatmul.mubr.msk.f32.gmra.mrb[0].mxu1 %vm672_vm8, %v9571_v37  ;;  %11090 = vst [vmem:[#allocation10_spill] sm:$0xff] %v9609_v36  ;;  %v9613_v16 = vcombine.high %v9586_v22, %v9586_v22  ;;  %v5218_v54 = vrot.slane %v9609_v36, 7  ;;  %v5853_v56 = vld [vmem:[%s10642_s3 + $0xa0] sm:$0xf]  ;;  %v5873_v36 = vld [vmem:[%s10642_s3 + $0xa8] sm:$0xff]  ;;  %v3930_v43 = vrot.slane %v9586_v22, 5 }
 0x17f   :  { %6937 = vmatmul.mubr.msk.f32.gmra.mrb[42].mxu0 %vm672_vm8, %v9316_v58  ;;  %7266 = vmatprep.mubr.msk.f32.mxu1 %vm672_vm8, %v9580_v2  ;;  %11104 = vst [vmem:[#allocation27_spill] sm:$0xff] %v9691_v1  ;;  %v9729_v30 = vmax.f32 %v323_v62, 0.0 }
 0x180   :  { %6939 = vmatprep.mubr.msk.f32.mxu0 %vm672_vm8, %v1507_v14  ;;  %11091 = vst [vmem:[#allocation25_spill] sm:$0xff] %v9613_v16  ;;  %v6211_v61 = vrot.slane %v9613_v16, 11  ;;  %v5217_v14 = vrot.slane %v5215_v32, 4 }
 0x181   :  { %v9745_v62 = vcombine.high %v9729_v30, %v9729_v30 }
 0x182   :  { %7267 = vmatmul.mubr.msk.f32.gmra.mrb[2].mxu1 %vm672_vm8, %v9601_v12  ;;  %v9648_v7 = vsel %vm9189_vm13, %v6211_v61, %v5215_v32  ;;  %v9660_v11 = vsel %vm9189_vm13, %v5217_v14, %v5218_v54  ;;  %v5851_v61 = vld [vmem:[%s10642_s3 + $0x90] sm:$0xff]  ;;  %v5852_v32 = vld [vmem:[%s10642_s3 + $0x98] sm:$0xff]  ;;  %v6086_v14 = vld [vmem:[%s10642_s3 + $0x1a0] sm:$0xff] }
 0x183   :  { %6940 = vmatmul.mubr.msk.f32.gmra.mrb[44].mxu0 %vm672_vm8, %v9597_v51  ;;  %7269 = vmatprep.mubr.msk.f32.mxu1 %vm672_vm8, %v9605_v19  ;;  %11096 = vst [vmem:[#allocation33_spill] sm:$0xff] %v9648_v7  ;;  %11098 = vst [vmem:[#allocation18_spill] sm:$0xff] %v9660_v11  ;;  %v11107_v54 = vld [vmem:[#allocation71_spill] sm:$0xff]  ;;  %v7615_v10 = vpack.c.bf16 %v5852_v32, %v5851_v61  ;;  %v11111_v61 = vld [vmem:[#allocation20_spill] sm:$0xff]  ;;  %v1723_v32 = vcombine.low %v8622_v50, %v11031_v5 }
 0x184   :  { %6942 = vmatprep.mubr.msk.f32.mxu0 %vm672_vm8, %v9357_v17  ;;  %v9771_v50 = vcombine.low %v9729_v30, %v9745_v62  ;;  %v11117_v5 = vld [vmem:[#allocation87_spill] sm:$0xff]  ;;  %v11125_v11 = vld [vmem:[#allocation66_spill] sm:$0xff] }
 0x185   :  { %v6087_v7 = vld [vmem:[%s10642_s3 + $0x1a8] sm:$0xf] }
 0x186   :  { %7270 = vmatmul.mubr.msk.f32.gmra.mrb[4].mxu1 %vm672_vm8, %v9625_v34  ;;  %11116 = vst [vmem:[#allocation39_spill] sm:$0xff] %v9771_v50 }
 0x187   :  { %6943 = vmatmul.mubr.msk.f32.gmra.mrb[46].mxu0 %vm672_vm8, %v9383_v44  ;;  %7272 = vmatprep.mubr.msk.f32.mxu1 %vm672_vm8, %v9629_v26 }
 0x188   :  { %6945 = vmatprep.mubr.msk.f32.mxu0 %vm672_vm8, %v9388_v8 }
 0x18a   :  { %7273 = vmatmul.mubr.msk.f32.gmra.mrb[6].mxu1 %vm672_vm8, %v9644_v57 }
 0x18b   :  { %6946 = vmatmul.mubr.msk.f32.gmra.mrb[48].mxu0 %vm672_vm8, %v9419_v40  ;;  %7275 = vmatprep.mubr.msk.f32.mxu1 %vm672_vm8, %v9652_v21 }
 0x18c   :  { %6948 = vmatprep.mubr.msk.f32.mxu0 %vm672_vm8, %v9425_v33 }
 0x18e   :  { %7276 = vmatmul.mubr.msk.f32.gmra.mrb[8].mxu1 %vm672_vm8, %v9670_v48 }
 0x18f   :  { %6949 = vmatmul.mubr.msk.f32.gmra.mrb[50].mxu0 %vm672_vm8, %v9452_v55  ;;  %7278 = vmatprep.mubr.msk.f32.mxu1 %vm672_vm8, %v9676_v24 }
 0x190   :  { %6957 = vmatprep.mubr.msk.f32.mxu0 %vm672_vm8, %v1715_v46 }
 0x192   :  { %7279 = vmatmul.mubr.msk.f32.gmra.mrb[10].mxu1 %vm672_vm8, %v9691_v1 }
 0x193   :  { %6958 = vmatmul.mubr.msk.f32.vlgmr.msra.gmra.mrb[36].mxu0 %vm672_vm8, %v9687_v63  ;;  %7287 = vmatprep.mubr.msk.f32.mxu1 %vm672_vm8, %v11105_v4 }
 0x194   :  { %6960 = vmatprep.mubr.msk.f32.mxu0 %vm672_vm8, %v9488_v38  ;;  %7614 = vmatpush3.bf16.msra.mxu0 %v7611_v41  ;;  %v6085_v41 = vld [vmem:[%s10642_s3 + $0x198] sm:$0xff] }
 0x195   :  { %6985 = vmatprep.subr.msk.mxu0 %vm705_vm4, %v5831_v23  ;;  %v7659_v46 = vpack.c.bf16 %v6086_v14, %v6085_v41  ;;  %v11113_v41 = vld [vmem:[#allocation31_spill] sm:$0xff] }
 0x196   :  { %7288 = vmatmul.mubr.msk.f32.vlgmr.msra.gmra.mrb[12].mxu1 %vm672_vm8, %v11107_v54  ;;  %v9756_v14 = vcombine.low %v11113_v41, %v11087_v15  ;;  %v11118_v15 = vld [vmem:[#allocation61_spill] sm:$0xff]  ;;  %v11122_v41 = vld [vmem:[#allocation58_spill] sm:$0xff] }
 0x197   :  { %6961 = vmatmul.mubr.msk.f32.gmra.mrb[38].mxu0 %vm672_vm8, %v9501_v39  ;;  %7658 = vmatpush3.bf16.msra.mxu1 %v9539_v45  ;;  %v11110_v45 = vld [vmem:[#allocation79_spill] sm:$0xff] }
 0x198   :  { %6963 = vmatprep.mubr.msk.f32.mxu0 %vm672_vm8, %v9513_v52  ;;  %7290 = vmatprep.mubr.msk.f32.mxu1 %vm672_vm8, %v11108_v47  ;;  %11114 = vst [vmem:[#allocation30_spill] sm:$0xff] %v9756_v14 }
 0x199   :  { %7315 = vmatprep.subr.msk.mxu1 %vm705_vm4, %v6065_v0  ;;  %6986 = vmatpush3.msk.msra.mxu0 %vm705_vm4, %v5831_v23  ;;  %v9749_v23 = vcombine.low %v11111_v61, %v11084_v28  ;;  %v9767_v28 = vcombine.low %v8640_v3, %v11033_v31  ;;  %v413_v3 = vadd.f32 %v9550_v29, %v11118_v15  ;;  %v11119_v31 = vld [vmem:[#allocation48_spill] sm:$0xff] }
 0x19a   :  { %7291 = vmatmul.mubr.msk.f32.gmra.mrb[14].mxu1 %vm672_vm8, %v11109_v27  ;;  %7616 = vmatprep.subr.bf16.mxu0 %v7615_v10 }
 0x19b   :  { %6964 = vmatmul.mubr.msk.f32.gmra.mrb[40].mxu0 %vm672_vm8, %v9527_v9  ;;  %7293 = vmatprep.mubr.msk.f32.mxu1 %vm672_vm8, %v11110_v45  ;;  %11112 = vst [vmem:[#allocation22_spill] sm:$0xff] %v9749_v23  ;;  %11115 = vst [vmem:[#allocation24_spill] sm:$0xff] %v9767_v28  ;;  %v9791_v61 = vmax.f32 %v413_v3, 0.0  ;;  %v9807_v3 = vcombine.low %v8796_v60, %v11019_v49  ;;  %v11127_v49 = vld [vmem:[#allocation69_spill] sm:$0xff] }
 0x19c   :  { %6966 = vmatprep.mubr.msk.f32.mxu0 %vm672_vm8, %v9533_v18  ;;  %7316 = vmatpush3.msk.msra.mxu1 %vm705_vm4, %v6065_v0  ;;  %v11120_v0 = vld [vmem:[#allocation14_spill] sm:$0xff] }
 0x19d   :  { %7660 = vmatprep.subr.bf16.mxu1 %v7659_v46  ;;  %v9803_v15 = vcombine.high %v9791_v61, %v9791_v61  ;;  %11123 = vst [vmem:[#allocation45_spill] sm:$0xff] %v9807_v3 }
 0x19e   :  { %7294 = vmatmul.mubr.msk.f32.gmra.mrb[0].mxu1 %vm672_vm8, %v9749_v23 }
 0x19f   :  { %6967 = vmatmul.mubr.msk.f32.gmra.mrb[42].mxu0 %vm672_vm8, %v9571_v37  ;;  %7296 = vmatprep.mubr.msk.f32.mxu1 %vm672_vm8, %v9756_v14  ;;  %v9823_v60 = vcombine.low %v9791_v61, %v9803_v15  ;;  %v11136_v14 = vld [vmem:[#allocation40_spill] sm:$0xff] }
 0x1a0   :  { %6969 = vmatprep.mubr.msk.f32.mxu0 %vm672_vm8, %v1723_v32  ;;  %v11121_v32 = vld [vmem:[#allocation54_spill] sm:$0xff] }
 0x1a1   :  { %11126 = vst [vmem:[#allocation56_spill] sm:$0xff] %v9823_v60 }
 0x1a2   :  { %7297 = vmatmul.mubr.msk.f32.gmra.mrb[2].mxu1 %vm672_vm8, %v9771_v50 }
 0x1a3   :  { %6970 = vmatmul.mubr.msk.f32.gmra.mrb[44].mxu0 %vm672_vm8, %v9767_v28  ;;  %7299 = vmatprep.mubr.msk.f32.mxu1 %vm672_vm8, %v11117_v5  ;;  %v11131_v28 = vld [vmem:[#allocation29_spill] sm:$0xff] }
 0x1a4   :  { %6972 = vmatprep.mubr.msk.f32.mxu0 %vm672_vm8, %v9605_v19 }
 0x1a6   :  { %7300 = vmatmul.mubr.msk.f32.gmra.mrb[4].mxu1 %vm672_vm8, %v11119_v31 }
 0x1a7   :  { %6973 = vmatmul.mubr.msk.f32.gmra.mrb[46].mxu0 %vm672_vm8, %v9625_v34  ;;  %7302 = vmatprep.mubr.msk.f32.mxu1 %vm672_vm8, %v11120_v0 }
 0x1a8   :  { %6975 = vmatprep.mubr.msk.f32.mxu0 %vm672_vm8, %v9629_v26 }
 0x1aa   :  { %7303 = vmatmul.mubr.msk.f32.gmra.mrb[6].mxu1 %vm672_vm8, %v11121_v32 }
 0x1ab   :  { %6976 = vmatmul.mubr.msk.f32.gmra.mrb[48].mxu0 %vm672_vm8, %v9644_v57  ;;  %7305 = vmatprep.mubr.msk.f32.mxu1 %vm672_vm8, %v11122_v41 }
 0x1ac   :  { %6978 = vmatprep.mubr.msk.f32.mxu0 %vm672_vm8, %v9652_v21 }
 0x1ae   :  { %7306 = vmatmul.mubr.msk.f32.gmra.mrb[8].mxu1 %vm672_vm8, %v9807_v3 }
 0x1af   :  { %6979 = vmatmul.mubr.msk.f32.gmra.mrb[50].mxu0 %vm672_vm8, %v9670_v48  ;;  %7308 = vmatprep.mubr.msk.f32.mxu1 %vm672_vm8, %v9811_v42  ;;  %v11130_v42 = vld [vmem:[#allocation28_spill] sm:$0xff] }
 0x1b0   :  { %6987 = vmatprep.mubr.msk.f32.mxu0 %vm672_vm8, %v11125_v11  ;;  %v3927_v11 = vrot.slane %v9745_v62, 5 }
 0x1b2   :  { %7309 = vmatmul.mubr.msk.f32.gmra.mrb[10].mxu1 %vm672_vm8, %v9823_v60  ;;  %v6107_v60 = vld [vmem:[%s10642_s3 + $0x1b0] sm:$0xff]  ;;  %v3929_v16 = vrot.slane %v3927_v11, 4 }
 0x1b3   :  { %6988 = vmatmul.mubr.msk.f32.vlgmr.msra.gmra.mrb[36].mxu0 %vm672_vm8, %v11127_v49  ;;  %7317 = vmatprep.mubr.msk.f32.mxu1 %vm672_vm8, %v11128_v25  ;;  %v6108_v49 = vld [vmem:[%s10642_s3 + $0x1b8] sm:$0xff] }
 0x1b4   :  { %6990 = vmatprep.mubr.msk.f32.mxu0 %vm672_vm8, %v11105_v4  ;;  %7618 = vmatpush3.bf16.msra.mxu0 %v7615_v10  ;;  %v5874_v4 = vld [vmem:[%s10642_s3 + $0xb0] sm:$0xff]  ;;  %v9864_v50 = vpack.c.bf16 %v6108_v49, %v6107_v60  ;;  %v3931_v60 = vsel %vm8376_vm7, %v3929_v16, %v3930_v43  ;;  %v11134_v49 = vld [vmem:[#allocation36_spill] sm:$0xff] }
 0x1b5   :  { %7015 = vmatprep.subr.msk.mxu0 %vm705_vm4, %v5853_v56  ;;  %v11129_v10 = vld [vmem:[#allocation23_spill] sm:$0xff]  ;;  %v7619_v19 = vpack.c.bf16 %v5874_v4, %v5873_v36  ;;  %v6061_v36 = vrot.slane %v9729_v30, 9  ;;  %v11138_v43 = vld [vmem:[#allocation68_spill] sm:$0xff]  ;;  %v6127_v4 = vld [vmem:[%s10642_s3 + $0x1c8] sm:$0xff] }
 0x1b6   :  { %7318 = vmatmul.mubr.msk.f32.vlgmr.msra.gmra.mrb[12].mxu1 %vm672_vm8, %v11129_v10  ;;  %v418_v16 = vadd.f32 %v9550_v29, %v11138_v43 }
 0x1b7   :  { %6991 = vmatmul.mubr.msk.f32.gmra.mrb[38].mxu0 %vm672_vm8, %v11107_v54  ;;  %7662 = vmatpush3.bf16.msra.mxu1 %v7659_v46  ;;  %v11132_v46 = vld [vmem:[#allocation32_spill] sm:$0xff] }
 0x1b8   :  { %6993 = vmatprep.mubr.msk.f32.mxu0 %vm672_vm8, %v11108_v47  ;;  %7320 = vmatprep.mubr.msk.f32.mxu1 %vm672_vm8, %v11130_v42  ;;  %v11153_v47 = vld [vmem:[#allocation15_spill] sm:$0xff] }
 0x1b9   :  { %7345 = vmatprep.subr.msk.mxu1 %vm705_vm4, %v6087_v7  ;;  %7016 = vmatpush3.msk.msra.mxu0 %vm705_vm4, %v5853_v56  ;;  %v11135_v56 = vld [vmem:[#allocation82_spill] sm:$0xff] }
 0x1ba   :  { %7321 = vmatmul.mubr.msk.f32.gmra.mrb[14].mxu1 %vm672_vm8, %v11131_v28  ;;  %7620 = vmatprep.subr.bf16.mxu0 %v7619_v19 }
 0x1bb   :  { %6994 = vmatmul.mubr.msk.f32.gmra.mrb[40].mxu0 %vm672_vm8, %v11109_v27  ;;  %7323 = vmatprep.mubr.msk.f32.mxu1 %vm672_vm8, %v11132_v46  ;;  %v11139_v27 = vld [vmem:[#allocation85_spill] sm:$0xff] }
 0x1bc   :  { %6996 = vmatprep.mubr.msk.f32.mxu0 %vm672_vm8, %v11110_v45  ;;  %7346 = vmatpush3.msk.msra.mxu1 %vm705_vm4, %v6087_v7  ;;  %v3928_v7 = vsel %vm8376_vm7, %v6061_v36, %v3927_v11  ;;  %v3934_v11 = vrot.slane %v9803_v15, 5  ;;  %v11141_v36 = vld [vmem:[#allocation59_spill] sm:$0xff] }
 0x1bd   :  { %7664 = vmatprep.subr.bf16.mxu1 %v9864_v50  ;;  %v9889_v45 = vcombine.low %v3928_v7, %v3931_v60  ;;  %v11142_v60 = vld [vmem:[#allocation63_spill] sm:$0xff]  ;;  %v11143_v7 = vld [vmem:[#allocation65_spill] sm:$0xff] }
 0x1be   :  { %7324 = vmatmul.mubr.msk.f32.gmra.mrb[0].mxu1 %vm672_vm8, %v11134_v49  ;;  %v423_v43 = vadd.f32 %v9550_v29, %v11143_v7  ;;  %v11147_v7 = vld [vmem:[#allocation73_spill] sm:$0xff] }
 0x1bf   :  { %6997 = vmatmul.mubr.msk.f32.gmra.mrb[42].mxu0 %vm672_vm8, %v9749_v23  ;;  %7326 = vmatprep.mubr.msk.f32.mxu1 %vm672_vm8, %v11136_v14  ;;  %11137 = vst [vmem:[#allocation7_spill] sm:$0xff] %v9889_v45  ;;  %v9901_v14 = vmax.f32 %v418_v16, 0.0 }
 0x1c0   :  { %6999 = vmatprep.mubr.msk.f32.mxu0 %vm672_vm8, %v11135_v56  ;;  %v11140_v56 = vld [vmem:[#allocation57_spill] sm:$0xff] }
 0x1c1   :  { %v3937_v16 = vrot.slane %v9901_v14, 5  ;;  %v9940_v23 = vcombine.high %v9901_v14, %v9901_v14 }
 0x1c2   :  { %7327 = vmatmul.mubr.msk.f32.gmra.mrb[2].mxu1 %vm672_vm8, %v9889_v45  ;;  %v11144_v45 = vld [vmem:[#allocation64_spill] sm:$0xff] }
 0x1c3   :  { %7000 = vmatmul.mubr.msk.f32.gmra.mrb[44].mxu0 %vm672_vm8, %v11139_v27  ;;  %7329 = vmatprep.mubr.msk.f32.mxu1 %vm672_vm8, %v11140_v56  ;;  %v11145_v27 = vld [vmem:[#allocation72_spill] sm:$0xff]  ;;  %11150 = vst [vmem:[#allocation21_spill] sm:$0xff] %v9940_v23 }
 0x1c4   :  { %7002 = vmatprep.mubr.msk.f32.mxu0 %vm672_vm8, %v11117_v5  ;;  %v3936_v5 = vrot.slane %v3934_v11, 4 }
 0x1c6   :  { %7330 = vmatmul.mubr.msk.f32.gmra.mrb[4].mxu1 %vm672_vm8, %v11141_v36  ;;  %v3938_v29 = vsel %vm8376_vm7, %v3936_v5, %v3937_v16 }
 0x1c7   :  { %7003 = vmatmul.mubr.msk.f32.gmra.mrb[46].mxu0 %vm672_vm8, %v11119_v31  ;;  %7332 = vmatprep.mubr.msk.f32.mxu1 %vm672_vm8, %v11142_v60  ;;  %v6062_v31 = vrot.slane %v9791_v61, 9 }
 0x1c8   :  { %7005 = vmatprep.mubr.msk.f32.mxu0 %vm672_vm8, %v11120_v0  ;;  %v9923_v0 = vmax.f32 %v423_v43, 0.0 }
 0x1c9   :  { %v3935_v43 = vsel %vm8376_vm7, %v6062_v31, %v3934_v11  ;;  %v5875_v31 = vld [vmem:[%s10642_s3 + $0xb8] sm:$0xf]  ;;  %v6109_v11 = vld [vmem:[%s10642_s3 + $0x1c0] sm:$0xf] }
 0x1ca   :  { %7333 = vmatmul.mubr.msk.f32.gmra.mrb[6].mxu1 %vm672_vm8, %v11144_v45  ;;  %11146 = vst [vmem:[#allocation8_spill] sm:$0xff] %v9923_v0  ;;  %v9942_v5 = vcombine.low %v3935_v43, %v3938_v29  ;;  %v9946_v16 = vcombine.high %v9923_v0, %v9923_v0  ;;  %v6212_v29 = vrot.slane %v9940_v23, 11  ;;  %v4115_v43 = vrot.slane %v9745_v62, 6  ;;  %v6128_v23 = vld [vmem:[%s10642_s3 + $0x1d0] sm:$0xff] }
 0x1cb   :  { %7006 = vmatmul.mubr.msk.f32.gmra.mrb[48].mxu0 %vm672_vm8, %v11121_v32  ;;  %7335 = vmatprep.mubr.msk.f32.mxu1 %vm672_vm8, %v11145_v27  ;;  %v11148_v32 = vld [vmem:[#allocation13_spill] sm:$0xff] }
 0x1cc   :  { %7008 = vmatprep.mubr.msk.f32.mxu0 %vm672_vm8, %v11122_v41  ;;  %v11149_v41 = vld [vmem:[#allocation74_spill] sm:$0xff]  ;;  %11151 = vst [vmem:[#allocation20_spill] sm:$0xff] %v9942_v5  ;;  %11152 = vst [vmem:[#allocation31_spill] sm:$0xff] %v9946_v16 }
 0x1ce   :  { %7336 = vmatmul.mubr.msk.f32.gmra.mrb[8].mxu1 %vm672_vm8, %v11147_v7 }
 0x1cf   :  { %7009 = vmatmul.mubr.msk.f32.gmra.mrb[50].mxu0 %vm672_vm8, %v9807_v3  ;;  %7338 = vmatprep.mubr.msk.f32.mxu1 %vm672_vm8, %v11149_v41  ;;  %v5222_v3 = vrot.slane %v9923_v0, 7  ;;  %v5225_v41 = vrot.slane %v9946_v16, 7  ;;  %v11158_v0 = vld [vmem:[#allocation83_spill] sm:$0xff] }
 0x1d0   :  { %7017 = vmatprep.mubr.msk.f32.mxu0 %vm672_vm8, %v11148_v32  ;;  %v11154_v32 = vld [vmem:[#allocation80_spill] sm:$0xff] }
 0x1d1   :  { %v9988_v16 = vsel %vm9189_vm13, %v6212_v29, %v5222_v3  ;;  %v11164_v29 = vld [vmem:[#allocation52_spill] sm:$0xff] }
 0x1d2   :  { %7339 = vmatmul.mubr.msk.f32.gmra.mrb[10].mxu1 %vm672_vm8, %v9942_v5  ;;  %v5895_v5 = vld [vmem:[%s10642_s3 + $0xc0] sm:$0xff]  ;;  %11156 = vst [vmem:[#allocation61_spill] sm:$0xff] %v9988_v16  ;;  %v11171_v16 = vld [vmem:[#allocation62_spill] sm:$0xff] }
 0x1d3   :  { %7018 = vmatmul.mubr.msk.f32.vlgmr.msra.gmra.mrb[36].mxu0 %vm672_vm8, %v11153_v47  ;;  %7347 = vmatprep.mubr.msk.f32.mxu1 %vm672_vm8, %v11154_v32  ;;  %v5224_v47 = vrot.slane %v5222_v3, 4  ;;  %v7667_v3 = vpack.c.bf16 %v6128_v23, %v6127_v4  ;;  %v11162_v4 = vld [vmem:[#allocation88_spill] sm:$0xff] }
 0x1d4   :  { %7020 = vmatprep.mubr.msk.f32.mxu0 %vm672_vm8, %v11128_v25  ;;  %7622 = vmatpush3.bf16.msra.mxu0 %v7619_v19  ;;  %v5896_v25 = vld [vmem:[%s10642_s3 + $0xc8] sm:$0xff]  ;;  %v11155_v19 = vld [vmem:[#allocation81_spill] sm:$0xff] }
 0x1d5   :  { %7045 = vmatprep.subr.msk.mxu0 %vm705_vm4, %v5875_v31  ;;  %v7623_v54 = vpack.c.bf16 %v5896_v25, %v5895_v5  ;;  %v6083_v25 = vrot.slane %v9729_v30, 10 }
 0x1d6   :  { %7348 = vmatmul.mubr.msk.f32.vlgmr.msra.gmra.mrb[12].mxu1 %vm672_vm8, %v11155_v19 }
 0x1d7   :  { %7021 = vmatmul.mubr.msk.f32.gmra.mrb[38].mxu0 %vm672_vm8, %v11129_v10  ;;  %7666 = vmatpush3.bf16.msra.mxu1 %v9864_v50  ;;  %v9992_v10 = vsel %vm9189_vm13, %v5224_v47, %v5225_v41  ;;  %v4118_v50 = vrot.slane %v9586_v22, 6  ;;  %v11159_v47 = vld [vmem:[#allocation84_spill] sm:$0xff]  ;;  %v11160_v41 = vld [vmem:[#allocation86_spill] sm:$0xff] }
 0x1d8   :  { %7023 = vmatprep.mubr.msk.f32.mxu0 %vm672_vm8, %v11130_v42  ;;  %11157 = vst [vmem:[#allocation66_spill] sm:$0xff] %v9992_v10  ;;  %7350 = vmatprep.mubr.msk.f32.mxu1 %vm672_vm8, %v11158_v0  ;;  %v4117_v42 = vrot.slane %v4115_v43, 4  ;;  %v11166_v10 = vld [vmem:[#allocation50_spill] sm:$0xff] }
 0x1d9   :  { %7375 = vmatprep.subr.msk.mxu1 %vm705_vm4, %v6109_v11  ;;  %7046 = vmatpush3.msk.msra.mxu0 %vm705_vm4, %v5875_v31  ;;  %v11163_v31 = vld [vmem:[#allocation49_spill] sm:$0xff] }
 0x1da   :  { %7351 = vmatmul.mubr.msk.f32.gmra.mrb[14].mxu1 %vm672_vm8, %v11159_v47  ;;  %7624 = vmatprep.subr.bf16.mxu0 %v7623_v54  ;;  %v4119_v23 = vsel %vm8900_vm11, %v4117_v42, %v4118_v50  ;;  %v11167_v42 = vld [vmem:[#allocation55_spill] sm:$0xff]  ;;  %v4122_v50 = vrot.slane %v9803_v15, 6 }
 0x1db   :  { %7024 = vmatmul.mubr.msk.f32.gmra.mrb[40].mxu0 %vm672_vm8, %v11131_v28  ;;  %7353 = vmatprep.mubr.msk.f32.mxu1 %vm672_vm8, %v11160_v41 }
 0x1dc   :  { %7026 = vmatprep.mubr.msk.f32.mxu0 %vm672_vm8, %v11132_v46  ;;  %7376 = vmatpush3.msk.msra.mxu1 %vm705_vm4, %v6109_v11  ;;  %v4116_v11 = vsel %vm8900_vm11, %v6083_v25, %v4115_v43  ;;  %v11168_v43 = vld [vmem:[#allocation90_spill] sm:$0xff]  ;;  %v4124_v25 = vrot.slane %v4122_v50, 4 }
 0x1dd   :  { %7668 = vmatprep.subr.bf16.mxu1 %v7667_v3  ;;  %v10023_v38 = vcombine.low %v4116_v11, %v4119_v23  ;;  %v11170_v23 = vld [vmem:[#allocation34_spill] sm:$0xff] }
 0x1de   :  { %7354 = vmatmul.mubr.msk.f32.gmra.mrb[0].mxu1 %vm672_vm8, %v11162_v4 }
 0x1df   :  { %7027 = vmatmul.mubr.msk.f32.gmra.mrb[42].mxu0 %vm672_vm8, %v11134_v49  ;;  %7356 = vmatprep.mubr.msk.f32.mxu1 %vm672_vm8, %v11164_v29  ;;  %11165 = vst [vmem:[#allocation29_spill] sm:$0xff] %v10023_v38  ;;  %v11173_v29 = vld [vmem:[#allocation67_spill] sm:$0xff] }
 0x1e0   :  { %7029 = vmatprep.mubr.msk.f32.mxu0 %vm672_vm8, %v11163_v31  ;;  %v6084_v31 = vrot.slane %v9791_v61, 10 }
 0x1e2   :  { %7357 = vmatmul.mubr.msk.f32.gmra.mrb[2].mxu1 %vm672_vm8, %v10023_v38  ;;  %v11172_v38 = vld [vmem:[#allocation60_spill] sm:$0xff] }
 0x1e3   :  { %7030 = vmatmul.mubr.msk.f32.gmra.mrb[44].mxu0 %vm672_vm8, %v11166_v10  ;;  %7359 = vmatprep.mubr.msk.f32.mxu1 %vm672_vm8, %v11167_v42  ;;  %v11169_v10 = vld [vmem:[#allocation9_spill] sm:$0xff] }
 0x1e4   :  { %7032 = vmatprep.mubr.msk.f32.mxu0 %vm672_vm8, %v11140_v56  ;;  %v4125_v56 = vrot.slane %v9901_v14, 6 }
 0x1e6   :  { %7360 = vmatmul.mubr.msk.f32.gmra.mrb[4].mxu1 %vm672_vm8, %v11168_v43  ;;  %v4126_v11 = vsel %vm8900_vm11, %v4124_v25, %v4125_v56  ;;  %v5897_v25 = vld [vmem:[%s10642_s3 + $0xd0] sm:$0xf] }
 0x1e7   :  { %7033 = vmatmul.mubr.msk.f32.gmra.mrb[46].mxu0 %vm672_vm8, %v11141_v36  ;;  %7362 = vmatprep.mubr.msk.f32.mxu1 %vm672_vm8, %v11169_v10 }
 0x1e8   :  { %7035 = vmatprep.mubr.msk.f32.mxu0 %vm672_vm8, %v11142_v60  ;;  %v11175_v60 = vld [vmem:[#allocation78_spill] sm:$0xff] }
 0x1ea   :  { %7363 = vmatmul.mubr.msk.f32.gmra.mrb[6].mxu1 %vm672_vm8, %v11170_v23 }
 0x1eb   :  { %7036 = vmatmul.mubr.msk.f32.gmra.mrb[48].mxu0 %vm672_vm8, %v11144_v45  ;;  %7365 = vmatprep.mubr.msk.f32.mxu1 %vm672_vm8, %v9182_v53 }
 0x1ec   :  { %7038 = vmatprep.mubr.msk.f32.mxu0 %vm672_vm8, %v11145_v27  ;;  %v4123_v27 = vsel %vm8900_vm11, %v6084_v31, %v4122_v50  ;;  %v6148_v50 = vld [vmem:[%s10642_s3 + $0x1e8] sm:$0xff] }
 0x1ed   :  { %v10064_v45 = vcombine.low %v4123_v27, %v4126_v11  ;;  %v6129_v27 = vld [vmem:[%s10642_s3 + $0x1d8] sm:$0xf]  ;;  %v4306_v11 = vrot.slane %v9586_v22, 7 }
 0x1ee   :  { %7366 = vmatmul.mubr.msk.f32.gmra.mrb[8].mxu1 %vm672_vm8, %v11171_v16 }
 0x1ef   :  { %7039 = vmatmul.mubr.msk.f32.gmra.mrb[50].mxu0 %vm672_vm8, %v11147_v7  ;;  %7368 = vmatprep.mubr.msk.f32.mxu1 %vm672_vm8, %v11173_v29  ;;  %11174 = vst [vmem:[#allocation32_spill] sm:$0xff] %v10064_v45 }
 0x1f0   :  { %7047 = vmatprep.mubr.msk.f32.mxu0 %vm672_vm8, %v11172_v38  ;;  %v4303_v38 = vrot.slane %v9745_v62, 7 }
 0x1f2   :  { %7369 = vmatmul.mubr.msk.f32.gmra.mrb[10].mxu1 %vm672_vm8, %v10064_v45  ;;  %v4305_v31 = vrot.slane %v4303_v38, 4 }
 0x1f3   :  { %7048 = vmatmul.mubr.msk.f32.vlgmr.msra.gmra.mrb[36].mxu0 %vm672_vm8, %v11175_v60  ;;  %7377 = vmatprep.mubr.msk.f32.mxu1 %vm672_vm8, %v9229_v20  ;;  %v5915_v60 = vld [vmem:[%s10642_s3 + $0xd8] sm:$0xff] }
 0x1f4   :  { %7050 = vmatprep.mubr.msk.f32.mxu0 %vm672_vm8, %v11154_v32  ;;  %7626 = vmatpush3.bf16.msra.mxu0 %v7623_v54  ;;  %v5916_v32 = vld [vmem:[%s10642_s3 + $0xe0] sm:$0xff] }
 0x1f5   :  { %7075 = vmatprep.subr.msk.mxu0 %vm705_vm4, %v5897_v25  ;;  %v6147_v54 = vld [vmem:[%s10642_s3 + $0x1e0] sm:$0xff]  ;;  %v7627_v56 = vpack.c.bf16 %v5916_v32, %v5915_v60  ;;  %v11177_v32 = vld [vmem:[#allocation38_spill] sm:$0xff] }
 0x1f6   :  { %7378 = vmatmul.mubr.msk.f32.vlgmr.msra.gmra.mrb[12].mxu1 %vm672_vm8, %v9257_v13  ;;  %v7671_v45 = vpack.c.bf16 %v6148_v50, %v6147_v54  ;;  %v11176_v60 = vld [vmem:[#allocation17_spill] sm:$0xff]  ;;  %v11178_v54 = vld [vmem:[#allocation44_spill] sm:$0xff] }
 0x1f7   :  { %7051 = vmatmul.mubr.msk.f32.gmra.mrb[38].mxu0 %vm672_vm8, %v11155_v19  ;;  %7670 = vmatpush3.bf16.msra.mxu1 %v7667_v3  ;;  %v6105_v3 = vrot.slane %v9729_v30, 11  ;;  %v11180_v50 = vld [vmem:[#allocation89_spill] sm:$0xff] }
 0x1f8   :  { %7053 = vmatprep.mubr.msk.f32.mxu0 %vm672_vm8, %v11158_v0  ;;  %7380 = vmatprep.mubr.msk.f32.mxu1 %vm672_vm8, %v11077_v35 }
 0x1f9   :  { %7405 = vmatprep.subr.msk.mxu1 %vm705_vm4, %v6129_v27  ;;  %7076 = vmatpush3.msk.msra.mxu0 %vm705_vm4, %v5897_v25  ;;  %v4307_v25 = vsel %vm9189_vm13, %v4305_v31, %v4306_v11  ;;  %v4310_v31 = vrot.slane %v9803_v15, 7  ;;  %v6106_v11 = vrot.slane %v9791_v61, 11  ;;  %v11184_v61 = vld [vmem:[#allocation37_spill] sm:$0xff] }
 0x1fa   :  { %7381 = vmatmul.mubr.msk.f32.gmra.mrb[14].mxu1 %vm672_vm8, %v11079_v6  ;;  %7628 = vmatprep.subr.bf16.mxu0 %v7627_v56 }
 0x1fb   :  { %7054 = vmatmul.mubr.msk.f32.gmra.mrb[40].mxu0 %vm672_vm8, %v11159_v47  ;;  %7383 = vmatprep.mubr.msk.f32.mxu1 %vm672_vm8, %v9316_v58 }
 0x1fc   :  { %7056 = vmatprep.mubr.msk.f32.mxu0 %vm672_vm8, %v11160_v41  ;;  %7406 = vmatpush3.msk.msra.mxu1 %vm705_vm4, %v6129_v27  ;;  %v4304_v27 = vsel %vm9189_vm13, %v6105_v3, %v4303_v38  ;;  %v4312_v38 = vrot.slane %v4310_v31, 4 }
 0x1fd   :  { %7672 = vmatprep.subr.bf16.mxu1 %v7671_v45  ;;  %v10127_v30 = vcombine.low %v4304_v27, %v4307_v25  ;;  %v11181_v25 = vld [vmem:[#allocation46_spill] sm:$0xff]  ;;  %v11183_v27 = vld [vmem:[#allocation53_spill] sm:$0xff] }
 0x1fe   :  { %7384 = vmatmul.mubr.msk.f32.gmra.mrb[0].mxu1 %vm672_vm8, %v11176_v60 }
 0x1ff   :  { %7057 = vmatmul.mubr.msk.f32.gmra.mrb[42].mxu0 %vm672_vm8, %v11162_v4  ;;  %7386 = vmatprep.mubr.msk.f32.mxu1 %vm672_vm8, %v11178_v54  ;;  %11179 = vst [vmem:[#allocation36_spill] sm:$0xff] %v10127_v30 }
 0x200   :  { %7059 = vmatprep.mubr.msk.f32.mxu0 %vm672_vm8, %v11177_v32  ;;  %v11182_v32 = vld [vmem:[#allocation47_spill] sm:$0xff] }
 0x202   :  { %7387 = vmatmul.mubr.msk.f32.gmra.mrb[2].mxu1 %vm672_vm8, %v10127_v30 }
 0x203   :  { %7060 = vmatmul.mubr.msk.f32.gmra.mrb[44].mxu0 %vm672_vm8, %v11180_v50  ;;  %7389 = vmatprep.mubr.msk.f32.mxu1 %vm672_vm8, %v9383_v44  ;;  %v4311_v50 = vsel %vm9189_vm13, %v6106_v11, %v4310_v31  ;;  %v5935_v31 = vld [vmem:[%s10642_s3 + $0xf0] sm:$0xff] }
 0x204   :  { %7062 = vmatprep.mubr.msk.f32.mxu0 %vm672_vm8, %v11167_v42  ;;  %v4313_v42 = vrot.slane %v9901_v14, 7 }
 0x206   :  { %7390 = vmatmul.mubr.msk.f32.gmra.mrb[4].mxu1 %vm672_vm8, %v9388_v8  ;;  %v4314_v3 = vsel %vm9189_vm13, %v4312_v38, %v4313_v42  ;;  %v5917_v38 = vld [vmem:[%s10642_s3 + $0xe8] sm:$0xf]  ;;  %v5936_v42 = vld [vmem:[%s10642_s3 + $0xf8] sm:$0xff] }
 0x207   :  { %7063 = vmatmul.mubr.msk.f32.gmra.mrb[46].mxu0 %vm672_vm8, %v11168_v43  ;;  %7392 = vmatprep.mubr.msk.f32.mxu1 %vm672_vm8, %v9419_v40  ;;  %v10168_v30 = vcombine.low %v4311_v50, %v4314_v3  ;;  %v7631_v11 = vpack.c.bf16 %v5936_v42, %v5935_v31  ;;  %v11190_v50 = vld [vmem:[#allocation79_spill] sm:$0xff]  ;;  %v11194_v31 = vld [vmem:[#allocation24_spill] sm:$0xff] }
 0x208   :  { %7065 = vmatprep.mubr.msk.f32.mxu0 %vm672_vm8, %v11169_v10  ;;  %v11195_v42 = vld [vmem:[#allocation39_spill] sm:$0xff] }
 0x20a   :  { %7393 = vmatmul.mubr.msk.f32.gmra.mrb[6].mxu1 %vm672_vm8, %v9425_v33 }
 0x20b   :  { %7066 = vmatmul.mubr.msk.f32.gmra.mrb[48].mxu0 %vm672_vm8, %v11170_v23  ;;  %7395 = vmatprep.mubr.msk.f32.mxu1 %vm672_vm8, %v9452_v55 }
 0x20c   :  { %7068 = vmatprep.mubr.msk.f32.mxu0 %vm672_vm8, %v9182_v53 }
 0x20e   :  { %7396 = vmatmul.mubr.msk.f32.gmra.mrb[8].mxu1 %vm672_vm8, %v11181_v25 }
 0x20f   :  { %7069 = vmatmul.mubr.msk.f32.gmra.mrb[50].mxu0 %vm672_vm8, %v11171_v16  ;;  %7398 = vmatprep.mubr.msk.f32.mxu1 %vm672_vm8, %v11183_v27 }
 0x210   :  { %7077 = vmatprep.mubr.msk.f32.mxu0 %vm672_vm8, %v11182_v32 }
 0x212   :  { %7399 = vmatmul.mubr.msk.f32.gmra.mrb[10].mxu1 %vm672_vm8, %v10168_v30 }
 0x213   :  { %7078 = vmatmul.mubr.msk.f32.vlgmr.msra.gmra.mrb[36].mxu0 %vm672_vm8, %v11184_v61  ;;  %7407 = vmatprep.mubr.msk.f32.mxu1 %vm672_vm8, %v9501_v39  ;;  %v11191_v61 = vld [vmem:[#allocation22_spill] sm:$0xff] }
 0x214   :  { %7080 = vmatprep.mubr.msk.f32.mxu0 %vm672_vm8, %v9229_v20  ;;  %7630 = vmatpush3.bf16.msra.mxu0 %v7627_v56  ;;  %v6169_v20 = vld [vmem:[%s10642_s3 + $0x1f8] sm:$0xff]  ;;  %v6170_v56 = vld [vmem:[%s10642_s3 + $0x200] sm:$0xff] }
 0x215   :  { %7105 = vmatprep.subr.msk.mxu0 %vm705_vm4, %v5917_v38  ;;  %v7675_v3 = vpack.c.bf16 %v6170_v56, %v6169_v20  ;;  %v11196_v20 = vld [vmem:[#allocation6_spill] sm:$0xff]  ;;  %v11197_v56 = vld [vmem:[#allocation25_spill] sm:$0xff] }
 0x216   :  { %7408 = vmatmul.mubr.msk.f32.vlgmr.msra.gmra.mrb[12].mxu1 %vm672_vm8, %v9513_v52 }
 0x217   :  { %7081 = vmatmul.mubr.msk.f32.gmra.mrb[38].mxu0 %vm672_vm8, %v9257_v13  ;;  %7674 = vmatpush3.bf16.msra.mxu1 %v7671_v45  ;;  %v10226_v45 = vcombine.low %v9745_v62, %v9586_v22  ;;  %v5937_v22 = vld [vmem:[%s10642_s3 + $0x100] sm:$0xf]  ;;  %v11188_v62 = vld [vmem:[#allocation76_spill] sm:$0xff] }
 0x218   :  { %7083 = vmatprep.mubr.msk.f32.mxu0 %vm672_vm8, %v11077_v35  ;;  %7410 = vmatprep.mubr.msk.f32.mxu1 %vm672_vm8, %v9527_v9 }
 0x219   :  { %7435 = vmatprep.subr.msk.mxu1 %vm705_vm4, %v6149_v59  ;;  %7106 = vmatpush3.msk.msra.mxu0 %vm705_vm4, %v5917_v38  ;;  %v11192_v38 = vld [vmem:[#allocation5_spill] sm:$0xff] }
 0x21a   :  { %7411 = vmatmul.mubr.msk.f32.gmra.mrb[14].mxu1 %vm672_vm8, %v9533_v18  ;;  %7632 = vmatprep.subr.bf16.mxu0 %v7631_v11 }
 0x21b   :  { %7084 = vmatmul.mubr.msk.f32.gmra.mrb[40].mxu0 %vm672_vm8, %v11079_v6  ;;  %7413 = vmatprep.mubr.msk.f32.mxu1 %vm672_vm8, %v9571_v37 }
 0x21c   :  { %7086 = vmatprep.mubr.msk.f32.mxu0 %vm672_vm8, %v9316_v58  ;;  %7436 = vmatpush3.msk.msra.mxu1 %vm705_vm4, %v6149_v59  ;;  %v11193_v59 = vld [vmem:[#allocation30_spill] sm:$0xff] }
 0x21d   :  { %7676 = vmatprep.subr.bf16.mxu1 %v7675_v3 }
 0x21e   :  { %7414 = vmatmul.mubr.msk.f32.gmra.mrb[0].mxu1 %vm672_vm8, %v9580_v2 }
 0x21f   :  { %7087 = vmatmul.mubr.msk.f32.gmra.mrb[42].mxu0 %vm672_vm8, %v11176_v60  ;;  %7416 = vmatprep.mubr.msk.f32.mxu1 %vm672_vm8, %v9601_v12 }
 0x220   :  { %7089 = vmatprep.mubr.msk.f32.mxu0 %vm672_vm8, %v9597_v51  ;;  %v11187_v51 = vld [vmem:[#allocation71_spill] sm:$0xff] }
 0x222   :  { %7417 = vmatmul.mubr.msk.f32.gmra.mrb[2].mxu1 %vm672_vm8, %v10226_v45 }
 0x223   :  { %7090 = vmatmul.mubr.msk.f32.gmra.mrb[44].mxu0 %vm672_vm8, %v9357_v17  ;;  %7419 = vmatprep.mubr.msk.f32.mxu1 %vm672_vm8, %v9625_v34  ;;  %v10262_v17 = vcombine.low %v9803_v15, %v9901_v14  ;;  %v6192_v14 = vld [vmem:[%s10642_s3 + $0x218] sm:$0xff]  ;;  %v11189_v15 = vld [vmem:[#allocation77_spill] sm:$0xff] }
 0x224   :  { %7092 = vmatprep.mubr.msk.f32.mxu0 %vm672_vm8, %v9383_v44  ;;  %v11186_v44 = vld [vmem:[#allocation51_spill] sm:$0xff] }
 0x225   :  { %11185 = vst [vmem:[#allocation82_spill] sm:$0xff] %v10262_v17 }
 0x226   :  { %7420 = vmatmul.mubr.msk.f32.gmra.mrb[4].mxu1 %vm672_vm8, %v9629_v26 }
 0x227   :  { %7093 = vmatmul.mubr.msk.f32.gmra.mrb[46].mxu0 %vm672_vm8, %v9388_v8  ;;  %7422 = vmatprep.mubr.msk.f32.mxu1 %vm672_vm8, %v9644_v57 }
 0x228   :  { %7095 = vmatprep.mubr.msk.f32.mxu0 %vm672_vm8, %v9419_v40 }
 0x22a   :  { %7423 = vmatmul.mubr.msk.f32.gmra.mrb[6].mxu1 %vm672_vm8, %v9652_v21 }
 0x22b   :  { %7096 = vmatmul.mubr.msk.f32.gmra.mrb[48].mxu0 %vm672_vm8, %v9425_v33  ;;  %7425 = vmatprep.mubr.msk.f32.mxu1 %vm672_vm8, %v9670_v48 }
 0x22c   :  { %7098 = vmatprep.mubr.msk.f32.mxu0 %vm672_vm8, %v9452_v55 }
 0x22e   :  { %7426 = vmatmul.mubr.msk.f32.gmra.mrb[8].mxu1 %vm672_vm8, %v9676_v24 }
 0x22f   :  { %7099 = vmatmul.mubr.msk.f32.gmra.mrb[50].mxu0 %vm672_vm8, %v11181_v25  ;;  %7428 = vmatprep.mubr.msk.f32.mxu1 %vm672_vm8, %v9691_v1  ;;  %v11209_v1 = vld [vmem:[#allocation70_spill] sm:$0xff] }
 0x230   :  { %7107 = vmatprep.mubr.msk.f32.mxu0 %vm672_vm8, %v9687_v63  ;;  %v6171_v63 = vld [vmem:[%s10642_s3 + $0x208] sm:$0xf] }
 0x232   :  { %7429 = vmatmul.mubr.msk.f32.gmra.mrb[10].mxu1 %vm672_vm8, %v10262_v17 }
 0x233   :  { %7108 = vmatmul.mubr.msk.f32.vlgmr.msra.gmra.mrb[36].mxu0 %vm672_vm8, %v11186_v44  ;;  %7437 = vmatprep.mubr.msk.f32.mxu1 %vm672_vm8, %v11187_v51  ;;  %v11199_v44 = vld [vmem:[#allocation48_spill] sm:$0xff] }
 0x234   :  { %7110 = vmatprep.mubr.msk.f32.mxu0 %vm672_vm8, %v9501_v39  ;;  %7634 = vmatpush3.bf16.msra.mxu0 %v7631_v11  ;;  %v6191_v39 = vld [vmem:[%s10642_s3 + $0x210] sm:$0xff]  ;;  %v4667_v11 = vcombine.low %v11197_v56, %v11196_v20 }
 0x235   :  { %7135 = vmatprep.subr.msk.mxu0 %vm705_vm4, %v5937_v22  ;;  %v7679_v32 = vpack.c.bf16 %v6192_v14, %v6191_v39  ;;  %v11202_v39 = vld [vmem:[#allocation58_spill] sm:$0xff]  ;;  %v11204_v14 = vld [vmem:[#allocation43_spill] sm:$0xff] }
 0x236   :  { %7438 = vmatmul.mubr.msk.f32.vlgmr.msra.gmra.mrb[12].mxu1 %vm672_vm8, %v11188_v62 }
 0x237   :  { %7111 = vmatmul.mubr.msk.f32.gmra.mrb[38].mxu0 %vm672_vm8, %v9513_v52  ;;  %7678 = vmatpush3.bf16.msra.mxu1 %v7675_v3  ;;  %v11198_v3 = vld [vmem:[#allocation11_spill] sm:$0xff] }
 0x238   :  { %7113 = vmatprep.mubr.msk.f32.mxu0 %vm672_vm8, %v9527_v9  ;;  %7440 = vmatprep.mubr.msk.f32.mxu1 %vm672_vm8, %v11189_v15 }
 0x239   :  { %7465 = vmatprep.subr.msk.mxu1 %vm705_vm4, %v6171_v63  ;;  %7136 = vmatpush3.msk.msra.mxu0 %vm705_vm4, %v5937_v22  ;;  %v11200_v22 = vld [vmem:[#allocation14_spill] sm:$0xff] }
 0x23a   :  { %7441 = vmatmul.mubr.msk.f32.gmra.mrb[14].mxu1 %vm672_vm8, %v11190_v50  ;;  %7636 = vmatprep.subr.bf16.mxu0 %v11192_v38 }
 0x23b   :  { %7114 = vmatmul.mubr.msk.f32.gmra.mrb[40].mxu0 %vm672_vm8, %v9533_v18  ;;  %7443 = vmatprep.mubr.msk.f32.mxu1 %vm672_vm8, %v11191_v61 }
 0x23c   :  { %7116 = vmatprep.mubr.msk.f32.mxu0 %vm672_vm8, %v9571_v37  ;;  %7466 = vmatpush3.msk.msra.mxu1 %vm705_vm4, %v6171_v63  ;;  %v11201_v63 = vld [vmem:[#allocation54_spill] sm:$0xff] }
 0x23d   :  { %7680 = vmatprep.subr.bf16.mxu1 %v7679_v32 }
 0x23e   :  { %7444 = vmatmul.mubr.msk.f32.gmra.mrb[0].mxu1 %vm672_vm8, %v11193_v59 }
 0x23f   :  { %7117 = vmatmul.mubr.msk.f32.gmra.mrb[42].mxu0 %vm672_vm8, %v9580_v2  ;;  %7446 = vmatprep.mubr.msk.f32.mxu1 %vm672_vm8, %v11195_v42  ;;  %v11206_v42 = vld [vmem:[#allocation56_spill] sm:$0xff] }
 0x240   :  { %7119 = vmatprep.mubr.msk.f32.mxu0 %vm672_vm8, %v11194_v31  ;;  %v11205_v31 = vld [vmem:[#allocation69_spill] sm:$0xff] }
 0x242   :  { %7447 = vmatmul.mubr.msk.f32.gmra.mrb[2].mxu1 %vm672_vm8, %v4667_v11  ;;  %v11207_v11 = vld [vmem:[#allocation8_spill] sm:$0xff] }
 0x243   :  { %7120 = vmatmul.mubr.msk.f32.gmra.mrb[44].mxu0 %vm672_vm8, %v11198_v3  ;;  %7449 = vmatprep.mubr.msk.f32.mxu1 %vm672_vm8, %v11199_v44  ;;  %v11208_v3 = vld [vmem:[#allocation21_spill] sm:$0xff] }
 0x244   :  { %7122 = vmatprep.mubr.msk.f32.mxu0 %vm672_vm8, %v9625_v34  ;;  %v11203_v34 = vld [vmem:[#allocation45_spill] sm:$0xff]  ;;  %v4668_v17 = vcombine.low %v11208_v3, %v11207_v11 }
 0x246   :  { %7450 = vmatmul.mubr.msk.f32.gmra.mrb[4].mxu1 %vm672_vm8, %v11200_v22 }
 0x247   :  { %7123 = vmatmul.mubr.msk.f32.gmra.mrb[46].mxu0 %vm672_vm8, %v9629_v26  ;;  %7452 = vmatprep.mubr.msk.f32.mxu1 %vm672_vm8, %v11201_v63 }
 0x248   :  { %7125 = vmatprep.mubr.msk.f32.mxu0 %vm672_vm8, %v9644_v57 }
 0x24a   :  { %7453 = vmatmul.mubr.msk.f32.gmra.mrb[6].mxu1 %vm672_vm8, %v11202_v39 }
 0x24b   :  { %7126 = vmatmul.mubr.msk.f32.gmra.mrb[48].mxu0 %vm672_vm8, %v9652_v21  ;;  %7455 = vmatprep.mubr.msk.f32.mxu1 %vm672_vm8, %v11203_v34  ;;  %v11212_v21 = vld [vmem:[#allocation10_spill] sm:$0xff] }
 0x24c   :  { %7128 = vmatprep.mubr.msk.f32.mxu0 %vm672_vm8, %v9670_v48  ;;  %v4842_v57 = vrot.slane %v11212_v21, 5 }
 0x24e   :  { %7456 = vmatmul.mubr.msk.f32.gmra.mrb[8].mxu1 %vm672_vm8, %v11204_v14 }
 0x24f   :  { %7129 = vmatmul.mubr.msk.f32.gmra.mrb[50].mxu0 %vm672_vm8, %v9676_v24  ;;  %7458 = vmatprep.mubr.msk.f32.mxu1 %vm672_vm8, %v11206_v42  ;;  %v11210_v24 = vld [vmem:[#allocation23_spill] sm:$0xff]  ;;  %v6193_v42 = vld [vmem:[%s10642_s3 + $0x220] sm:$0xf] }
 0x250   :  { %7137 = vmatprep.mubr.msk.f32.mxu0 %vm672_vm8, %v11205_v31  ;;  %v4839_v31 = vrot.slane %v11196_v20, 5 }
 0x252   :  { %7459 = vmatmul.mubr.msk.f32.gmra.mrb[10].mxu1 %vm672_vm8, %v4668_v17  ;;  %v11211_v17 = vld [vmem:[#allocation28_spill] sm:$0xff]  ;;  %v4841_v48 = vrot.slane %v4839_v31, 4 }
 0x253   :  { %7138 = vmatmul.mubr.msk.f32.vlgmr.msra.gmra.mrb[36].mxu0 %vm672_vm8, %v11209_v1  ;;  %7467 = vmatprep.mubr.msk.f32.mxu1 %vm672_vm8, %v11210_v24  ;;  %v8084_v1 = vld [vmem:[%s10642_s3 + $0x118] sm:$0xf] }
 0x254   :  { %7140 = vmatprep.mubr.msk.f32.mxu0 %vm672_vm8, %v11187_v51  ;;  %7638 = vmatpush3.bf16.msra.mxu0 %v11192_v38  ;;  %v6213_v51 = vld [vmem:[%s10642_s3 + $0x228] sm:$0xff]  ;;  %v6214_v38 = vld [vmem:[%s10642_s3 + $0x230] sm:$0xff] }
 0x255   :  { %7165 = vmatprep.subr.msk.mxu0 %vm705_vm4, %v8084_v1  ;;  %v7683_v26 = vpack.c.bf16 %v6214_v38, %v6213_v51  ;;  %v11222_v38 = vld [vmem:[#allocation74_spill] sm:$0xff] }
 0x256   :  { %7468 = vmatmul.mubr.msk.f32.vlgmr.msra.gmra.mrb[12].mxu1 %vm672_vm8, %v11211_v17 }
 0x257   :  { %7141 = vmatmul.mubr.msk.f32.gmra.mrb[38].mxu0 %vm672_vm8, %v11188_v62  ;;  %7682 = vmatpush3.bf16.msra.mxu1 %v7679_v32  ;;  %v6167_v62 = vrot.slane %v11197_v56, 9  ;;  %v4843_v32 = vsel %vm8376_vm7, %v4841_v48, %v4842_v57  ;;  %v4846_v57 = vrot.slane %v11207_v11, 5  ;;  %v11218_v48 = vld [vmem:[#allocation63_spill] sm:$0xff] }
 0x258   :  { %7143 = vmatprep.mubr.msk.f32.mxu0 %vm672_vm8, %v11189_v15  ;;  %7470 = vmatprep.mubr.msk.f32.mxu1 %vm672_vm8, %v11131_v28  ;;  %v6215_v28 = vld [vmem:[%s10642_s3 + $0x238] sm:$0xf] }
 0x259   :  { %7495 = vmatprep.subr.msk.mxu1 %vm705_vm4, %v6193_v42  ;;  %7166 = vmatpush3.msk.msra.mxu0 %vm705_vm4, %v8084_v1  ;;  %v4840_v15 = vsel %vm8376_vm7, %v6167_v62, %v4839_v31  ;;  %v6168_v31 = vrot.slane %v11208_v3, 9  ;;  %v11220_v1 = vld [vmem:[#allocation31_spill] sm:$0xff]  ;;  %v11224_v62 = vld [vmem:[#allocation20_spill] sm:$0xff] }
 0x25a   :  { %7471 = vmatmul.mubr.msk.f32.gmra.mrb[14].mxu1 %vm672_vm8, %v11132_v46  ;;  %v11215_v46 = vld [vmem:[#allocation85_spill] sm:$0xff]  ;;  %v4849_v51 = vrot.slane %v11220_v1, 5 }
 0x25b   :  { %7144 = vmatmul.mubr.msk.f32.gmra.mrb[40].mxu0 %vm672_vm8, %v11190_v50  ;;  %7473 = vmatprep.mubr.msk.f32.mxu1 %vm672_vm8, %v11134_v49  ;;  %v11214_v50 = vld [vmem:[#allocation40_spill] sm:$0xff]  ;;  %v4855_v49 = vcombine.low %v4840_v15, %v4843_v32  ;;  %v6233_v15 = vld [vmem:[%s10642_s3 + $0x240] sm:$0xff]  ;;  %v6234_v32 = vld [vmem:[%s10642_s3 + $0x248] sm:$0xff] }
 0x25c   :  { %7146 = vmatprep.mubr.msk.f32.mxu0 %vm672_vm8, %v11191_v61  ;;  %7496 = vmatpush3.msk.msra.mxu1 %vm705_vm4, %v6193_v42  ;;  %v11216_v61 = vld [vmem:[#allocation7_spill] sm:$0xff] }
 0x25d   :  { %7684 = vmatprep.subr.bf16.mxu1 %v7683_v26  ;;  %v11217_v42 = vld [vmem:[#allocation87_spill] sm:$0xff] }
 0x25e   :  { %7474 = vmatmul.mubr.msk.f32.gmra.mrb[0].mxu1 %vm672_vm8, %v11214_v50 }
 0x25f   :  { %7147 = vmatmul.mubr.msk.f32.gmra.mrb[42].mxu0 %vm672_vm8, %v11193_v59  ;;  %7476 = vmatprep.mubr.msk.f32.mxu1 %vm672_vm8, %v11216_v61  ;;  %v11219_v59 = vld [vmem:[#allocation64_spill] sm:$0xff] }
 0x260   :  { %7149 = vmatprep.mubr.msk.f32.mxu0 %vm672_vm8, %v11215_v46  ;;  %v5030_v46 = vrot.slane %v11212_v21, 6 }
 0x262   :  { %7477 = vmatmul.mubr.msk.f32.gmra.mrb[2].mxu1 %vm672_vm8, %v4855_v49  ;;  %v5037_v49 = vrot.slane %v11220_v1, 6 }
 0x263   :  { %7150 = vmatmul.mubr.msk.f32.gmra.mrb[44].mxu0 %vm672_vm8, %v11217_v42  ;;  %7479 = vmatprep.mubr.msk.f32.mxu1 %vm672_vm8, %v11141_v36  ;;  %v11221_v36 = vld [vmem:[#allocation72_spill] sm:$0xff] }
 0x264   :  { %7152 = vmatprep.mubr.msk.f32.mxu0 %vm672_vm8, %v11199_v44  ;;  %v4848_v44 = vrot.slane %v4846_v57, 4 }
 0x266   :  { %7480 = vmatmul.mubr.msk.f32.gmra.mrb[4].mxu1 %vm672_vm8, %v11218_v48 }
 0x267   :  { %7153 = vmatmul.mubr.msk.f32.gmra.mrb[46].mxu0 %vm672_vm8, %v11200_v22  ;;  %7482 = vmatprep.mubr.msk.f32.mxu1 %vm672_vm8, %v11219_v59  ;;  %v4847_v22 = vsel %vm8376_vm7, %v6168_v31, %v4846_v57 }
 0x268   :  { %7155 = vmatprep.mubr.msk.f32.mxu0 %vm672_vm8, %v11201_v63  ;;  %v4850_v63 = vsel %vm8376_vm7, %v4848_v44, %v4849_v51  ;;  %v10589_v51 = vld [vmem:[%s10643_s4] ss:$0 sm:$0xff]  ;;  %s8110_s4 = smov [#allocation2]  }
 0x269   :  { %s5635_s11 = sshll.u32 %s8110_s4, 4  ;;  %s5636_s11 = int_to_ptr.vmem [resolvable:$true] %s5635_s11 }
 0x26a   :  { %7483 = vmatmul.mubr.msk.f32.gmra.mrb[6].mxu1 %vm672_vm8, %v11221_v36  ;;  %s8085_s12 = scalar_lea.vmem %s5636_s11, 2048  ;;  %p8090_p1 = scmp.lt.s32.totalorder %s5636_s11, %s5636_s11 }
 0x26b   :  { %7156 = vmatmul.mubr.msk.f32.gmra.mrb[48].mxu0 %vm672_vm8, %v11202_v39  ;;  %7485 = vmatprep.mubr.msk.f32.mxu1 %vm672_vm8, %v11147_v7  ;;  %v11223_v39 = vld [vmem:[#allocation15_spill] sm:$0xff]  ;;  %p8086_p0 = scmp.ne.s32.totalorder %s5636_s11, %s8085_s12  ;;  %p8091_p2 = scmp.lt.s32.totalorder %s8085_s12, %s8085_s12 }
 0x26c   :  { %7158 = vmatprep.mubr.msk.f32.mxu0 %vm672_vm8, %v11203_v34  ;;  %v4856_v34 = vcombine.low %v4847_v22, %v4850_v63  ;;  %v11225_v7 = vld [vmem:[#allocation19_spill] sm:$0xff] }
 0x26d   :  { %p8092_p3 = por %p8091_p2, %p8090_p1 }
 0x26e   :  { %7486 = vmatmul.mubr.msk.f32.gmra.mrb[8].mxu1 %vm672_vm8, %v11222_v38 }
 0x26f   :  { %7159 = vmatmul.mubr.msk.f32.gmra.mrb[50].mxu0 %vm672_vm8, %v11204_v14  ;;  %7488 = vmatprep.mubr.msk.f32.mxu1 %vm672_vm8, %v11224_v62  ;;  %v5027_v14 = vrot.slane %v11196_v20, 6  ;;  %p8093_p4 = pnand %p8092_p3, %p8086_p0 }
 0x270   :  { %7167 = vmatprep.mubr.msk.f32.mxu0 %vm672_vm8, %v11223_v39 }
 0x271   :  { %v5029_v50 = vrot.slane %v5027_v14, 4 }
 0x272   :  { %7489 = vmatmul.mubr.msk.f32.gmra.mrb[10].mxu1 %vm672_vm8, %v4856_v34 }
 0x273   :  { %7168 = vmatmul.mubr.msk.f32.vlgmr.msra.gmra.mrb[36].mxu0 %vm672_vm8, %v11225_v7  ;;  %7497 = vmatprep.mubr.msk.f32.mxu1 %vm672_vm8, %v11155_v19  ;;  %v6189_v19 = vrot.slane %v11197_v56, 10  ;;  %v11227_v56 = vld [vmem:[#allocation29_spill] sm:$0xff] }
 0x274   :  { %7170 = vmatprep.mubr.msk.f32.mxu0 %vm672_vm8, %v11210_v24  ;;  %v7687_v24 = vpack.c.bf16 %v6234_v32, %v6233_v15 }
 0x276   :  { %7498 = vmatmul.mubr.msk.f32.vlgmr.msra.gmra.mrb[12].mxu1 %vm672_vm8, %v11158_v0  ;;  %v5031_v0 = vsel %vm8900_vm11, %v5029_v50, %v5030_v46 }
 0x277   :  { %7171 = vmatmul.mubr.msk.f32.gmra.mrb[38].mxu0 %vm672_vm8, %v11211_v17  ;;  %7686 = vmatpush3.bf16.msra.mxu1 %v7683_v26  ;;  %v5028_v26 = vsel %vm8900_vm11, %v6189_v19, %v5027_v14 }
 0x278   :  { %7500 = vmatprep.mubr.msk.f32.mxu1 %vm672_vm8, %v11159_v47  ;;  %7525 = vmatprep.subr.msk.mxu1 %vm705_vm4, %v6215_v28  ;;  %v11226_v47 = vld [vmem:[#allocation52_spill] sm:$0xff]  ;;  %v5043_v17 = vcombine.low %v5028_v26, %v5031_v0 }
 0x27a   :  { %7501 = vmatmul.mubr.msk.f32.gmra.mrb[14].mxu1 %vm672_vm8, %v11160_v41  ;;  %v5034_v41 = vrot.slane %v11207_v11, 6 }
 0x27b   :  { %7503 = vmatprep.mubr.msk.f32.mxu1 %vm672_vm8, %v11162_v4  ;;  %7526 = vmatpush3.msk.msra.mxu1 %vm705_vm4, %v6215_v28  ;;  %v6190_v4 = vrot.slane %v11208_v3, 10 }
 0x27c   :  { %7688 = vmatprep.subr.bf16.mxu1 %v7687_v24  ;;  %v5036_v61 = vrot.slane %v5034_v41, 4 }
 0x27e   :  { %7504 = vmatmul.mubr.msk.f32.gmra.mrb[0].mxu1 %vm672_vm8, %v11226_v47 }
 0x27f   :  { %7506 = vmatprep.mubr.msk.f32.mxu1 %vm672_vm8, %v11227_v56 }
 0x282   :  { %7507 = vmatmul.mubr.msk.f32.gmra.mrb[2].mxu1 %vm672_vm8, %v5043_v17 }
 0x283   :  { %7509 = vmatprep.mubr.msk.f32.mxu1 %vm672_vm8, %v11168_v43  ;;  %v5035_v43 = vsel %vm8900_vm11, %v6190_v4, %v5034_v41 }
 0x286   :  { %7510 = vmatmul.mubr.msk.f32.gmra.mrb[4].mxu1 %vm672_vm8, %v11169_v10  ;;  %v5038_v10 = vsel %vm8900_vm11, %v5036_v61, %v5037_v49 }
 0x287   :  { %7512 = vmatprep.mubr.msk.f32.mxu1 %vm672_vm8, %v11170_v23  ;;  %v11228_v23 = vld [vmem:[#allocation32_spill] sm:$0xff]  ;;  %v5044_v3 = vcombine.low %v5035_v43, %v5038_v10 }
 0x28a   :  { %7513 = vmatmul.mubr.msk.f32.gmra.mrb[6].mxu1 %vm672_vm8, %v9182_v53  ;;  %v6235_v53 = vld [vmem:[%s10642_s3 + $0x250] sm:$0xf] }
 0x28b   :  { %7515 = vmatprep.mubr.msk.f32.mxu1 %vm672_vm8, %v11171_v16  ;;  %v11231_v16 = vld [vmem:[#allocation18_spill] sm:$0xff] }
 0x28e   :  { %7516 = vmatmul.mubr.msk.f32.gmra.mrb[8].mxu1 %vm672_vm8, %v11173_v29 }
 0x28f   :  { %7518 = vmatprep.mubr.msk.f32.mxu1 %vm672_vm8, %v11228_v23 }
 0x292   :  { %7519 = vmatmul.mubr.msk.f32.gmra.mrb[10].mxu1 %vm672_vm8, %v5044_v3 }
 0x293   :  { %7527 = vmatprep.mubr.msk.f32.mxu1 %vm672_vm8, %v9257_v13  ;;  %v11229_v13 = vld [vmem:[#allocation36_spill] sm:$0xff] }
 0x296   :  { %7528 = vmatmul.mubr.msk.f32.vlgmr.msra.gmra.mrb[12].mxu1 %vm672_vm8, %v11077_v35  ;;  %v11230_v35 = vld [vmem:[#allocation33_spill] sm:$0xff] }
 0x297   :  { %7690 = vmatpush3.bf16.msra.mxu1 %v7687_v24  ;;  %7530 = vmatprep.mubr.msk.f32.mxu1 %vm672_vm8, %v11079_v6  ;;  %v11232_v5 = vcombine.low %v11230_v35, %v11231_v16 }
 0x298   :  { %7555 = vmatprep.subr.msk.mxu1 %vm705_vm4, %v6235_v53 }
 0x29a   :  { %7531 = vmatmul.mubr.msk.f32.gmra.mrb[14].mxu1 %vm672_vm8, %v9316_v58  ;;  %v11233_v58 = vld [vmem:[#allocation61_spill] sm:$0xff] }
 0x29b   :  { %7533 = vmatprep.mubr.msk.f32.mxu1 %vm672_vm8, %v11176_v60  ;;  %7556 = vmatpush3.msk.msra.mxu1 %vm705_vm4, %v6235_v53 }
 0x29e   :  { %7534 = vmatmul.mubr.msk.f32.gmra.mrb[0].mxu1 %vm672_vm8, %v11178_v54 }
 0x29f   :  { %7536 = vmatprep.mubr.msk.f32.mxu1 %vm672_vm8, %v11229_v13 }
 0x2a2   :  { %7537 = vmatmul.mubr.msk.f32.gmra.mrb[2].mxu1 %vm672_vm8, %v11232_v5 }
 0x2a3   :  { %7539 = vmatprep.mubr.msk.f32.mxu1 %vm672_vm8, %v9388_v8  ;;  %v11234_v8 = vld [vmem:[#allocation66_spill] sm:$0xff] }
 0x2a4   :  { %v11235_v6 = vcombine.low %v11233_v58, %v11234_v8 }
 0x2a6   :  { %7540 = vmatmul.mubr.msk.f32.gmra.mrb[4].mxu1 %vm672_vm8, %v9419_v40  ;;  %v5405_v40 = vcombine.low %v11196_v20, %v11212_v21 }
 0x2a7   :  { %7542 = vmatprep.mubr.msk.f32.mxu1 %vm672_vm8, %v9425_v33  ;;  %v11236_v33 = vld [vmem:[#allocation26_spill] sm:$0xff] }
 0x2aa   :  { %7543 = vmatmul.mubr.msk.f32.gmra.mrb[6].mxu1 %vm672_vm8, %v9452_v55  ;;  %v11237_v55 = vld [vmem:[#allocation35_spill] sm:$0xff] }
 0x2ab   :  { %7545 = vmatprep.mubr.msk.f32.mxu1 %vm672_vm8, %v11181_v25 }
 0x2ae   :  { %7546 = vmatmul.mubr.msk.f32.gmra.mrb[8].mxu1 %vm672_vm8, %v11183_v27 }
 0x2af   :  { %7548 = vmatprep.mubr.msk.f32.mxu1 %vm672_vm8, %v10168_v30 }
 0x2b2   :  { %7549 = vmatmul.mubr.msk.f32.gmra.mrb[10].mxu1 %vm672_vm8, %v11235_v6 }
 0x2b3   :  { %7557 = vmatprep.mubr.msk.f32.mxu1 %vm672_vm8, %v9513_v52  ;;  %v11238_v52 = vld [vmem:[#allocation41_spill] sm:$0xff] }
 0x2b6   :  { %7558 = vmatmul.mubr.msk.f32.vlgmr.msra.gmra.mrb[12].mxu1 %vm672_vm8, %v9527_v9  ;;  %v11240_v9 = vld [vmem:[#allocation42_spill] sm:$0xff] }
 0x2b7   :  { %7560 = vmatprep.mubr.msk.f32.mxu1 %vm672_vm8, %v9533_v18  ;;  %v11241_v18 = vld [vmem:[#allocation27_spill] sm:$0xff] }
 0x2ba   :  { %7561 = vmatmul.mubr.msk.f32.gmra.mrb[14].mxu1 %vm672_vm8, %v9571_v37  ;;  %v11242_v37 = vld [vmem:[#allocation82_spill] sm:$0xff] }
 0x2bb   :  { %7563 = vmatprep.mubr.msk.f32.mxu1 %vm672_vm8, %v9580_v2  ;;  %v11239_v2 = vld [vmem:[#allocation16_spill] sm:$0xff] }
 0x2be   :  { %7564 = vmatmul.mubr.msk.f32.gmra.mrb[0].mxu1 %vm672_vm8, %v9601_v12  ;;  %v5406_v12 = vcombine.low %v11207_v11, %v11220_v1 }
 0x2bf   :  { %7566 = vmatprep.mubr.msk.f32.mxu1 %vm672_vm8, %v10226_v45 }
 0x2c2   :  { %7567 = vmatmul.mubr.msk.f32.gmra.mrb[2].mxu1 %vm672_vm8, %v5405_v40 }
 0x2c3   :  { %7569 = vmatprep.mubr.msk.f32.mxu1 %vm672_vm8, %v11236_v33 }
 0x2c6   :  { %7570 = vmatmul.mubr.msk.f32.gmra.mrb[4].mxu1 %vm672_vm8, %v11237_v55 }
 0x2c7   :  { %7572 = vmatprep.mubr.msk.f32.mxu1 %vm672_vm8, %v11238_v52 }
 0x2ca   :  { %7573 = vmatmul.mubr.msk.f32.gmra.mrb[6].mxu1 %vm672_vm8, %v11239_v2 }
 0x2cb   :  { %7575 = vmatprep.mubr.msk.f32.mxu1 %vm672_vm8, %v11240_v9 }
 0x2ce   :  { %7576 = vmatmul.mubr.msk.f32.gmra.mrb[8].mxu1 %vm672_vm8, %v11241_v18 }
 0x2cf   :  { %7578 = vmatprep.mubr.msk.f32.mxu1 %vm672_vm8, %v11242_v37 }
 0x2d2   :  { %7579 = vmatmul.mubr.msk.f32.gmra.mrb[10].mxu1 %vm672_vm8, %v5406_v12 }
 0x32e   :  { %v7145_v21 = vpop.f32.mrb[40].mxu0 }
 0x32f   :  { %v2938_v29 = vpop.f32.mrb[41].mxu0 }
 0x332   :  { %v7148_v60 = vpop.f32.mrb[42].mxu0 }
 0x333   :  { %v2948_v54 = vpop.f32.mrb[43].mxu0 }
 0x336   :  { %v7151_v30 = vpop.f32.mrb[44].mxu0 }
 0x337   :  { %v2958_v25 = vpop.f32.mrb[45].mxu0 }
 0x33a   :  { %v7154_v27 = vpop.f32.mrb[46].mxu0 }
 0x33b   :  { %v2968_v45 = vpop.f32.mrb[47].mxu0 }
 0x33e   :  { %v10578_v20 = vpop.f32.mrb[48].mxu0 }
 0x33f   :  { %v10580_v42 = vpop.f32.mrb[49].mxu0 }
 0x342   :  { %v10582_v57 = vpop.f32.mrb[50].mxu0 }
 0x343   :  { %v10584_v48 = vpop.f32.mrb[51].mxu0 }
 0x346   :  { %v7169_v59 = vpop.f32.mrb[36].mxu0 }
 0x347   :  { %v3106_v11 = vpop.f32.mrb[37].mxu0 }
 0x34a   :  { %v7172_v31 = vpop.f32.mrb[38].mxu0 }
 0x34b   :  { %v3116_v44 = vpop.f32.mrb[39].mxu0 }
 0x389   :  { %v7559_v1 = vpop.f32.mrb[12].mxu1 }
 0x38a   :  { %v7695_v36 = vadd.f32 %v7559_v1, %v7169_v59  ;;  %v5480_v22 = vpop.f32.mrb[13].mxu1 }
 0x38b   :  { %v7696_v63 = vadd.f32 %v5480_v22, %v3106_v11 }
 0x38c   :  { %v5583_v38 = vadd.f32 %v7695_v36, %v10589_v51 }
 0x38d   :  { %v5582_v39 = vadd.f32 %v7696_v63, %v10589_v51  ;;  %v7562_v62 = vpop.f32.mrb[14].mxu1 }
 0x38e   :  { %v5599_v34 = vmax.f32 %v5583_v38, 0.0  ;;  %v7697_v7 = vadd.f32 %v7562_v62, %v7172_v31  ;;  %v5490_v14 = vpop.f32.mrb[15].mxu1 }
 0x38f   :  { %v5598_v28 = vmax.f32 %v5582_v39, 0.0  ;;  %v7698_v15 = vadd.f32 %v5490_v14, %v3116_v44 }
 0x390   :  { %5615 = vst.msk [vmem:[#allocation2 + $0x8] sm:$0xff] %vm672_vm8, %v5599_v34  ;;  %v5585_v32 = vadd.f32 %v7697_v7, %v10589_v51 }
 0x391   :  { %5614 = vst.msk [vmem:[#allocation2] sm:$0xff] %vm672_vm8, %v5598_v28  ;;  %v5584_v24 = vadd.f32 %v7698_v15, %v10589_v51  ;;  %v7565_v19 = vpop.f32.mrb[0].mxu1 }
 0x392   :  { %v5601_v50 = vmax.f32 %v5585_v32, 0.0  ;;  %v7699_v46 = vadd.f32 %v7565_v19, %v7145_v21  ;;  %v5500_v26 = vpop.f32.mrb[1].mxu1 }
 0x393   :  { %v5600_v0 = vmax.f32 %v5584_v24, 0.0  ;;  %v7700_v47 = vadd.f32 %v5500_v26, %v2938_v29 }
 0x394   :  { %5617 = vst.msk [vmem:[#allocation2 + $0x18] sm:$0xff] %vm672_vm8, %v5601_v50  ;;  %v5587_v56 = vadd.f32 %v7699_v46, %v10589_v51 }
 0x395   :  { %5616 = vst.msk [vmem:[#allocation2 + $0x10] sm:$0xff] %vm672_vm8, %v5600_v0  ;;  %v5586_v17 = vadd.f32 %v7700_v47, %v10589_v51  ;;  %v7568_v41 = vpop.f32.mrb[2].mxu1 }
 0x396   :  { %v5603_v4 = vmax.f32 %v5587_v56, 0.0  ;;  %v7701_v61 = vadd.f32 %v7568_v41, %v7148_v60  ;;  %v5510_v49 = vpop.f32.mrb[3].mxu1 }
 0x397   :  { %v5602_v43 = vmax.f32 %v5586_v17, 0.0  ;;  %v7702_v10 = vadd.f32 %v5510_v49, %v2948_v54 }
 0x398   :  { %5619 = vst.msk [vmem:[#allocation2 + $0x28] sm:$0xff] %vm672_vm8, %v5603_v4  ;;  %v5589_v23 = vadd.f32 %v7701_v61, %v10589_v51 }
 0x399   :  { %5618 = vst.msk [vmem:[#allocation2 + $0x20] sm:$0xff] %vm672_vm8, %v5602_v43  ;;  %v5588_v3 = vadd.f32 %v7702_v10, %v10589_v51  ;;  %v7571_v53 = vpop.f32.mrb[4].mxu1 }
 0x39a   :  { %v5605_v13 = vmax.f32 %v5589_v23, 0.0  ;;  %v7703_v35 = vadd.f32 %v7571_v53, %v7151_v30  ;;  %v5520_v16 = vpop.f32.mrb[5].mxu1 }
 0x39b   :  { %v5604_v5 = vmax.f32 %v5588_v3, 0.0  ;;  %v7704_v58 = vadd.f32 %v5520_v16, %v2958_v25 }
 0x39c   :  { %5621 = vst.msk [vmem:[#allocation2 + $0x38] sm:$0xff] %vm672_vm8, %v5605_v13  ;;  %v5591_v8 = vadd.f32 %v7703_v35, %v10589_v51 }
 0x39d   :  { %5620 = vst.msk [vmem:[#allocation2 + $0x30] sm:$0xff] %vm672_vm8, %v5604_v5  ;;  %v5590_v6 = vadd.f32 %v7704_v58, %v10589_v51  ;;  %v7574_v40 = vpop.f32.mrb[6].mxu1 }
 0x39e   :  { %v5607_v33 = vmax.f32 %v5591_v8, 0.0  ;;  %v7705_v55 = vadd.f32 %v7574_v40, %v7154_v27  ;;  %v5530_v52 = vpop.f32.mrb[7].mxu1 }
 0x39f   :  { %v5606_v2 = vmax.f32 %v5590_v6, 0.0  ;;  %v7706_v9 = vadd.f32 %v5530_v52, %v2968_v45 }
 0x3a0   :  { %5623 = vst.msk [vmem:[#allocation2 + $0x48] sm:$0xff] %vm672_vm8, %v5607_v33  ;;  %v5593_v18 = vadd.f32 %v7705_v55, %v10589_v51 }
 0x3a1   :  { %5622 = vst.msk [vmem:[#allocation2 + $0x40] sm:$0xff] %vm672_vm8, %v5606_v2  ;;  %v5592_v37 = vadd.f32 %v7706_v9, %v10589_v51  ;;  %v7577_v12 = vpop.f32.mrb[8].mxu1 }
 0x3a2   :  { %v5609_v21 = vmax.f32 %v5593_v18, 0.0  ;;  %v7707_v29 = vadd.f32 %v7577_v12, %v10578_v20  ;;  %v5540_v60 = vpop.f32.mrb[9].mxu1 }
 0x3a3   :  { %v5608_v54 = vmax.f32 %v5592_v37, 0.0  ;;  %v7708_v30 = vadd.f32 %v5540_v60, %v10580_v42 }
 0x3a4   :  { %5625 = vst.msk [vmem:[#allocation2 + $0x58] sm:$0xff] %vm672_vm8, %v5609_v21  ;;  %v5595_v25 = vadd.f32 %v7707_v29, %v10589_v51 }
 0x3a5   :  { %5624 = vst.msk [vmem:[#allocation2 + $0x50] sm:$0xff] %vm672_vm8, %v5608_v54  ;;  %v5594_v27 = vadd.f32 %v7708_v30, %v10589_v51  ;;  %v7580_v45 = vpop.f32.mrb[10].mxu1 }
 0x3a6   :  { %v5611_v59 = vmax.f32 %v5595_v25, 0.0  ;;  %v7709_v11 = vadd.f32 %v7580_v45, %v10582_v57  ;;  %v5550_v31 = vpop.f32.mrb[11].mxu1 }
 0x3a7   :  { %v5610_v44 = vmax.f32 %v5594_v27, 0.0  ;;  %v7710_v20 = vadd.f32 %v5550_v31, %v10584_v48 }
 0x3a8   :  { %5627 = vst.msk [vmem:[#allocation2 + $0x68] sm:$0xff] %vm672_vm8, %v5611_v59  ;;  %v5597_v42 = vadd.f32 %v7709_v11, %v10589_v51 }
 0x3a9   :  { %5626 = vst.msk [vmem:[#allocation2 + $0x60] sm:$0xff] %vm672_vm8, %v5610_v44  ;;  %v5596_v1 = vadd.f32 %v7710_v20, %v10589_v51 }
 0x3aa   :  { %v5613_v36 = vmax.f32 %v5597_v42, 0.0 }
 0x3ab   :  { %v5612_v22 = vmax.f32 %v5596_v1, 0.0 }
 0x3ac   :  { %5629 = vst.msk [vmem:[#allocation2 + $0x78] sm:$0xff] %vm672_vm8, %v5613_v36 }
 0x3ad   :  { %5628 = vst.msk [vmem:[#allocation2 + $0x70] sm:$0xff] %vm672_vm8, %v5612_v22 }
 0x3ae   :  { %8096 = shalt.err (!%p8093_p4)
}
 0x3af   :  { %s8097_s15 = scalar_lea.hbm %s10644_s5, 2048 }
 0x3b0   :  { %p8098_p5 = scmp.ne.s32.totalorder %s10644_s5, %s8097_s15  ;;  %p8101_p6 = scmp.lt.u32.totalorder %s8097_s15, %s10644_s5 }
 0x3b2   :  { %p8103_p7 = pnand %p8101_p6, %p8098_p5 }
 0x3b4   :  { %8106 = shalt.err (!%p8103_p7)
}
 0x3b5   :  { %s8111_s20 = smov 128   ;;  %s8112_s21 = smov 8  }
 0x3b6   :  { %5641 = dma.vmem_to_hbm [thread:$0]  %s5636_s11, 2048, %s10644_s5, [#allocation3], %s8111_s20, %s8111_s20, %s8112_s21  }
 0x3b7   :  { %8107 = dma.done.wait [#allocation3], 2048  }
 0x3b8   :  { %8108 = vsyncadd [#allocation3], 4294965248 }
 0x3b9   :  { %5645 = vsyncpa [#allocation3], 1 }

</bundles_post_ra>
